<compile_context>
chip_gen: v5e
topology: v5e:2x2
jax: 0.10.0
libtpu: 0.0.40
codegen_flags: <defaults>
</compile_context>

<pallas_src>
import math

import jax
import jax.numpy as jnp
from jax import lax
from jax.experimental import pallas as pl
from jax.experimental.pallas import tpu as pltpu


INV_SQRT2 = 1.0 / math.sqrt(2.0)


def _cdiv(a, b):
    return -(-a // b)


def _gelu(x):
    # exact erf-based gelu, matching the PyTorch reference `gelu()`
    return x * 0.5 * (1.0 + lax.erf(x * INV_SQRT2))


def _make_kernel(kernel_size: int, dilation: int, l_tile: int, win: int):
    """Fused resblock kernel for static (kernel_size, dilation, l_tile, win)."""

    def kernel(x_ref, w1_ref, s1_ref, t1_ref, sh2_ref, w2_ref, b2_ref, o_ref):
        # x_ref : (1, C, L_pad)   per-batch block, resident across the lt axis
        # w1_ref: (K, Cb, C)      conv1 per-tap weights, bn2-scale folded in
        # s1/t1 : (C, 1)          folded eval-mode bn1 scale / shift
        # sh2   : (Cb, 1)         bn2_shift + b1 * bn2_scale (post-conv1 shift)
        # w2_ref: (C, Cb)  b2_ref: (C, 1)
        # o_ref : (1, C, l_tile)
        lt = pl.program_id(1)
        start = pl.multiple_of(lt * l_tile, 128)      # l_tile is a multiple of 128

        # 128-aligned lane window for this output tile (includes the halo pad)
        xin = x_ref[0, :, pl.ds(start, win)]          # (C, win)

        # bn1 (eval, folded) + gelu
        h = _gelu(xin * s1_ref[...] + t1_ref[...])    # (C, win)

        # conv1 (bn2 scale already folded into the weights): K per-tap matmuls
        # on the UN-shifted activations; shift/crop only the small (Cb, win)
        # results instead of materializing a (K*C, l_tile) im2col buffer.
        acc = jnp.dot(w1_ref[0], h,
                      preferred_element_type=jnp.float32)[:, :l_tile]   # (Cb, l_tile)
        for k in range(1, kernel_size):
            y = jnp.dot(w1_ref[k], h,
                        preferred_element_type=jnp.float32)             # (Cb, win)
            acc = acc + y[:, k * dilation: k * dilation + l_tile]

        # post-conv1 shift (b1 + bn2 shift, folded) + gelu
        h2 = _gelu(acc + sh2_ref[...])                # (Cb, l_tile)

        # conv2: 1x1 conv == channel matmul
        out = jnp.dot(w2_ref[...], h2,
                      preferred_element_type=jnp.float32) + b2_ref[...]
        o_ref[0] = out.astype(o_ref.dtype)

    return kernel


def protein_resnet_block(x_ncw, params, *, dilation: int, input_mask=None):
    """x_ncw: (B, hidden, L) float32, PyTorch NCW layout.

    params: dict with
      w1: (Cb, C, K)  b1: (Cb,)      -- conv1 (PyTorch OIW layout)
      w2: (C, Cb, 1)  b2: (C,)       -- conv2
      bn1_scale/bn1_shift: (C,)      -- folded eval-mode BatchNorm1d(hidden)
      bn2_scale/bn2_shift: (Cb,)     -- folded eval-mode BatchNorm1d(bottleneck)
    Returns (B, hidden, L_out) with L_out = L - dilation*(K-1).
    """
    # TODO(synk): MaskedConv1d's `x * input_mask` pre-multiply is not applied;
    # only the input_mask=None path (the common case) is implemented.
    assert input_mask is None

    B, C, L = x_ncw.shape
    w1 = params["w1"]                      # (Cb, C, K)
    Cb, _, K = w1.shape
    halo = dilation * (K - 1)
    l_out = L - halo
    assert l_out > 0

    # Lane-dense output tiles (multiple of 128).  Prefer 512-wide tiles, but
    # shrink so the total grid has >= 2 steps when possible (v7x has 2 TCs).
    l_tile = 512
    while l_tile > 128 and B * _cdiv(l_out, l_tile) < 2:
        l_tile //= 2
    n_lt = _cdiv(l_out, l_tile)
    l_out_pad = n_lt * l_tile
    halo_pad = _cdiv(halo, 128) * 128 if halo > 0 else 0
    win = l_tile + halo_pad                # 128-aligned per-tile input window
    l_pad = l_out_pad + halo_pad           # padded sequence length

    f32 = jnp.float32
    x = x_ncw.astype(f32)
    if l_pad > L:
        x = jnp.pad(x, ((0, 0), (0, 0), (0, l_pad - L)))

    # ---- parameter prep (tiny, one-time wrapper math) ----
    s1 = params["bn1_scale"].reshape(C, 1).astype(f32)
    t1 = params["bn1_shift"].reshape(C, 1).astype(f32)
    s2 = params["bn2_scale"].astype(f32)                                  # (Cb,)
    # fold bn2 scale + conv1 bias into per-tap conv1 weights / a single shift
    w1_taps = jnp.transpose(w1.astype(f32) * s2[:, None, None], (2, 0, 1))  # (K, Cb, C)
    sh2 = (params["bn2_shift"].astype(f32)
           + params["b1"].astype(f32) * s2).reshape(Cb, 1)                # (Cb, 1)
    w2 = params["w2"][:, :, 0].astype(f32)                                # (C, Cb)
    b2 = params["b2"].reshape(C, 1).astype(f32)

    kern = _make_kernel(K, dilation, l_tile, win)

    # VMEM sizing from the actual resident buffers (double-buffered x / out
    # blocks + parameters) instead of relying on the default scoped limit.
    # TODO(synk): for very long sequences (L >~ 50k) the per-batch resident x
    # block should become a halo'd per-tile block to bound VMEM residency.
    param_bytes = 4 * (K * Cb * C + 2 * C + Cb + C * Cb + C)
    vmem_need = 2 * 4 * C * l_pad + 2 * 4 * C * l_tile + 2 * param_bytes + (8 << 20)
    vmem_limit = int(min(max(vmem_need, 16 << 20), 64 << 20))

    cost = pl.CostEstimate(
        flops=int(2 * B * l_out_pad * (Cb * K * C + C * Cb)),
        transcendentals=int(B * (C * (l_out_pad + halo) + Cb * l_out_pad)),
        bytes_accessed=int(4 * B * C * (l_pad + l_out_pad) + param_bytes),
    )

    out = pl.pallas_call(
        kern,
        out_shape=jax.ShapeDtypeStruct((B, C, l_out_pad), f32),
        grid_spec=pltpu.PrefetchScalarGridSpec(
            num_scalar_prefetch=0,
            grid=(B, n_lt),                    # B outer -> x block resident over lt
            in_specs=[
                pl.BlockSpec((1, C, l_pad), lambda b, lt: (b, 0, 0)),   # x (padded seq / batch)
                pl.BlockSpec((K, Cb, C), lambda b, lt: (0, 0, 0)),      # conv1 taps (bn2-folded)
                pl.BlockSpec((C, 1), lambda b, lt: (0, 0)),             # bn1 scale
                pl.BlockSpec((C, 1), lambda b, lt: (0, 0)),             # bn1 shift
                pl.BlockSpec((Cb, 1), lambda b, lt: (0, 0)),            # folded post-conv1 shift
                pl.BlockSpec((C, Cb), lambda b, lt: (0, 0)),            # w2
                pl.BlockSpec((C, 1), lambda b, lt: (0, 0)),             # b2
            ],
            out_specs=pl.BlockSpec((1, C, l_tile), lambda b, lt: (b, 0, lt)),
        ),
        compiler_params=pltpu.CompilerParams(
            dimension_semantics=("parallel", "parallel"),
            vmem_limit_bytes=vmem_limit),
        cost_estimate=cost,
    )(x, w1_taps, s1, t1, sh2, w2, b2)

    return out[:, :, :l_out]                                             # (B, C, L_out)


def _reference(x_ncw, params, dilation):
    """Pure-JAX reference mirroring the PyTorch forward (eval-mode BN)."""
    s1 = params["bn1_scale"][None, :, None]
    t1 = params["bn1_shift"][None, :, None]
    s2 = params["bn2_scale"][None, :, None]
    t2 = params["bn2_shift"][None, :, None]

    h = x_ncw * s1 + t1
    h = h * 0.5 * (1.0 + lax.erf(h * INV_SQRT2))
    out = lax.conv_general_dilated(
        h, params["w1"], window_strides=(1,), padding="VALID",
        rhs_dilation=(dilation,), dimension_numbers=("NCH", "OIH", "NCH"),
    ) + params["b1"][None, :, None]
    out = out * s2 + t2
    out = out * 0.5 * (1.0 + lax.erf(out * INV_SQRT2))
    out = jnp.einsum("oc,bcl->bol", params["w2"][:, :, 0], out) \
        + params["b2"][None, :, None]
    return out


if __name__ == "__main__":
    # config: hidden_size=32, resnet_bottleneck_factor=0.5, dilation_rate=2,
    #         first_dilated_layer=1, layer_index=1, hidden_act='gelu'
    hidden_size = 32
    bottleneck = math.floor(0.5 * hidden_size)      # 16
    kernel_size = 9
    layer_index, first_dilated_layer, dilation_rate = 1, 1, 2
    dilation = max(1, dilation_rate ** (layer_index - first_dilated_layer + 1))  # 2
    eps = 1e-5

    key = jax.random.PRNGKey(0)
    ks = jax.random.split(key, 13)

    # deterministic synthetic parameters (shapes follow the module __init__)
    w1 = 0.1 * jax.random.normal(ks[1], (bottleneck, hidden_size, kernel_size), jnp.float32)
    b1 = 0.1 * jax.random.normal(ks[2], (bottleneck,), jnp.float32)
    w2 = 0.1 * jax.random.normal(ks[3], (hidden_size, bottleneck, 1), jnp.float32)
    b2 = 0.1 * jax.random.normal(ks[4], (hidden_size,), jnp.float32)

    bn1_w = 1.0 + 0.1 * jax.random.normal(ks[5], (hidden_size,), jnp.float32)
    bn1_b = 0.1 * jax.random.normal(ks[6], (hidden_size,), jnp.float32)
    bn1_mean = 0.1 * jax.random.normal(ks[7], (hidden_size,), jnp.float32)
    bn1_var = jnp.abs(1.0 + 0.1 * jax.random.normal(ks[8], (hidden_size,), jnp.float32))
    bn2_w = 1.0 + 0.1 * jax.random.normal(ks[9], (bottleneck,), jnp.float32)
    bn2_b = 0.1 * jax.random.normal(ks[10], (bottleneck,), jnp.float32)
    bn2_mean = 0.1 * jax.random.normal(ks[11], (bottleneck,), jnp.float32)
    bn2_var = jnp.ones((bottleneck,), jnp.float32)

    # fold eval-mode BatchNorm into per-channel scale/shift
    bn1_scale = bn1_w / jnp.sqrt(bn1_var + eps)
    bn1_shift = bn1_b - bn1_mean * bn1_scale
    bn2_scale = bn2_w / jnp.sqrt(bn2_var + eps)
    bn2_shift = bn2_b - bn2_mean * bn2_scale

    params = dict(w1=w1, b1=b1, w2=w2, b2=b2,
                  bn1_scale=bn1_scale, bn1_shift=bn1_shift,
                  bn2_scale=bn2_scale, bn2_shift=bn2_shift)

    # case 1: lane-tiled path (L_out = 1024 -> two 512-lane output tiles, B=2)
    # case 2: padded ragged path (L_out = 84 -> one 128-lane tile, pad cropped)
    for (B, L) in ((2, 1040), (1, 100)):
        x = jax.random.normal(jax.random.fold_in(ks[0], L),
                              (B, hidden_size, L), dtype=jnp.float32)
        out = jax.block_until_ready(
            protein_resnet_block(x, params, dilation=dilation))
        ref = jax.block_until_ready(_reference(x, params, dilation))
        l_out = L - dilation * (kernel_size - 1)
        assert out.shape == (B, hidden_size, l_out), out.shape
        assert jnp.allclose(out, ref, atol=1e-4, rtol=1e-4), \
            float(jnp.max(jnp.abs(out - ref)))

    print("KERNEL_OK")
</pallas_src>

<mosaic_0001>
module attributes {stable_mosaic.version = 11 : i64} {
  func.func @kernel(%arg0: i32, %arg1: i32, %arg2: memref<1x32x1152xf32, #tpu.memory_space<vmem>>, %arg3: memref<9x16x32xf32, #tpu.memory_space<vmem>>, %arg4: memref<32x1xf32, #tpu.memory_space<vmem>>, %arg5: memref<32x1xf32, #tpu.memory_space<vmem>>, %arg6: memref<16x1xf32, #tpu.memory_space<vmem>>, %arg7: memref<32x16xf32, #tpu.memory_space<vmem>>, %arg8: memref<32x1xf32, #tpu.memory_space<vmem>>, %arg9: memref<1x32x512xf32, #tpu.memory_space<vmem>>) attributes {dimension_semantics = [#tpu.dimension_semantics<parallel>, #tpu.dimension_semantics<parallel>], iteration_bounds = array<i64: 2, 2>, scalar_prefetch = 0 : i64, scratch_operands = 0 : i64, tpu.core_type = #tpu.core_type<tc>, window_params = [{transform_indices = @transform_0, window_bounds = array<i64: 1, 32, 1152>}, {pipeline_mode = #tpu.pipeline_mode<synchronous>, transform_indices = @transform_1, window_bounds = array<i64: 9, 16, 32>}, {pipeline_mode = #tpu.pipeline_mode<synchronous>, transform_indices = @transform_2, window_bounds = array<i64: 32, 1>}, {pipeline_mode = #tpu.pipeline_mode<synchronous>, transform_indices = @transform_3, window_bounds = array<i64: 32, 1>}, {pipeline_mode = #tpu.pipeline_mode<synchronous>, transform_indices = @transform_4, window_bounds = array<i64: 16, 1>}, {pipeline_mode = #tpu.pipeline_mode<synchronous>, transform_indices = @transform_5, window_bounds = array<i64: 32, 16>}, {pipeline_mode = #tpu.pipeline_mode<synchronous>, transform_indices = @transform_6, window_bounds = array<i64: 32, 1>}, {transform_indices = @transform_7, window_bounds = array<i64: 1, 32, 512>}]} {
    %c512_i32 = arith.constant 512 : i32
    %0 = arith.muli %arg1, %c512_i32 : i32
    %1 = tpu.assume_multiple %0, 128 : i32
    %c0 = arith.constant 0 : index
    %c0_0 = arith.constant 0 : index
    %2 = arith.index_cast %1 : i32 to index
    %3 = vector.load %arg2[%c0, %c0_0, %2] : memref<1x32x1152xf32, #tpu.memory_space<vmem>>, vector<1x32x640xf32>
    %4 = vector.shape_cast %3 : vector<1x32x640xf32> to vector<32x640xf32>
    %c0_1 = arith.constant 0 : index
    %c0_2 = arith.constant 0 : index
    %5 = vector.load %arg4[%c0_1, %c0_2] : memref<32x1xf32, #tpu.memory_space<vmem>>, vector<32x1xf32>
    %6 = vector.broadcast %5 : vector<32x1xf32> to vector<32x640xf32>
    %7 = arith.mulf %4, %6 : vector<32x640xf32>
    %c0_3 = arith.constant 0 : index
    %c0_4 = arith.constant 0 : index
    %8 = vector.load %arg5[%c0_3, %c0_4] : memref<32x1xf32, #tpu.memory_space<vmem>>, vector<32x1xf32>
    %9 = vector.broadcast %8 : vector<32x1xf32> to vector<32x640xf32>
    %10 = arith.addf %7, %9 : vector<32x640xf32>
    %cst = arith.constant 5.000000e-01 : f32
    %11 = vector.broadcast %cst : f32 to vector<32x640xf32>
    %12 = arith.mulf %10, %11 : vector<32x640xf32>
    %cst_5 = arith.constant 0.707106769 : f32
    %13 = vector.broadcast %cst_5 : f32 to vector<32x640xf32>
    %14 = arith.mulf %10, %13 : vector<32x640xf32>
    %15 = math.erf %14 : vector<32x640xf32>
    %cst_6 = arith.constant 1.000000e+00 : f32
    %16 = vector.broadcast %cst_6 : f32 to vector<32x640xf32>
    %17 = arith.addf %16, %15 : vector<32x640xf32>
    %18 = arith.mulf %12, %17 : vector<32x640xf32>
    %c0_7 = arith.constant 0 : index
    %c0_8 = arith.constant 0 : index
    %c0_9 = arith.constant 0 : index
    %19 = vector.load %arg3[%c0_7, %c0_8, %c0_9] : memref<9x16x32xf32, #tpu.memory_space<vmem>>, vector<1x16x32xf32>
    %20 = vector.shape_cast %19 : vector<1x16x32xf32> to vector<16x32xf32>
    %cst_10 = arith.constant dense<0.000000e+00> : vector<16x640xf32>
    %21 = tpu.matmul %20, %18, %cst_10 {dimension_numbers = #tpu.dot_dimension_numbers<[1], [0], [0], [1], [0, 0, 1, 1], [], []>} : vector<16x32xf32>, vector<32x640xf32>, vector<16x640xf32> -> vector<16x640xf32>
    %22 = vector.extract_strided_slice %21 {offsets = [0, 0], sizes = [16, 512], strides = [1, 1]} : vector<16x640xf32> to vector<16x512xf32>
    %c1 = arith.constant 1 : index
    %c0_11 = arith.constant 0 : index
    %c0_12 = arith.constant 0 : index
    %23 = vector.load %arg3[%c1, %c0_11, %c0_12] : memref<9x16x32xf32, #tpu.memory_space<vmem>>, vector<1x16x32xf32>
    %24 = vector.shape_cast %23 : vector<1x16x32xf32> to vector<16x32xf32>
    %cst_13 = arith.constant dense<0.000000e+00> : vector<16x640xf32>
    %25 = tpu.matmul %24, %18, %cst_13 {dimension_numbers = #tpu.dot_dimension_numbers<[1], [0], [0], [1], [0, 0, 1, 1], [], []>} : vector<16x32xf32>, vector<32x640xf32>, vector<16x640xf32> -> vector<16x640xf32>
    %26 = vector.extract_strided_slice %25 {offsets = [0, 2], sizes = [16, 512], strides = [1, 1]} : vector<16x640xf32> to vector<16x512xf32>
    %27 = arith.addf %22, %26 : vector<16x512xf32>
    %c2 = arith.constant 2 : index
    %c0_14 = arith.constant 0 : index
    %c0_15 = arith.constant 0 : index
    %28 = vector.load %arg3[%c2, %c0_14, %c0_15] : memref<9x16x32xf32, #tpu.memory_space<vmem>>, vector<1x16x32xf32>
    %29 = vector.shape_cast %28 : vector<1x16x32xf32> to vector<16x32xf32>
    %cst_16 = arith.constant dense<0.000000e+00> : vector<16x640xf32>
    %30 = tpu.matmul %29, %18, %cst_16 {dimension_numbers = #tpu.dot_dimension_numbers<[1], [0], [0], [1], [0, 0, 1, 1], [], []>} : vector<16x32xf32>, vector<32x640xf32>, vector<16x640xf32> -> vector<16x640xf32>
    %31 = vector.extract_strided_slice %30 {offsets = [0, 4], sizes = [16, 512], strides = [1, 1]} : vector<16x640xf32> to vector<16x512xf32>
    %32 = arith.addf %27, %31 : vector<16x512xf32>
    %c3 = arith.constant 3 : index
    %c0_17 = arith.constant 0 : index
    %c0_18 = arith.constant 0 : index
    %33 = vector.load %arg3[%c3, %c0_17, %c0_18] : memref<9x16x32xf32, #tpu.memory_space<vmem>>, vector<1x16x32xf32>
    %34 = vector.shape_cast %33 : vector<1x16x32xf32> to vector<16x32xf32>
    %cst_19 = arith.constant dense<0.000000e+00> : vector<16x640xf32>
    %35 = tpu.matmul %34, %18, %cst_19 {dimension_numbers = #tpu.dot_dimension_numbers<[1], [0], [0], [1], [0, 0, 1, 1], [], []>} : vector<16x32xf32>, vector<32x640xf32>, vector<16x640xf32> -> vector<16x640xf32>
    %36 = vector.extract_strided_slice %35 {offsets = [0, 6], sizes = [16, 512], strides = [1, 1]} : vector<16x640xf32> to vector<16x512xf32>
    %37 = arith.addf %32, %36 : vector<16x512xf32>
    %c4 = arith.constant 4 : index
    %c0_20 = arith.constant 0 : index
    %c0_21 = arith.constant 0 : index
    %38 = vector.load %arg3[%c4, %c0_20, %c0_21] : memref<9x16x32xf32, #tpu.memory_space<vmem>>, vector<1x16x32xf32>
    %39 = vector.shape_cast %38 : vector<1x16x32xf32> to vector<16x32xf32>
    %cst_22 = arith.constant dense<0.000000e+00> : vector<16x640xf32>
    %40 = tpu.matmul %39, %18, %cst_22 {dimension_numbers = #tpu.dot_dimension_numbers<[1], [0], [0], [1], [0, 0, 1, 1], [], []>} : vector<16x32xf32>, vector<32x640xf32>, vector<16x640xf32> -> vector<16x640xf32>
    %41 = vector.extract_strided_slice %40 {offsets = [0, 8], sizes = [16, 512], strides = [1, 1]} : vector<16x640xf32> to vector<16x512xf32>
    %42 = arith.addf %37, %41 : vector<16x512xf32>
    %c5 = arith.constant 5 : index
    %c0_23 = arith.constant 0 : index
    %c0_24 = arith.constant 0 : index
    %43 = vector.load %arg3[%c5, %c0_23, %c0_24] : memref<9x16x32xf32, #tpu.memory_space<vmem>>, vector<1x16x32xf32>
    %44 = vector.shape_cast %43 : vector<1x16x32xf32> to vector<16x32xf32>
    %cst_25 = arith.constant dense<0.000000e+00> : vector<16x640xf32>
    %45 = tpu.matmul %44, %18, %cst_25 {dimension_numbers = #tpu.dot_dimension_numbers<[1], [0], [0], [1], [0, 0, 1, 1], [], []>} : vector<16x32xf32>, vector<32x640xf32>, vector<16x640xf32> -> vector<16x640xf32>
    %46 = vector.extract_strided_slice %45 {offsets = [0, 10], sizes = [16, 512], strides = [1, 1]} : vector<16x640xf32> to vector<16x512xf32>
    %47 = arith.addf %42, %46 : vector<16x512xf32>
    %c6 = arith.constant 6 : index
    %c0_26 = arith.constant 0 : index
    %c0_27 = arith.constant 0 : index
    %48 = vector.load %arg3[%c6, %c0_26, %c0_27] : memref<9x16x32xf32, #tpu.memory_space<vmem>>, vector<1x16x32xf32>
    %49 = vector.shape_cast %48 : vector<1x16x32xf32> to vector<16x32xf32>
    %cst_28 = arith.constant dense<0.000000e+00> : vector<16x640xf32>
    %50 = tpu.matmul %49, %18, %cst_28 {dimension_numbers = #tpu.dot_dimension_numbers<[1], [0], [0], [1], [0, 0, 1, 1], [], []>} : vector<16x32xf32>, vector<32x640xf32>, vector<16x640xf32> -> vector<16x640xf32>
    %51 = vector.extract_strided_slice %50 {offsets = [0, 12], sizes = [16, 512], strides = [1, 1]} : vector<16x640xf32> to vector<16x512xf32>
    %52 = arith.addf %47, %51 : vector<16x512xf32>
    %c7 = arith.constant 7 : index
    %c0_29 = arith.constant 0 : index
    %c0_30 = arith.constant 0 : index
    %53 = vector.load %arg3[%c7, %c0_29, %c0_30] : memref<9x16x32xf32, #tpu.memory_space<vmem>>, vector<1x16x32xf32>
    %54 = vector.shape_cast %53 : vector<1x16x32xf32> to vector<16x32xf32>
    %cst_31 = arith.constant dense<0.000000e+00> : vector<16x640xf32>
    %55 = tpu.matmul %54, %18, %cst_31 {dimension_numbers = #tpu.dot_dimension_numbers<[1], [0], [0], [1], [0, 0, 1, 1], [], []>} : vector<16x32xf32>, vector<32x640xf32>, vector<16x640xf32> -> vector<16x640xf32>
    %56 = vector.extract_strided_slice %55 {offsets = [0, 14], sizes = [16, 512], strides = [1, 1]} : vector<16x640xf32> to vector<16x512xf32>
    %57 = arith.addf %52, %56 : vector<16x512xf32>
    %c8 = arith.constant 8 : index
    %c0_32 = arith.constant 0 : index
    %c0_33 = arith.constant 0 : index
    %58 = vector.load %arg3[%c8, %c0_32, %c0_33] : memref<9x16x32xf32, #tpu.memory_space<vmem>>, vector<1x16x32xf32>
    %59 = vector.shape_cast %58 : vector<1x16x32xf32> to vector<16x32xf32>
    %cst_34 = arith.constant dense<0.000000e+00> : vector<16x640xf32>
    %60 = tpu.matmul %59, %18, %cst_34 {dimension_numbers = #tpu.dot_dimension_numbers<[1], [0], [0], [1], [0, 0, 1, 1], [], []>} : vector<16x32xf32>, vector<32x640xf32>, vector<16x640xf32> -> vector<16x640xf32>
    %61 = vector.extract_strided_slice %60 {offsets = [0, 16], sizes = [16, 512], strides = [1, 1]} : vector<16x640xf32> to vector<16x512xf32>
    %62 = arith.addf %57, %61 : vector<16x512xf32>
    %c0_35 = arith.constant 0 : index
    %c0_36 = arith.constant 0 : index
    %63 = vector.load %arg6[%c0_35, %c0_36] : memref<16x1xf32, #tpu.memory_space<vmem>>, vector<16x1xf32>
    %64 = vector.broadcast %63 : vector<16x1xf32> to vector<16x512xf32>
    %65 = arith.addf %62, %64 : vector<16x512xf32>
    %cst_37 = arith.constant 5.000000e-01 : f32
    %66 = vector.broadcast %cst_37 : f32 to vector<16x512xf32>
    %67 = arith.mulf %65, %66 : vector<16x512xf32>
    %cst_38 = arith.constant 0.707106769 : f32
    %68 = vector.broadcast %cst_38 : f32 to vector<16x512xf32>
    %69 = arith.mulf %65, %68 : vector<16x512xf32>
    %70 = math.erf %69 : vector<16x512xf32>
    %cst_39 = arith.constant 1.000000e+00 : f32
    %71 = vector.broadcast %cst_39 : f32 to vector<16x512xf32>
    %72 = arith.addf %71, %70 : vector<16x512xf32>
    %73 = arith.mulf %67, %72 : vector<16x512xf32>
    %c0_40 = arith.constant 0 : index
    %c0_41 = arith.constant 0 : index
    %74 = vector.load %arg7[%c0_40, %c0_41] : memref<32x16xf32, #tpu.memory_space<vmem>>, vector<32x16xf32>
    %cst_42 = arith.constant dense<0.000000e+00> : vector<32x512xf32>
    %75 = tpu.matmul %74, %73, %cst_42 {dimension_numbers = #tpu.dot_dimension_numbers<[1], [0], [0], [1], [0, 0, 1, 1], [], []>} : vector<32x16xf32>, vector<16x512xf32>, vector<32x512xf32> -> vector<32x512xf32>
    %c0_43 = arith.constant 0 : index
    %c0_44 = arith.constant 0 : index
    %76 = vector.load %arg8[%c0_43, %c0_44] : memref<32x1xf32, #tpu.memory_space<vmem>>, vector<32x1xf32>
    %77 = vector.broadcast %76 : vector<32x1xf32> to vector<32x512xf32>
    %78 = arith.addf %75, %77 : vector<32x512xf32>
    %c0_45 = arith.constant 0 : index
    %c0_46 = arith.constant 0 : index
    %c0_47 = arith.constant 0 : index
    %79 = vector.load %arg9[%c0_45, %c0_46, %c0_47] : memref<1x32x512xf32, #tpu.memory_space<vmem>>, vector<1x32x512xf32>
    %80 = vector.shape_cast %79 : vector<1x32x512xf32> to vector<32x512xf32>
    %81 = vector.shape_cast %78 : vector<32x512xf32> to vector<1x32x512xf32>
    tpu.vector_store %arg9[%c0_45, %c0_46, %c0_47], %81 {strides = array<i32>} : memref<1x32x512xf32, #tpu.memory_space<vmem>>, vector<1x32x512xf32>,
    return
  }
  func.func @transform_0(%arg0: i32, %arg1: i32) -> (i32, i32, i32) {
    %c0_i32 = arith.constant 0 : i32
    %c0_i32_0 = arith.constant 0 : i32
    %c0_i32_1 = arith.constant 0 : i32
    return %arg0, %c0_i32, %c0_i32_0 : i32, i32, i32
  }
  func.func @transform_1(%arg0: i32, %arg1: i32) -> (i32, i32, i32) {
    %c0_i32 = arith.constant 0 : i32
    %c0_i32_0 = arith.constant 0 : i32
    %c0_i32_1 = arith.constant 0 : i32
    %c0_i32_2 = arith.constant 0 : i32
    return %c0_i32, %c0_i32_0, %c0_i32_1 : i32, i32, i32
  }
  func.func @transform_2(%arg0: i32, %arg1: i32) -> (i32, i32) {
    %c0_i32 = arith.constant 0 : i32
    %c0_i32_0 = arith.constant 0 : i32
    %c0_i32_1 = arith.constant 0 : i32
    return %c0_i32, %c0_i32_0 : i32, i32
  }
  func.func @transform_3(%arg0: i32, %arg1: i32) -> (i32, i32) {
    %c0_i32 = arith.constant 0 : i32
    %c0_i32_0 = arith.constant 0 : i32
    %c0_i32_1 = arith.constant 0 : i32
    return %c0_i32, %c0_i32_0 : i32, i32
  }
  func.func @transform_4(%arg0: i32, %arg1: i32) -> (i32, i32) {
    %c0_i32 = arith.constant 0 : i32
    %c0_i32_0 = arith.constant 0 : i32
    %c0_i32_1 = arith.constant 0 : i32
    return %c0_i32, %c0_i32_0 : i32, i32
  }
  func.func @transform_5(%arg0: i32, %arg1: i32) -> (i32, i32) {
    %c0_i32 = arith.constant 0 : i32
    %c0_i32_0 = arith.constant 0 : i32
    %c0_i32_1 = arith.constant 0 : i32
    return %c0_i32, %c0_i32_0 : i32, i32
  }
  func.func @transform_6(%arg0: i32, %arg1: i32) -> (i32, i32) {
    %c0_i32 = arith.constant 0 : i32
    %c0_i32_0 = arith.constant 0 : i32
    %c0_i32_1 = arith.constant 0 : i32
    return %c0_i32, %c0_i32_0 : i32, i32
  }
  func.func @transform_7(%arg0: i32, %arg1: i32) -> (i32, i32, i32) {
    %c0_i32 = arith.constant 0 : i32
    %c0_i32_0 = arith.constant 0 : i32
    return %arg0, %c0_i32, %arg1 : i32, i32, i32
  }
}

</mosaic_0001>

<bundles_post_ra>
// kernel: tpu_custom_call.1
= control target key start
LH: loop header
LB: loop body
LE: loop exit
PB: predicated region body
PF: predicated region fallthrough
CT: control target
= control target key end

     0   :  { %12 = vsyncpa [#allocation3], 0  ;;  %s6067_s0 = inlined_call_operand.hbm [shape: f32[2,32,1152], index: 0, kind: input, shape index: {}]   ;;  %s6068_s1 = inlined_call_operand.vmem [shape: f32[9,16,32], index: 1, kind: input, shape index: {}]   ;;  %s6069_s2 = inlined_call_operand.vmem [shape: f32[32,1], index: 2, kind: input, shape index: {}]   ;;  %s6070_s3 = inlined_call_operand.vmem [shape: f32[32,1], index: 3, kind: input, shape index: {}]   ;;  %s6071_s4 = inlined_call_operand.vmem [shape: f32[16,1], index: 4, kind: input, shape index: {}]   ;;  %s6072_s5 = inlined_call_operand.vmem [shape: f32[32,16], index: 5, kind: input, shape index: {}]   ;;  %s6073_s6 = inlined_call_operand.vmem [shape: f32[32,1], index: 6, kind: input, shape index: {}]   ;;  %s6074_s7 = inlined_call_operand.hbm [shape: f32[2,32,1024], index: 7, kind: output, shape index: {}]  }
   0x1   :  { %14 = vsyncpa [#allocation3 + $0x1], 0 }
   0x2   :  { %15 = vsyncpa [#allocation4], 0 }
   0x3   :  { %17 = vsyncpa [#allocation4 + $0x1], 0  ;;  %s4041_s24 = smov 0   ;;  %s4043_s25 = smov 0  }
   0x4   :  { %s4045_s26 = smov 0   ;;  %s4047_s27 = smov 0  }
   0x5   :  { %s4049_s28 = smov 0   ;;  %s4051_s29 = smov 0  }
   0x6   :  { %s4053_s30 = smov 0   ;;  %s4055_s8 = smov 0  }
   0x7   :  { %s4057_s9 = smov 0   ;;  %s4059_s10 = smov 0  }
   0x8   :  { %s4061_s11 = smov 0  }
   0x9 LB: > { %6081 = sst [smem:[#allocation8_spill]] %s3945_s24  ;;  %s3492_s12 = sadd.s32 4294967295, %s3985_s11   ;;  %s3985_s11 = sphi %s4061_s11, %s23_s11   ;;  %s3981_s10 = sphi %s4059_s10, %s6142_s10   ;;  %s3977_s9 = sphi %s4057_s9, %s6141_s9   ;;  %s3973_s8 = sphi %s4055_s8, %s6140_s8   ;;  %s3969_s30 = sphi %s4053_s30, %s6139_s30   ;;  %s3965_s29 = sphi %s4051_s29, %s6147_s29   ;;  %s3961_s28 = sphi %s4049_s28, %s6146_s28   ;;  %s3957_s27 = sphi %s4047_s27, %s6145_s27   ;;  %s3953_s26 = sphi %s4045_s26, %s6137_s26   ;;  %s3949_s25 = sphi %s4043_s25, %s6144_s25   ;;  %s3945_s24 = sphi %s4041_s24, %s6143_s24  }
   0xa   : > { %6082 = sst [smem:[#allocation9_spill]] %s3953_s26  ;;  %s3493_s13 = sadd.s32 4294967294, %s3985_s11  }
   0xb   : > { %6083 = sst [smem:[#allocation10_spill]] %s3977_s9  ;;  %s32_s14 = sadd.s32 1, %s3977_s9 }
   0xc   : > { %6084 = sst [smem:[#allocation11_spill]] %s3981_s10  ;;  %s35_s15 = sadd.s32 1, %s3981_s10 }
   0xd   : > { %p33_p0 = scmp.ge.s32.totalorder %s32_s14, 2  ;;  %s42_s16 = sadd.s32 1, %s3965_s29 }
   0xe   : > { %p49_p1 = scmp.ne.s32.totalorder %s3965_s29, %s3961_s28  ;;  %p50_p2 = scmp.eq.s32.totalorder %s3985_s11, 0 }
   0xf   : > { %s6149_s14 = smov (%p33_p0, %s32_s14), 0  ;;  %s6151_s15 = smov (!%p33_p0, %s35_s15), %s3981_s10 }
  0x10   : > { %6085 = sst [smem:[#allocation12_spill]] %s6149_s14  ;;  %p4105_p3 = por %p50_p2, %p49_p1 }
  0x11   : > { %p55_p4 = scmp.ne.s32.totalorder %s3961_s28, %s3957_s27  ;;  %p37_p5 = scmp.ge.s32.totalorder %s6151_s15, 2 }
  0x12   : > { %p56_p6 = scmp.eq.s32.totalorder %s3492_s12, 0  ;;  %s192_s18 = ssub.s32 %s3977_s9, %s6149_s14 }
  0x13   : > { %s196_s19 = sadd.s32 1, %s3953_s26  ;;  %s6153_s15 = smov (%p37_p5, %s6151_s15), 0 }
  0x14   : > { %6087 = sst [smem:[#allocation13_spill]] %s6153_s15  ;;  %p4115_p7 = por %p56_p6, %p55_p4 }
  0x15   : > { %p206_p8 = scmp.ne.s32.totalorder %s3953_s26, %s3949_s25  ;;  %s39_s21 = ssub.s32 %s3981_s10, %s6153_s15 }
  0x16   : > { %p207_p9 = scmp.eq.s32.totalorder %s3492_s12, 3  ;;  %p40_p10 = scmp.eq.s32.totalorder %s39_s21, 0 }
  0x17   : > { %s193_s22 = sor.u32 %s192_s18, %s39_s21  ;;  %p212_p13 = scmp.ne.s32.totalorder %s3949_s25, %s3945_s24 }
  0x18   : > { %p194_p11 = scmp.eq.s32.totalorder %s193_s22, 0  ;;  %p4123_p12 = por %p207_p9, %p206_p8 }
  0x19   : > { %s4128_s27 = scalar_select %p40_p10, %s3965_s29, %s42_s16  }
  0x1a   : > { %s4131_s14 = scalar_select %p194_p11, %s3953_s26, %s196_s19  }
  0x1b   : > { %6090 = sst [smem:[#allocation14_spill]] %s4128_s27  ;;  %p213_p0 = scmp.eq.s32.totalorder %s3493_s13, 3 }
  0x1c   : > { %6091 = sst [smem:[#allocation15_spill]] %s4131_s14  ;;  %p3670_p1 = scmp.lt.s32.totalorder %s3985_s11, 4 }
  0x1d   : > { %p4136_p2 = por %p213_p0, %p212_p13  ;;  %s251_s12 = sand.u32 1, %s3965_s29  }
  0x1e   : > { %s3655_s18 = smul.u32 288, %s251_s12  ;;  %p3663_p4 = pnand %p3670_p1, %p4105_p3 }
  0x1f   : > { %s3656_s21 = smul.u32 288, %s3981_s10  ;;  %p3497_p5 = scmp.ge.s32.totalorder %s3985_s11, 1 }
  0x20   : > { %s255_s27 = scalar_lea.vmem [#allocation2], %s3655_s18  ;;  %s252_s13 = scalar_lea.sflag [#allocation3], %s251_s12 }
  0x21   : > { %s260_s16 = scalar_lea.hbm %s6067_s0, %s3656_s21  ;;  %s263_s19 = sshll.u32 %s255_s27, 4  ;;  %s264_s19 = int_to_ptr.vmem [resolvable:$true] %s263_s19 }
  0x22   : > { %s261_s14 = sshll.u32 %s260_s16, 4  ;;  %s3987_s26 = smov 1152   ;;  %s262_s14 = int_to_ptr.hbm [resolvable:$true] %s261_s14 }
  0x23   : > { %s3988_s24 = smov 72   ;;  %p271_p6 = scmp.lt.s32.totalorder %s3985_s11, 5 }
  0x24   : > { %3665 = dma.hbm_to_vmem [thread:$0]  (!%p3663_p4), %s262_s14, 4608, %s264_s19, %s252_s13, %s3987_s26, %s3987_s26, %s3988_s24  }
  0x25   : > { %p272_p8 = pnand %p3497_p5, %p271_p6 }
  0x26   : > { %s277_s17 = sand.u32 (!%p272_p8), 1, %s3961_s28  }
  0x27   : > { %275 = sbr.rel (%p272_p8) target bundleno = 1112 (0x458), region = 48  ;;  %s278_s15 = scalar_lea.sflag (!%p272_p8), [#allocation3], %s277_s17 }
  0x28   : > { %s4150_s10 = smul.u32 (!%p272_p8), 288, %s277_s17 }
  0x2a   : > { %s281_s18 = scalar_lea.vmem (!%p272_p8), [#allocation2], %s4150_s10 }
  0x2c   : > { %3936 = dma.done.wait (%p4115_p7), %s278_s15, 4608  }
  0x2d   : > { %3938 = vsyncadd (%p4115_p7), %s278_s15, 4294962688  ;;  %v3989_v0 = vmov 0   ;;  %v386_v1 = vld [vmem:[%s6070_s3 + $0x18] sm:$0xff]  ;;  %v385_v3 = vld [vmem:[%s6070_s3 + $0x10] sm:$0xff]  ;;  %s3499_s22 = sshll.u32 %s3969_s30, 9  ;;  %s3990_s10 = smov 126  }
  0x2e   : > { %3775 = vset.pattern.permute.xlu1 %v3989_v0  ;;  %3774 = vset.pattern.permute.xlu0 %v3989_v0  ;;  %v342_v2 = vld [vmem:[%s6069_s2 + $0x18] sm:$0xff]  ;;  %v341_v4 = vld [vmem:[%s6069_s2 + $0x10] sm:$0xff]  ;;  %v340_v5 = vld [vmem:[%s6069_s2 + $0x8] sm:$0xff]  ;;  %s315_s16 = sshra.s32 %s3499_s22, 7  ;;  %s3991_s26 = smov 124  }
  0x2f   : > { %3776 = vset.pattern.permute.xlu2 %v3989_v0  ;;  %404 = vperm.xlu1 %3775, %v386_v1   ;;  %v339_v6 = vld [vmem:[%s6069_s2] sm:$0xff]  ;;  %v384_v7 = vld [vmem:[%s6070_s3 + $0x8] sm:$0xff]  ;;  %s3500_s19 = sshll.u32 %s315_s16, 3  ;;  %s3992_s12 = smov 122  }
  0x30   : > { %360 = vperm.xlu0 %3774, %v342_v2   ;;  %399 = vperm.xlu2 %3776, %v385_v3   ;;  %v383_v8 = vld [vmem:[%s6070_s3] sm:$0xff]  ;;  %v2841_v10 = vld [vmem:[%s6071_s4 + $0x8] sm:$0xff]  ;;  %s4190_s13 = scalar_lea.vmem %s281_s18, %s3500_s19 [#allocation2]  ;;  %s3993_s21 = smov 120  }
  0x31   : > { %v2840_v9 = vld [vmem:[%s6071_s4] sm:$0xff]  ;;  %v334_v11 = vld [vmem:[%s4190_s13 + $0xd8] sm:$0xff]  ;;  %v336_v13 = vld [vmem:[%s4190_s13 + $0xe8] sm:$0xff]  ;;  %s3994_s20 = smov 118   ;;  %s3995_s22 = smov 116  }
  0x32   : > { %v335_v12 = vld [vmem:[%s4190_s13 + $0xe0] sm:$0xff]  ;;  %v337_v14 = vld [vmem:[%s4190_s13 + $0xf0] sm:$0xff]  ;;  %v338_v15 = vld [vmem:[%s4190_s13 + $0xf8] sm:$0xff]  ;;  %s3996_s16 = smov 114   ;;  %s3997_s19 = smov 112  }
  0x33   : > { %s3650_s15 = sshll.u32 %s3969_s30, 2  ;;  %s3651_s24 = sshll.u32 %s3973_s8, 5 }
  0x37   : > { %350 = vperm.xlu1 %3775, %v340_v5  }
  0x38   : > { %355 = vperm.xlu0 %3774, %v341_v4   ;;  %345 = vperm.xlu2 %3776, %v339_v6  }
  0x3f   : > { %389 = vperm.xlu1 %3775, %v383_v8  }
  0x40   : > { %394 = vperm.xlu0 %3774, %v384_v7   ;;  %2844 = vperm.xlu2 %3776, %v2840_v9  }
  0x48   : > { %2849 = vperm.xlu0 %3774, %v2841_v10  }
  0xa1   : > { %v405_v21 = vpop.permute.xlu1 %404 }
  0xa2   : > { %v361_v16 = vpop.permute.xlu0 %360 }
  0xa3   : > { %v378_v17 = vmul.f32 %v361_v16, %v334_v11  ;;  %v379_v18 = vmul.f32 %v361_v16, %v335_v12  ;;  %v380_v19 = vmul.f32 %v361_v16, %v336_v13  ;;  %v381_v20 = vmul.f32 %v361_v16, %v337_v14 }
  0xa4   : > { %v382_v22 = vmul.f32 %v361_v16, %v338_v15 }
  0xa5   : > { %v4197_v23 = vadd.f32 %v405_v21, %v378_v17  ;;  %v4199_v24 = vadd.f32 %v405_v21, %v379_v18  ;;  %v4201_v25 = vadd.f32 %v405_v21, %v380_v19  ;;  %v4203_v26 = vadd.f32 %v405_v21, %v381_v20 }
  0xa6   : > { %v4205_v27 = vadd.f32 %v405_v21, %v382_v22 }
  0xa7   : > { %v4208_v28 = vmul.f32 0.70710677, %v4197_v23  ;;  %v4211_v29 = vmul.f32 0.70710677, %v4199_v24  ;;  %v4214_v30 = vmul.f32 0.70710677, %v4201_v25 }
  0xa8   : > { %v4217_v31 = vmul.f32 0.70710677, %v4203_v26  ;;  %v4232_v38 = vmul.f32 0.70710677, %v4205_v27 }
  0xa9   : > { %v1067_v32 = vmul.f32 %v4208_v28, %v4208_v28  ;;  %v1107_v33 = vmul.f32 %v4211_v29, %v4211_v29  ;;  %v1147_v34 = vmul.f32 %v4214_v30, %v4214_v30 }
  0xaa   : > { %v1187_v35 = vmul.f32 %v4217_v31, %v4217_v31 }
  0xab   : > { %v4227_v36 = vmin.f32 %v1067_v32, 16.0  ;;  %v4229_v37 = vmin.f32 %v1107_v33, 16.0  ;;  %v4234_v39 = vmin.f32 %v1147_v34, 16.0 }
  0xac   : > { %v4236_v40 = vmin.f32 %v1187_v35, 16.0 }
  0xad   : > { %v1069_v41 = vmul.f32 2.1237322e-06, %v4227_v36  ;;  %v1080_v42 = vmul.f32 3.8918573e-05, %v4227_v36  ;;  %v1109_v43 = vmul.f32 2.1237322e-06, %v4229_v37 }
  0xae   : > { %v1120_v44 = vmul.f32 3.8918573e-05, %v4229_v37  ;;  %v1149_v45 = vmul.f32 2.1237322e-06, %v4234_v39  ;;  %v1160_v46 = vmul.f32 3.8918573e-05, %v4234_v39 }
  0xaf   : > { %v1070_v47 = vadd.f32 0.00028619796, %v1069_v41  ;;  %v1081_v48 = vadd.f32 0.001143296, %v1080_v42  ;;  %v1110_v49 = vadd.f32 0.00028619796, %v1109_v43 }
  0xb0   : > { %v1121_v50 = vadd.f32 0.001143296, %v1120_v44  ;;  %v1150_v51 = vadd.f32 0.00028619796, %v1149_v45  ;;  %v1161_v52 = vadd.f32 0.001143296, %v1160_v46 }
  0xb1   : > { %v1071_v53 = vmul.f32 %v1070_v47, %v4227_v36  ;;  %v1082_v54 = vmul.f32 %v1081_v48, %v4227_v36  ;;  %v1111_v55 = vmul.f32 %v1110_v49, %v4229_v37  ;;  %v1189_v56 = vmul.f32 2.1237322e-06, %v4236_v40 }
  0xb2   : > { %v1122_v57 = vmul.f32 %v1121_v50, %v4229_v37  ;;  %v1151_v58 = vmul.f32 %v1150_v51, %v4234_v39  ;;  %v1162_v59 = vmul.f32 %v1161_v52, %v4234_v39  ;;  %v1200_v60 = vmul.f32 3.8918573e-05, %v4236_v40 }
  0xb3   : > { %v1072_v61 = vadd.f32 0.0036580483, %v1071_v53  ;;  %v1083_v62 = vadd.f32 0.014752088, %v1082_v54  ;;  %v1112_v63 = vadd.f32 0.0036580483, %v1111_v55  ;;  %v356_v54 = vpop.permute.xlu0 %355 }
  0xb4   : > { %v1123_v0 = vadd.f32 0.014752088, %v1122_v57  ;;  %v1152_v1 = vadd.f32 0.0036580483, %v1151_v58  ;;  %v1163_v2 = vadd.f32 0.014752088, %v1162_v59  ;;  %v1227_v58 = vmul.f32 %v4232_v38, %v4232_v38 }
  0xb5   : > { %v1073_v3 = vmul.f32 %v1072_v61, %v4227_v36  ;;  %v1084_v4 = vmul.f32 %v1083_v62, %v4227_v36  ;;  %v1113_v5 = vmul.f32 %v1112_v63, %v4229_v37  ;;  %v1190_v6 = vadd.f32 0.00028619796, %v1189_v56  ;;  %v329_v55 = vld [vmem:[%s4190_s13 + $0x90] sm:$0xff]  ;;  %v330_v62 = vld [vmem:[%s4190_s13 + $0x98] sm:$0xff]  ;;  %v331_v63 = vld [vmem:[%s4190_s13 + $0xa0] sm:$0xff] }
  0xb6   : > { %v1124_v7 = vmul.f32 %v1123_v0, %v4229_v37  ;;  %v1153_v8 = vmul.f32 %v1152_v1, %v4234_v39  ;;  %v1164_v9 = vmul.f32 %v1163_v2, %v4234_v39  ;;  %v1201_v10 = vadd.f32 0.001143296, %v1200_v60  ;;  %v332_v1 = vld [vmem:[%s4190_s13 + $0xa8] sm:$0xff] }
  0xb7   : > { %v1074_v11 = vadd.f32 0.05243302, %v1073_v3  ;;  %v1085_v12 = vadd.f32 0.112945676, %v1084_v4  ;;  %v1114_v13 = vadd.f32 0.05243302, %v1113_v5  ;;  %v1191_v14 = vmul.f32 %v1190_v6, %v4236_v40 }
  0xb8   : > { %v1125_v15 = vadd.f32 0.112945676, %v1124_v7  ;;  %v1154_v16 = vadd.f32 0.05243302, %v1153_v8  ;;  %v1165_v17 = vadd.f32 0.112945676, %v1164_v9  ;;  %v1202_v18 = vmul.f32 %v1201_v10, %v4236_v40  ;;  %v4303_v8 = vpop.permute.xlu2 %399 }
  0xb9   : > { %v1075_v19 = vmul.f32 %v1074_v11, %v4227_v36  ;;  %v1086_v20 = vmul.f32 %v1085_v12, %v4227_v36  ;;  %v1115_v21 = vmul.f32 %v1114_v13, %v4229_v37  ;;  %v1192_v22 = vadd.f32 0.0036580483, %v1191_v14  ;;  %v333_v4 = vld [vmem:[%s4190_s13 + $0xb0] sm:$0xff] }
  0xba   : > { %v1126_v32 = vmul.f32 %v1125_v15, %v4229_v37  ;;  %v1155_v33 = vmul.f32 %v1154_v16, %v4234_v39  ;;  %v1166_v34 = vmul.f32 %v1165_v17, %v4234_v39  ;;  %v1203_v35 = vadd.f32 0.014752088, %v1202_v18 }
  0xbb   : > { %v1076_v41 = vadd.f32 0.18741608, %v1075_v19  ;;  %v1087_v42 = vadd.f32 0.4994258, %v1086_v20  ;;  %v1116_v43 = vadd.f32 0.18741608, %v1115_v21  ;;  %v1193_v49 = vmul.f32 %v1192_v22, %v4236_v40 }
  0xbc   : > { %v1127_v44 = vadd.f32 0.4994258, %v1126_v32  ;;  %v1156_v45 = vadd.f32 0.18741608, %v1155_v33  ;;  %v1167_v46 = vadd.f32 0.4994258, %v1166_v34  ;;  %v1204_v47 = vmul.f32 %v1203_v35, %v4236_v40 }
  0xbd   : > { %v1088_v48 = vmul.f32 %v1087_v42, %v4227_v36  ;;  %v1077_v50 = vmul.f32 %v1076_v41, %v4227_v36  ;;  %v1117_v57 = vmul.f32 %v1116_v43, %v4229_v37  ;;  %v4279_v59 = vmul.f32 0.5, %v4197_v23 }
  0xbe   : > { %v1128_v51 = vmul.f32 %v1127_v44, %v4229_v37  ;;  %v1168_v52 = vmul.f32 %v1167_v46, %v4234_v39  ;;  %v1205_v53 = vadd.f32 0.112945676, %v1204_v47  ;;  %v1157_v60 = vmul.f32 %v1156_v45, %v4234_v39 }
  0xbf   : > { %v4273_v56 = vadd.f32 1.0, %v1088_v48  ;;  %v4289_v0 = vmul.f32 0.5, %v4199_v24  ;;  %v1194_v37 = vadd.f32 0.05243302, %v1193_v49  ;;  %v373_v2 = vmul.f32 %v356_v54, %v329_v55 }
  0xc0   : > { %v4281_v36 = vadd.f32 1.0, %v1128_v51  ;;  %v4284_v61 = vadd.f32 1.0, %v1168_v52  ;;  %v4294_v3 = vmul.f32 0.5, %v4201_v25  ;;  %v1078_v23 = vadd.f32 1.1283791, %v1077_v50 }
  0xc1   : > { %3777 = vrcp.f32 %v4273_v56  ;;  %v1206_v39 = vmul.f32 %v1205_v53, %v4236_v40  ;;  %v1118_v5 = vadd.f32 1.1283791, %v1117_v57  ;;  %v4299_v6 = vmin.f32 %v1227_v58, 16.0 }
  0xc2   : > { %3779 = vrcp.f32 %v4281_v36  ;;  %v374_v7 = vmul.f32 %v356_v54, %v330_v62  ;;  %v4301_v24 = vmul.f32 %v356_v54, %v331_v63  ;;  %v1099_v9 = vand.u32 2147483647, %v4273_v56 }
  0xc3   : > { %v1158_v10 = vadd.f32 1.1283791, %v1157_v60  ;;  %3781 = vrcp.f32 %v4284_v61  ;;  %v4307_v25 = vmul.f32 %v356_v54, %v332_v1  ;;  %v1101_v11 = vand.u32 2147483648, %v4273_v56 }
  0xc4   : > { %v1195_v12 = vmul.f32 %v1194_v37, %v4236_v40  ;;  %v377_v13 = vmul.f32 %v356_v54, %v333_v4  ;;  %v4312_v14 = vadd.f32 %v4303_v8, %v373_v2  ;;  %v1079_v15 = vmul.f32 %v1078_v23, %v4208_v28 }
  0xc5   : > { %vm1095_vm0 = vweird.f32 %v4273_v56  ;;  %v1139_v16 = vand.u32 2147483647, %v4281_v36  ;;  %v1207_v17 = vadd.f32 0.4994258, %v1206_v39  ;;  %v1119_v19 = vmul.f32 %v1118_v5, %v4211_v29 }
  0xc6   : > { %vm1135_vm1 = vweird.f32 %v4281_v36  ;;  %v1141_v20 = vand.u32 2147483648, %v4281_v36  ;;  %v1240_v21 = vmul.f32 3.8918573e-05, %v4299_v6  ;;  %vm4322_vm2 = vcmp.eq.f32.partialorder %v1099_v9, 8.507059e+37 }
  0xc7   : > { %v3778_v18 = vpop.eup %3777  ;;  %v1159_v28 = vmul.f32 %v1158_v10, %v4214_v30  ;;  %v1208_v34 = vmul.f32 %v1207_v17, %v4236_v40  ;;  %v1102_v35 = vor.u32 1.1754944e-38, %v1101_v11  ;;  %vm1175_vm3 = vweird.f32 %v4284_v61 }
  0xc8   : > { %v3780_v22 = vpop.eup %3779  ;;  %v1091_v32 = vmul.f32 %v3778_v18, %v4273_v56  ;;  %v1179_v41 = vand.u32 2147483647, %v4284_v61  ;;  %vm4331_vm4 = vcmp.eq.f32.partialorder %v1139_v16, 8.507059e+37  ;;  %v1241_v46 = vadd.f32 0.001143296, %v1240_v21 }
  0xc9   : > { %v1131_v29 = vmul.f32 %v3780_v22, %v4281_v36  ;;  %v3782_v42 = vpop.eup %3781  ;;  %v4335_v45 = vadd.f32 1.0, %v1208_v34  ;;  %v1142_v30 = vor.u32 1.1754944e-38, %v1141_v20  ;;  %v1196_v49 = vadd.f32 0.18741608, %v1195_v12 }
  0xca   : > { %v1092_v43 = vsub.f32 1.0, %v1091_v32  ;;  %v1171_v48 = vmul.f32 %v3782_v42, %v4284_v61  ;;  %vm1096_vm5 = vweird.f32 %v3778_v18  ;;  %v1229_v51 = vmul.f32 2.1237322e-06, %v4299_v6 }
  0xcb   : > { %v1132_v47 = vsub.f32 1.0, %v1131_v29  ;;  %3783 = vrcp.f32 %v4335_v45  ;;  %vm1136_vm6 = vweird.f32 %v3780_v22  ;;  %v1181_v54 = vand.u32 2147483648, %v4284_v61  ;;  %vm1097_vm8 = vmor %vm1095_vm0, %vm1096_vm5 }
  0xcc   : > { %v1093_v50 = vmul.f32 %v3778_v18, %v1092_v43  ;;  %v1172_v53 = vsub.f32 1.0, %v1171_v48  ;;  %vm4341_vm7 = vcmp.eq.f32.partialorder %v1179_v41, 8.507059e+37  ;;  %v1242_v58 = vmul.f32 %v1241_v46, %v4299_v6  ;;  %vm1137_vm10 = vmor %vm1135_vm1, %vm1136_vm6 }
  0xcd   : > { %v1133_v52 = vmul.f32 %v3780_v22, %v1132_v47  ;;  %v4347_v60 = vadd.f32 %v4303_v8, %v377_v13  ;;  %vm1176_vm9 = vweird.f32 %v3782_v42  ;;  %v1197_v37 = vmul.f32 %v1196_v49, %v4236_v40 }
  0xce   : > { %v1094_v55 = vadd.f32 %v3778_v18, %v1093_v50  ;;  %v1173_v63 = vmul.f32 %v3782_v42, %v1172_v53  ;;  %v1230_v2 = vadd.f32 0.00028619796, %v1229_v51  ;;  %v1243_v23 = vadd.f32 0.014752088, %v1242_v58  ;;  %vm1177_vm11 = vmor %vm1175_vm3, %vm1176_vm9 }
  0xcf   : > { %v1134_v62 = vadd.f32 %v3780_v22, %v1133_v52  ;;  %v4355_v39 = vadd.f32 %v4303_v8, %v374_v7  ;;  %v1182_v9 = vor.u32 1.1754944e-38, %v1181_v54  ;;  %v4366_v7 = vadd.f32 %v4303_v8, %v4301_v24 }
  0xd0   : > { %v1098_v1 = vsel %vm1097_vm8, %v3778_v18, %v1094_v55  ;;  %v1174_v56 = vadd.f32 %v3782_v42, %v1173_v63  ;;  %v1244_v36 = vmul.f32 %v1243_v23, %v4299_v6  ;;  %v1198_v16 = vadd.f32 1.1283791, %v1197_v37 }
  0xd1   : > { %v1103_v4 = vsel %vm4322_vm2, %v1102_v35, %v1098_v1  ;;  %v1138_v5 = vsel %vm1137_vm10, %v3780_v22, %v1134_v62  ;;  %v3784_v10 = vpop.eup %3783  ;;  %v1231_v20 = vmul.f32 %v1230_v2, %v4299_v6  ;;  %v4374_v33 = vadd.f32 %v4303_v8, %v4307_v25 }
  0xd2   : > { %v1104_v11 = vmul.f32 %v1103_v4, %v1079_v15  ;;  %v1143_v40 = vsel %vm4331_vm4, %v1142_v30, %v1138_v5  ;;  %v1178_v13 = vsel %vm1177_vm11, %v3782_v42, %v1174_v56  ;;  %v1211_v17 = vmul.f32 %v3784_v10, %v4335_v45 }
  0xd3   : > { %v1144_v12 = vmul.f32 %v1143_v40, %v1119_v19  ;;  %v1183_v15 = vsel %vm4341_vm7, %v1182_v9, %v1178_v13  ;;  %v1245_v21 = vadd.f32 0.112945676, %v1244_v36  ;;  %vm1216_vm12 = vweird.f32 %v3784_v10 }
  0xd4   : > { %v3516_v18 = vclamps-f32 %v1104_v11, 1.0  ;;  %v1184_v22 = vmul.f32 %v1183_v15, %v1159_v28  ;;  %v1212_v32 = vsub.f32 1.0, %v1211_v17  ;;  %v1219_v24 = vand.u32 2147483647, %v4335_v45 }
  0xd5   : > { %v3517_v61 = vclamps-f32 %v1144_v12, 1.0  ;;  %v1221_v19 = vand.u32 2147483648, %v4335_v45  ;;  %v4379_v42 = vmul.f32 0.70710677, %v4312_v14  ;;  %vm1215_vm13 = vweird.f32 %v4335_v45 }
  0xd6   : > { %v1282_v34 = vadd.f32 1.0, %v3516_v18  ;;  %v3518_v35 = vclamps-f32 %v1184_v22, 1.0  ;;  %v1213_v29 = vmul.f32 %v3784_v10, %v1212_v32  ;;  %v1246_v28 = vmul.f32 %v1245_v21, %v4299_v6  ;;  %vm1217_vm14 = vmor %vm1215_vm13, %vm1216_vm12 }
  0xd7   : > { %v1283_v41 = vadd.f32 1.0, %v3517_v61  ;;  %v4387_v8 = vmul.f32 0.70710677, %v4355_v39  ;;  %v4393_v47 = vmul.f32 0.70710677, %v4366_v7  ;;  %v1199_v30 = vmul.f32 %v1198_v16, %v4217_v31 }
  0xd8   : > { %v4384_v43 = vmul.f32 %v1282_v34, %v4279_v59  ;;  %v1214_v25 = vadd.f32 %v3784_v10, %v1213_v29  ;;  %v1284_v44 = vadd.f32 1.0, %v3518_v35  ;;  %vm1220_vm15 = vcmp.eq.f32.partialorder %v1219_v24, 8.507059e+37 }
  0xd9   : > { %v4390_v46 = vmul.f32 %v1283_v41, %v4289_v0  ;;  %v1222_v45 = vor.u32 1.1754944e-38, %v1221_v19  ;;  %v4398_v59 = vmul.f32 0.70710677, %v4374_v33  ;;  %v867_v0 = vmul.f32 %v4379_v42, %v4379_v42 }
  0xda   : > { %1328 = vmatpush.msra.mxu0 %v4384_v43  ;;  %v1218_v48 = vsel %vm1217_vm14, %v3784_v10, %v1214_v25  ;;  %v4402_v49 = vmul.f32 %v1284_v44, %v4294_v3  ;;  %v907_v50 = vmul.f32 %v4387_v8, %v4387_v8  ;;  %v1247_v51 = vadd.f32 0.4994258, %v1246_v28 }
  0xdb   : > { %1351 = vmatpush.msra.mxu1 %v4390_v46  ;;  %v1223_v31 = vsel %vm1220_vm15, %v1222_v45, %v1218_v48  ;;  %v947_v52 = vmul.f32 %v4393_v47, %v4393_v47  ;;  %v4411_v54 = vmin.f32 %v867_v0, 16.0  ;;  %v987_v3 = vmul.f32 %v4398_v59, %v4398_v59 }
  0xdc   : > { %v1224_v53 = vmul.f32 %v1223_v31, %v1199_v30  ;;  %v4413_v55 = vmin.f32 %v907_v50, 16.0  ;;  %1374 = vmatpush.msra.mxu2 %v4402_v49  ;;  %v1232_v57 = vadd.f32 0.0036580483, %v1231_v20  ;;  %v445_v1 = vmul.f32 0.5, %v4203_v26 }
  0xdd   : > { %v869_v62 = vmul.f32 2.1237322e-06, %v4411_v54  ;;  %v880_v63 = vmul.f32 3.8918573e-05, %v4411_v54  ;;  %v4420_v37 = vmin.f32 %v947_v52, 16.0  ;;  %v1248_v2 = vmul.f32 %v1247_v51, %v4299_v6 }
  0xde   : > { %v3519_v58 = vclamps-f32 %v1224_v53, 1.0  ;;  %v909_v23 = vmul.f32 2.1237322e-06, %v4413_v55  ;;  %v920_v4 = vmul.f32 3.8918573e-05, %v4413_v55  ;;  %v4426_v10 = vmin.f32 %v987_v3, 16.0 }
  0xdf   : > { %v870_v56 = vadd.f32 0.00028619796, %v869_v62  ;;  %v881_v9 = vadd.f32 0.001143296, %v880_v63  ;;  %v1233_v11 = vmul.f32 %v1232_v57, %v4299_v6  ;;  %v949_v12 = vmul.f32 2.1237322e-06, %v4420_v37 }
  0xe0   : > { %v1285_v5 = vadd.f32 1.0, %v3519_v58  ;;  %v910_v40 = vadd.f32 0.00028619796, %v909_v23  ;;  %v921_v36 = vadd.f32 0.001143296, %v920_v4  ;;  %v4438_v61 = vadd.f32 1.0, %v1248_v2 }
  0xe1   : > { %v871_v26 = vmul.f32 %v870_v56, %v4411_v54  ;;  %v882_v16 = vmul.f32 %v881_v9, %v4411_v54  ;;  %v960_v17 = vmul.f32 3.8918573e-05, %v4420_v37  ;;  %v950_v20 = vadd.f32 0.00028619796, %v949_v12 }
  0xe2   : > { %v4430_v13 = vmul.f32 %v1285_v5, %v445_v1  ;;  %v911_v18 = vmul.f32 %v910_v40, %v4413_v55  ;;  %v922_v15 = vmul.f32 %v921_v36, %v4413_v55  ;;  %v989_v21 = vmul.f32 2.1237322e-06, %v4426_v10 }
  0xe3   : > { %v872_v22 = vadd.f32 0.0036580483, %v871_v26  ;;  %v883_v32 = vadd.f32 0.014752088, %v882_v16  ;;  %v951_v34 = vmul.f32 %v950_v20, %v4420_v37  ;;  %v961_v35 = vadd.f32 0.001143296, %v960_v17 }
  0xe4   : > { %1397 = vmatpush.msra.mxu3 %v4430_v13  ;;  %v912_v24 = vadd.f32 0.0036580483, %v911_v18  ;;  %v923_v19 = vadd.f32 0.014752088, %v922_v15  ;;  %v1234_v29 = vadd.f32 0.05243302, %v1233_v11  ;;  %3785 = vrcp.f32 %v4438_v61 }
  0xe5   : > { %v873_v41 = vmul.f32 %v872_v22, %v4411_v54  ;;  %v884_v28 = vmul.f32 %v883_v32, %v4411_v54  ;;  %v990_v25 = vadd.f32 0.00028619796, %v989_v21  ;;  %v952_v45 = vadd.f32 0.0036580483, %v951_v34  ;;  %v319_v21 = vld [vmem:[%s4190_s13] sm:$0xff]  ;;  %v320_v22 = vld [vmem:[%s4190_s13 + $0x8] sm:$0xff] }
  0xe6   : > { %v913_v44 = vmul.f32 %v912_v24, %v4413_v55  ;;  %v924_v30 = vmul.f32 %v923_v19, %v4413_v55  ;;  %v962_v48 = vmul.f32 %v961_v35, %v4420_v37  ;;  %v1235_v57 = vmul.f32 %v1234_v29, %v4299_v6  ;;  %v321_v32 = vld [vmem:[%s4190_s13 + $0x10] sm:$0xff] }
  0xe7   : > { %v874_v0 = vadd.f32 0.05243302, %v873_v41  ;;  %v885_v50 = vadd.f32 0.112945676, %v884_v28  ;;  %v991_v31 = vmul.f32 %v990_v25, %v4426_v10  ;;  %v953_v53 = vmul.f32 %v952_v45, %v4420_v37  ;;  %v4481_v41 = vpop.permute.xlu2 %345 }
  0xe8   : > { %v914_v51 = vadd.f32 0.05243302, %v913_v44  ;;  %v925_v52 = vadd.f32 0.112945676, %v924_v30  ;;  %v963_v3 = vadd.f32 0.014752088, %v962_v48  ;;  %v4488_v30 = vmul.f32 %v4481_v41, %v320_v22  ;;  %v4530_v22 = vpop.permute.xlu1 %350 }
  0xe9   : > { %v875_v58 = vmul.f32 %v874_v0, %v4411_v54  ;;  %v886_v62 = vmul.f32 %v885_v50, %v4411_v54  ;;  %v992_v63 = vadd.f32 0.0036580483, %v991_v31  ;;  %v954_v23 = vadd.f32 0.05243302, %v953_v53 }
  0xea   : > { %v915_v1 = vmul.f32 %v914_v51, %v4413_v55  ;;  %v926_v2 = vmul.f32 %v925_v52, %v4413_v55  ;;  %v964_v4 = vmul.f32 %v963_v3, %v4420_v37  ;;  %v4456_v40 = vpop.eup %3785  ;;  %v1236_v36 = vadd.f32 0.18741608, %v1235_v57 }
  0xeb   : > { %v876_v5 = vadd.f32 0.18741608, %v875_v58  ;;  %v887_v56 = vadd.f32 0.4994258, %v886_v62  ;;  %v955_v18 = vmul.f32 %v954_v23, %v4420_v37  ;;  %v993_v15 = vmul.f32 %v992_v63, %v4426_v10 }
  0xec   : > { %v916_v9 = vadd.f32 0.18741608, %v915_v1  ;;  %v927_v11 = vadd.f32 0.4994258, %v926_v2  ;;  %v965_v26 = vadd.f32 0.112945676, %v964_v4  ;;  %v1237_v35 = vmul.f32 %v1236_v36, %v4299_v6 }
  0xed   : > { %v888_v12 = vmul.f32 %v887_v56, %v4411_v54  ;;  %v877_v16 = vmul.f32 %v876_v5, %v4411_v54  ;;  %v4469_v24 = vmul.f32 0.70710677, %v4347_v60  ;;  %v4478_v29 = vmul.f32 %v4456_v40, %v4438_v61 }
  0xee   : > { %v928_v17 = vmul.f32 %v927_v11, %v4413_v55  ;;  %v917_v19 = vmul.f32 %v916_v9, %v4413_v55  ;;  %v966_v54 = vmul.f32 %v965_v26, %v4420_v37  ;;  %v956_v25 = vadd.f32 0.18741608, %v955_v18 }
  0xef   : > { %v4463_v20 = vadd.f32 1.0, %v888_v12  ;;  %v878_v28 = vadd.f32 1.1283791, %v877_v16  ;;  %v994_v44 = vadd.f32 0.05243302, %v993_v15  ;;  %v4485_v55 = vmul.f32 %v4481_v41, %v319_v21 }
  0xf0   : > { %v4472_v34 = vadd.f32 1.0, %v928_v17  ;;  %v4491_v6 = vmul.f32 %v4481_v41, %v321_v32  ;;  %v4494_v45 = vmul.f32 0.5, %v4312_v14  ;;  %v918_v48 = vadd.f32 1.1283791, %v917_v19  ;;  %v324_v32 = vld [vmem:[%s4190_s13 + $0x48] sm:$0xff] }
  0xf1   : > { %3787 = vrcp.f32 %v4463_v20  ;;  %v967_v0 = vadd.f32 0.4994258, %v966_v54  ;;  %v1027_v50 = vmul.f32 %v4469_v24, %v4469_v24  ;;  %v4498_v31 = vadd.f32 1.1283791, %v1237_v35 }
  0xf2   : > { %3789 = vrcp.f32 %v4472_v34  ;;  %v1252_v51 = vsub.f32 1.0, %v4478_v29  ;;  %v4502_v52 = vmul.f32 0.5, %v4355_v39  ;;  %v1000_v53 = vmul.f32 3.8918573e-05, %v4426_v10 }
  0xf3   : > { %v879_v3 = vmul.f32 %v878_v28, %v4379_v42  ;;  %v957_v57 = vmul.f32 %v956_v25, %v4420_v37  ;;  %v968_v14 = vmul.f32 %v967_v0, %v4420_v37  ;;  %v995_v58 = vmul.f32 %v994_v44, %v4426_v10  ;;  %v325_v0 = vld [vmem:[%s4190_s13 + $0x50] sm:$0xff] }
  0xf4   : > { %vm895_vm0 = vweird.f32 %v4463_v20  ;;  %v899_v63 = vand.u32 2147483647, %v4463_v20  ;;  %v901_v1 = vand.u32 2147483648, %v4463_v20  ;;  %v1001_v2 = vadd.f32 0.001143296, %v1000_v53 }
  0xf5   : > { %v919_v4 = vmul.f32 %v918_v48, %v4387_v8  ;;  %v4514_v42 = vadd.f32 1.0, %v968_v14  ;;  %v4516_v5 = vmin.f32 %v1027_v50, 16.0  ;;  %vm935_vm1 = vweird.f32 %v4472_v34 }
  0xf6   : > { %v939_v56 = vand.u32 2147483647, %v4472_v34  ;;  %v1002_v9 = vmul.f32 %v1001_v2, %v4426_v10  ;;  %v941_v36 = vand.u32 2147483648, %v4472_v34  ;;  %v958_v12 = vadd.f32 1.1283791, %v957_v57 }
  0xf7   : > { %v3788_v62 = vpop.eup %3787  ;;  %3791 = vrcp.f32 %v4514_v42  ;;  %vm4524_vm2 = vcmp.eq.f32.partialorder %v899_v63, 8.507059e+37  ;;  %v996_v16 = vadd.f32 0.18741608, %v995_v58  ;;  %v1029_v15 = vmul.f32 2.1237322e-06, %v4516_v5 }
  0xf8   : > { %v3790_v39 = vpop.eup %3789  ;;  %v891_v23 = vmul.f32 %v3788_v62, %v4463_v20  ;;  %v1003_v17 = vadd.f32 0.014752088, %v1002_v9  ;;  %vm896_vm3 = vweird.f32 %v3788_v62  ;;  %v1040_v21 = vmul.f32 3.8918573e-05, %v4516_v5 }
  0xf9   : > { %v931_v37 = vmul.f32 %v3790_v39, %v4472_v34  ;;  %v902_v19 = vor.u32 1.1754944e-38, %v901_v1  ;;  %vm936_vm4 = vweird.f32 %v3790_v39  ;;  %vm4534_vm5 = vcmp.eq.f32.partialorder %v939_v56, 8.507059e+37  ;;  %vm897_vm6 = vmor %vm895_vm0, %vm896_vm3 }
  0xfa   : > { %v892_v11 = vsub.f32 1.0, %v891_v23  ;;  %v1004_v35 = vmul.f32 %v1003_v17, %v4426_v10  ;;  %v942_v44 = vor.u32 1.1754944e-38, %v941_v36  ;;  %v1041_v48 = vadd.f32 0.001143296, %v1040_v21  ;;  %vm937_vm7 = vmor %vm935_vm1, %vm936_vm4 }
  0xfb   : > { %v932_v26 = vsub.f32 1.0, %v931_v37  ;;  %v959_v53 = vmul.f32 %v958_v12, %v4393_v47  ;;  %v368_v14 = vmul.f32 %v4530_v22, %v324_v32  ;;  %v997_v1 = vmul.f32 %v996_v16, %v4426_v10  ;;  %v326_v47 = vld [vmem:[%s4190_s13 + $0x58] sm:$0xff] }
  0xfc   : > { %v893_v18 = vmul.f32 %v3788_v62, %v892_v11  ;;  %v1005_v57 = vadd.f32 0.112945676, %v1004_v35  ;;  %v1030_v2 = vadd.f32 0.00028619796, %v1029_v15  ;;  %v1042_v23 = vmul.f32 %v1041_v48, %v4516_v5 }
  0xfd   : > { %v933_v54 = vmul.f32 %v3790_v39, %v932_v26  ;;  %v3792_v58 = vpop.eup %3791  ;;  %v369_v9 = vmul.f32 %v4530_v22, %v325_v0  ;;  %v979_v34 = vand.u32 2147483647, %v4514_v42  ;;  %v981_v16 = vand.u32 2147483648, %v4514_v42 }
  0xfe   : > { %v894_v28 = vadd.f32 %v3788_v62, %v893_v18  ;;  %v971_v56 = vmul.f32 %v3792_v58, %v4514_v42  ;;  %v1006_v36 = vmul.f32 %v1005_v57, %v4426_v10  ;;  %v1043_v8 = vadd.f32 0.014752088, %v1042_v23 }
  0xff   : > { %v934_v50 = vadd.f32 %v3790_v39, %v933_v54  ;;  %v1031_v18 = vmul.f32 %v1030_v2, %v4516_v5  ;;  %v370_v15 = vmul.f32 %v4530_v22, %v326_v47  ;;  %vm976_vm8 = vweird.f32 %v3792_v58 }
 0x100   : > { %v898_v63 = vsel %vm897_vm6, %v3788_v62, %v894_v28  ;;  %v972_v26 = vsub.f32 1.0, %v971_v56  ;;  %v1044_v32 = vmul.f32 %v1043_v8, %v4516_v5  ;;  %vm975_vm9 = vweird.f32 %v4514_v42 }
 0x101   : > { %v903_v20 = vsel %vm4524_vm2, %v902_v19, %v898_v63  ;;  %v938_v37 = vsel %vm937_vm7, %v3790_v39, %v934_v50  ;;  %v1007_v39 = vadd.f32 0.4994258, %v1006_v36  ;;  %v4560_v19 = vpop.permute.xlu0 %394  ;;  %vm4563_vm10 = vcmp.eq.f32.partialorder %v979_v34, 8.507059e+37  ;;  %vm977_vm11 = vmor %vm975_vm9, %vm976_vm8  ;;  %v328_v34 = vld [vmem:[%s4190_s13 + $0x68] sm:$0xff] }
 0x102   : > { %v904_v11 = vmul.f32 %v903_v20, %v879_v3  ;;  %v943_v62 = vsel %vm4534_vm5, %v942_v44, %v938_v37  ;;  %v973_v3 = vmul.f32 %v3792_v58, %v972_v26  ;;  %v982_v25 = vor.u32 1.1754944e-38, %v981_v16  ;;  %v327_v20 = vld [vmem:[%s4190_s13 + $0x60] sm:$0xff] }
 0x103   : > { %v944_v12 = vmul.f32 %v943_v62, %v919_v4  ;;  %v1008_v54 = vmul.f32 %v1007_v39, %v4426_v10  ;;  %v1045_v44 = vadd.f32 0.112945676, %v1044_v32  ;;  %v4574_v42 = vadd.f32 %v4560_v19, %v368_v14 }
 0x104   : > { %v3511_v17 = vclamps-f32 %v904_v11, 1.0  ;;  %v974_v28 = vadd.f32 %v3792_v58, %v973_v3  ;;  %v4577_v57 = vadd.f32 %v4560_v19, %v369_v9  ;;  %v1032_v2 = vadd.f32 0.0036580483, %v1031_v18 }
 0x105   : > { %v3512_v21 = vclamps-f32 %v944_v12, 1.0  ;;  %v4568_v0 = vadd.f32 1.0, %v1008_v54  ;;  %v1046_v10 = vmul.f32 %v1045_v44, %v4516_v5  ;;  %v439_v37 = vmul.f32 0.5, %v4366_v7 }
 0x106   : > { %v1277_v35 = vadd.f32 1.0, %v3511_v17  ;;  %v978_v63 = vsel %vm977_vm11, %v3792_v58, %v974_v28  ;;  %v4589_v14 = vadd.f32 %v4560_v19, %v370_v15  ;;  %v1253_v58 = vmul.f32 %v4456_v40, %v1252_v51 }
 0x107   : > { %v1278_v48 = vadd.f32 1.0, %v3512_v21  ;;  %3793 = vrcp.f32 %v4568_v0  ;;  %v998_v7 = vadd.f32 1.1283791, %v997_v1  ;;  %v1047_v47 = vadd.f32 0.4994258, %v1046_v10 }
 0x108   : > { %v4571_v50 = vmul.f32 %v1277_v35, %v4494_v45  ;;  %v983_v45 = vsel %vm4563_vm10, %v982_v25, %v978_v63  ;;  %v371_v9 = vmul.f32 %v4530_v22, %v327_v20  ;;  %v4601_v11 = vmul.f32 0.70710677, %v4574_v42 }
 0x109   : > { %v4581_v23 = vmul.f32 %v1278_v48, %v4502_v52  ;;  %v4596_v52 = vmul.f32 0.5, %v4374_v33  ;;  %v984_v56 = vmul.f32 %v983_v45, %v959_v53  ;;  %v4604_v62 = vmul.f32 0.70710677, %v4577_v57 }
 0x10a   : > { %1329 = vmatpush.msra.mxu0 %v4571_v50  ;;  %v4608_v29 = vmul.f32 %v4498_v31, %v4232_v38  ;;  %v1259_v33 = vand.u32 2147483647, %v4438_v61  ;;  %v1033_v53 = vmul.f32 %v1032_v2, %v4516_v5  ;;  %v1261_v1 = vand.u32 2147483648, %v4438_v61 }
 0x10b   : > { %1352 = vmatpush.msra.mxu1 %v4581_v23  ;;  %v3513_v51 = vclamps-f32 %v984_v56, 1.0  ;;  %v4615_v36 = vadd.f32 %v4560_v19, %v371_v9  ;;  %v4618_v12 = vmul.f32 0.70710677, %v4589_v14  ;;  %v667_v26 = vmul.f32 %v4601_v11, %v4601_v11 }
 0x10c   : > { %v4623_v38 = vadd.f32 %v4456_v40, %v1253_v58  ;;  %v999_v31 = vmul.f32 %v998_v7, %v4398_v59  ;;  %v707_v8 = vmul.f32 %v4604_v62, %v4604_v62  ;;  %v1019_v39 = vand.u32 2147483647, %v4568_v0 }
 0x10d   : > { %v1279_v16 = vadd.f32 1.0, %v3513_v51  ;;  %v3794_v17 = vpop.eup %3793  ;;  %v1048_v18 = vmul.f32 %v1047_v47, %v4516_v5  ;;  %v4630_v15 = vmin.f32 %v667_v26, 16.0  ;;  %v747_v21 = vmul.f32 %v4618_v12, %v4618_v12 }
 0x10e   : > { %v1011_v3 = vmul.f32 %v3794_v17, %v4568_v0  ;;  %vm1015_vm12 = vweird.f32 %v4568_v0  ;;  %v1034_v32 = vadd.f32 0.05243302, %v1033_v53  ;;  %v4637_v59 = vmul.f32 %v4530_v22, %v328_v34 }
 0x10f   : > { %v1021_v4 = vand.u32 2147483648, %v4568_v0  ;;  %v4640_v54 = vmul.f32 %v1279_v16, %v439_v37  ;;  %v4643_v35 = vmul.f32 0.70710677, %v4615_v36  ;;  %v669_v28 = vmul.f32 2.1237322e-06, %v4630_v15 }
 0x110   : > { %v1012_v25 = vsub.f32 1.0, %v1011_v3  ;;  %v680_v44 = vmul.f32 3.8918573e-05, %v4630_v15  ;;  %v4647_v48 = vmin.f32 %v707_v8, 16.0  ;;  %v4649_v63 = vmin.f32 %v747_v21, 16.0 }
 0x111   : > { %vm1256_vm13 = vweird.f32 %v4456_v40  ;;  %vm1016_vm14 = vweird.f32 %v3794_v17  ;;  %vm4652_vm15 = vcmp.eq.f32.partialorder %v1019_v39, 8.507059e+37  ;;  %v4656_v2 = vadd.f32 1.0, %v1048_v18  ;;  %1375 = vmatpush.msra.mxu2 %v4640_v54 }
 0x112   : > { %v670_v10 = vadd.f32 0.00028619796, %v669_v28  ;;  %v1013_v20 = vmul.f32 %v3794_v17, %v1012_v25  ;;  %v681_v37 = vadd.f32 0.001143296, %v680_v44  ;;  %v709_v45 = vmul.f32 2.1237322e-06, %v4647_v48  ;;  %vm1017_vm1 = vmor %vm1015_vm12, %vm1016_vm14 }
 0x113   : > { %v720_v58 = vmul.f32 3.8918573e-05, %v4647_v48  ;;  %vm1255_vm0 = vweird.f32 %v4438_v61  ;;  %v1022_v56 = vor.u32 1.1754944e-38, %v1021_v4  ;;  %v749_v47 = vmul.f32 2.1237322e-06, %v4649_v63 }
 0x114   : > { %v671_v7 = vmul.f32 %v670_v10, %v4630_v15  ;;  %v787_v9 = vmul.f32 %v4643_v35, %v4643_v35  ;;  %v1014_v51 = vadd.f32 %v3794_v17, %v1013_v20  ;;  %v682_v53 = vmul.f32 %v681_v37, %v4630_v15  ;;  %vm4694_vm2 = vmor %vm1255_vm0, %vm1256_vm13 }
 0x115   : > { %v710_v34 = vadd.f32 0.00028619796, %v709_v45  ;;  %v721_v26 = vadd.f32 0.001143296, %v720_v58  ;;  %3795 = vrcp.f32 %v4656_v2  ;;  %v750_v8 = vadd.f32 0.00028619796, %v749_v47 }
 0x116   : > { %v672_v16 = vadd.f32 0.0036580483, %v671_v7  ;;  %v760_v39 = vmul.f32 3.8918573e-05, %v4649_v63  ;;  %v1018_v18 = vsel %vm1017_vm1, %v3794_v17, %v1014_v51  ;;  %v683_v21 = vadd.f32 0.014752088, %v682_v53 }
 0x117   : > { %v711_v3 = vmul.f32 %v710_v34, %v4647_v48  ;;  %v722_v4 = vmul.f32 %v721_v26, %v4647_v48  ;;  %v1023_v28 = vsel %vm4652_vm15, %v1022_v56, %v1018_v18  ;;  %v751_v0 = vmul.f32 %v750_v8, %v4649_v63 }
 0x118   : > { %v673_v25 = vmul.f32 %v672_v16, %v4630_v15  ;;  %v4678_v44 = vmin.f32 %v787_v9, 16.0  ;;  %v1024_v10 = vmul.f32 %v1023_v28, %v999_v31  ;;  %v684_v20 = vmul.f32 %v683_v21, %v4630_v15 }
 0x119   : > { %v712_v37 = vadd.f32 0.0036580483, %v711_v3  ;;  %v723_v45 = vadd.f32 0.014752088, %v722_v4  ;;  %v1035_v17 = vmul.f32 %v1034_v32, %v4516_v5  ;;  %v752_v7 = vadd.f32 0.0036580483, %v751_v0 }
 0x11a   : > { %v674_v58 = vadd.f32 0.05243302, %v673_v25  ;;  %v761_v47 = vadd.f32 0.001143296, %v760_v39  ;;  %v3514_v51 = vclamps-f32 %v1024_v10, 1.0  ;;  %v1258_v3 = vsel %vm4694_vm2, %v4456_v40, %v4623_v38 }
 0x11b   : > { %v685_v53 = vadd.f32 0.112945676, %v684_v20  ;;  %v713_v22 = vmul.f32 %v712_v37, %v4647_v48  ;;  %v724_v56 = vmul.f32 %v723_v45, %v4647_v48  ;;  %v4684_v34 = vpop.eup %3795  ;;  %v753_v31 = vmul.f32 %v752_v7, %v4649_v63 }
 0x11c   : > { %v675_v9 = vmul.f32 %v674_v58, %v4630_v15  ;;  %v762_v26 = vmul.f32 %v761_v47, %v4649_v63  ;;  %v789_v16 = vmul.f32 2.1237322e-06, %v4678_v44  ;;  %v1280_v8 = vadd.f32 1.0, %v3514_v51 }
 0x11d   : > { %v686_v39 = vmul.f32 %v685_v53, %v4630_v15  ;;  %v714_v18 = vadd.f32 0.05243302, %v713_v22  ;;  %v725_v21 = vadd.f32 0.112945676, %v724_v56  ;;  %v1036_v4 = vadd.f32 0.18741608, %v1035_v17 }
 0x11e   : > { %v4705_v28 = vadd.f32 %v4560_v19, %v4637_v59  ;;  %v763_v25 = vadd.f32 0.014752088, %v762_v26  ;;  %v1051_v0 = vmul.f32 %v4684_v34, %v4656_v2  ;;  %v4710_v10 = vmul.f32 %v1280_v8, %v4596_v52  ;;  %v322_v19 = vld [vmem:[%s4190_s13 + $0x18] sm:$0xff]  ;;  %v323_v59 = vld [vmem:[%s4190_s13 + $0x20] sm:$0xff] }
 0x11f   : > { %v676_v20 = vadd.f32 0.18741608, %v675_v9  ;;  %v687_v37 = vadd.f32 0.4994258, %v686_v39  ;;  %vm1260_vm3 = vcmp.eq.f32.partialorder %v1259_v33, 8.507059e+37  ;;  %v1262_v40 = vor.u32 1.1754944e-38, %v1261_v1 }
 0x120   : > { %v726_v38 = vmul.f32 %v725_v21, %v4647_v48  ;;  %v754_v45 = vadd.f32 0.05243302, %v753_v31  ;;  %v715_v58 = vmul.f32 %v714_v18, %v4647_v48  ;;  %v764_v52 = vmul.f32 %v763_v25, %v4649_v63  ;;  %1398 = vmatpush.msra.mxu3 %v4710_v10 }
 0x121   : > { %v688_v17 = vmul.f32 %v687_v37, %v4630_v15  ;;  %v790_v7 = vadd.f32 0.00028619796, %v789_v16  ;;  %v1263_v47 = vsel %vm1260_vm3, %v1262_v40, %v1258_v3  ;;  %v1037_v33 = vmul.f32 %v1036_v4, %v4516_v5 }
 0x122   : > { %v4725_v61 = vmul.f32 0.70710677, %v4705_v28  ;;  %v727_v1 = vadd.f32 0.4994258, %v726_v38  ;;  %v1052_v51 = vsub.f32 1.0, %v1051_v0  ;;  %v677_v53 = vmul.f32 %v676_v20, %v4630_v15 }
 0x123   : > { %v4728_v22 = vadd.f32 1.0, %v688_v17  ;;  %v765_v56 = vadd.f32 0.112945676, %v764_v52  ;;  %v4731_v9 = vmul.f32 %v4481_v41, %v322_v19  ;;  %v4734_v31 = vmul.f32 %v4481_v41, %v323_v59 }
 0x124   : > { %v728_v26 = vmul.f32 %v727_v1, %v4647_v48  ;;  %v791_v5 = vmul.f32 %v790_v7, %v4678_v44  ;;  %v4739_v16 = vmul.f32 %v1263_v47, %v4608_v29  ;;  %v716_v32 = vadd.f32 0.18741608, %v715_v58 }
 0x125   : > { %3797 = vrcp.f32 %v4728_v22  ;;  %v755_v15 = vmul.f32 %v754_v45, %v4649_v63  ;;  %v1038_v8 = vadd.f32 1.1283791, %v1037_v33  ;;  %v4744_v39 = vmul.f32 0.5, %v4574_v42 }
 0x126   : > { %v4746_v18 = vadd.f32 1.0, %v728_v26  ;;  %v827_v41 = vmul.f32 %v4725_v61, %v4725_v61  ;;  %v1053_v21 = vmul.f32 %v4684_v34, %v1052_v51  ;;  %v4752_v3 = vmul.f32 0.5, %v4577_v57 }
 0x127   : > { %v678_v29 = vadd.f32 1.1283791, %v677_v53  ;;  %v766_v4 = vmul.f32 %v765_v56, %v4649_v63  ;;  %v4756_v25 = vmul.f32 0.5, %v4589_v14  ;;  %v4759_v0 = vmul.f32 0.5, %v4615_v36 }
 0x128   : > { %3799 = vrcp.f32 %v4746_v18  ;;  %v792_v42 = vadd.f32 0.0036580483, %v791_v5  ;;  %v699_v20 = vand.u32 2147483647, %v4728_v22  ;;  %v717_v37 = vmul.f32 %v716_v32, %v4647_v48 }
 0x129   : > { %v756_v40 = vadd.f32 0.18741608, %v755_v15  ;;  %v767_v38 = vadd.f32 0.4994258, %v766_v4  ;;  %v4765_v57 = vmul.f32 %v1038_v8, %v4469_v24  ;;  %v1061_v45 = vand.u32 2147483648, %v4656_v2 }
 0x12a   : > { %v800_v14 = vmul.f32 3.8918573e-05, %v4678_v44  ;;  %v4769_v19 = vmin.f32 %v827_v41, 16.0  ;;  %v4772_v59 = vadd.f32 %v4684_v34, %v1053_v21  ;;  %v679_v17 = vmul.f32 %v678_v29, %v4601_v11 }
 0x12b   : > { %v3798_v36 = vpop.eup %3797  ;;  %v701_v58 = vand.u32 2147483648, %v4728_v22  ;;  %v768_v48 = vmul.f32 %v767_v38, %v4649_v63  ;;  %vm695_vm4 = vweird.f32 %v4728_v22  ;;  %v793_v24 = vmul.f32 %v792_v42, %v4678_v44 }
 0x12c   : > { %v691_v52 = vmul.f32 %v3798_v36, %v4728_v22  ;;  %v801_v7 = vadd.f32 0.001143296, %v800_v14  ;;  %vm4780_vm5 = vcmp.eq.f32.partialorder %v699_v20, 8.507059e+37  ;;  %v718_v33 = vadd.f32 1.1283791, %v717_v37  ;;  %v4795_v37 = vpop.permute.xlu1 %389 }
 0x12d   : > { %v757_v1 = vmul.f32 %v756_v40, %v4649_v63  ;;  %v4785_v51 = vadd.f32 1.0, %v768_v48  ;;  %v739_v56 = vand.u32 2147483647, %v4746_v18  ;;  %v829_v5 = vmul.f32 2.1237322e-06, %v4769_v19 }
 0x12e   : > { %v3800_v11 = vpop.eup %3799  ;;  %v692_v53 = vsub.f32 1.0, %v691_v52  ;;  %v802_v26 = vmul.f32 %v801_v7, %v4678_v44  ;;  %v702_v32 = vor.u32 1.1754944e-38, %v701_v58  ;;  %v840_v8 = vmul.f32 3.8918573e-05, %v4769_v19 }
 0x12f   : > { %v731_v15 = vmul.f32 %v3800_v11, %v4746_v18  ;;  %3801 = vrcp.f32 %v4785_v51  ;;  %vm696_vm6 = vweird.f32 %v3798_v36  ;;  %v741_v63 = vand.u32 2147483648, %v4746_v18 }
 0x130   : > { %v693_v41 = vmul.f32 %v3798_v36, %v692_v53  ;;  %v794_v21 = vadd.f32 0.05243302, %v793_v24  ;;  %v719_v29 = vmul.f32 %v718_v33, %v4604_v62  ;;  %v758_v42 = vadd.f32 1.1283791, %v757_v1  ;;  %vm697_vm9 = vmor %vm695_vm4, %vm696_vm6 }
 0x131   : > { %v732_v4 = vsub.f32 1.0, %v731_v15  ;;  %v803_v20 = vadd.f32 0.014752088, %v802_v26  ;;  %vm735_vm7 = vweird.f32 %v4746_v18  ;;  %vm4798_vm8 = vcmp.eq.f32.partialorder %v739_v56, 8.507059e+37 }
 0x132   : > { %v694_v40 = vadd.f32 %v3798_v36, %v693_v41  ;;  %v830_v14 = vadd.f32 0.00028619796, %v829_v5  ;;  %vm736_vm10 = vweird.f32 %v3800_v11  ;;  %v841_v48 = vadd.f32 0.001143296, %v840_v8 }
 0x133   : > { %v733_v58 = vmul.f32 %v3800_v11, %v732_v4  ;;  %v804_v62 = vmul.f32 %v803_v20, %v4678_v44  ;;  %v742_v24 = vor.u32 1.1754944e-38, %v741_v63  ;;  %v795_v7 = vmul.f32 %v794_v21, %v4678_v44  ;;  %vm737_vm12 = vmor %vm735_vm7, %vm736_vm10 }
 0x134   : > { %v698_v52 = vsel %vm697_vm9, %v3798_v36, %v694_v40  ;;  %v4808_v33 = vadd.f32 %v4795_v37, %v4485_v55  ;;  %v759_v22 = vmul.f32 %v758_v42, %v4618_v12  ;;  %vm1056_vm11 = vweird.f32 %v4684_v34 }
 0x135   : > { %v3802_v1 = vpop.eup %3801  ;;  %v703_v53 = vsel %vm4780_vm5, %v702_v32, %v698_v52  ;;  %v734_v56 = vadd.f32 %v3800_v11, %v733_v58  ;;  %v805_v26 = vadd.f32 0.112945676, %v804_v62  ;;  %v831_v15 = vmul.f32 %v830_v14, %v4769_v19 }
 0x136   : > { %v704_v5 = vmul.f32 %v703_v53, %v679_v17  ;;  %v771_v36 = vmul.f32 %v3802_v1, %v4785_v51  ;;  %v4820_v55 = vadd.f32 %v4795_v37, %v4488_v30  ;;  %v781_v32 = vand.u32 2147483648, %v4785_v51 }
 0x137   : > { %v738_v47 = vsel %vm737_vm12, %v3800_v11, %v734_v56  ;;  %v806_v12 = vmul.f32 %v805_v26, %v4678_v44  ;;  %v842_v8 = vmul.f32 %v841_v48, %v4769_v19  ;;  %v796_v63 = vadd.f32 0.18741608, %v795_v7 }
 0x138   : > { %v3506_v41 = vclamps-f32 %v704_v5, 1.0  ;;  %v743_v18 = vsel %vm4798_vm8, %v742_v24, %v738_v47  ;;  %v772_v17 = vsub.f32 1.0, %v771_v36  ;;  %v4829_v30 = vadd.f32 %v4795_v37, %v4491_v6 }
 0x139   : > { %v744_v21 = vmul.f32 %v743_v18, %v719_v29  ;;  %v807_v4 = vadd.f32 0.4994258, %v806_v12  ;;  %v843_v42 = vadd.f32 0.014752088, %v842_v8  ;;  %vm775_vm13 = vweird.f32 %v4785_v51 }
 0x13a   : > { %v773_v11 = vmul.f32 %v3802_v1, %v772_v17  ;;  %vm776_vm14 = vweird.f32 %v3802_v1  ;;  %v779_v20 = vand.u32 2147483647, %v4785_v51  ;;  %v832_v38 = vadd.f32 0.0036580483, %v831_v15 }
 0x13b   : > { %v3507_v40 = vclamps-f32 %v744_v21, 1.0  ;;  %v808_v14 = vmul.f32 %v807_v4, %v4678_v44  ;;  %v844_v58 = vmul.f32 %v843_v42, %v4769_v19  ;;  %v782_v29 = vor.u32 1.1754944e-38, %v781_v32  ;;  %vm777_vm15 = vmor %vm775_vm13, %vm776_vm14 }
 0x13c   : > { %v774_v62 = vadd.f32 %v3802_v1, %v773_v11  ;;  %v797_v48 = vmul.f32 %v796_v63, %v4678_v44  ;;  %v1272_v52 = vadd.f32 1.0, %v3506_v41  ;;  %v4839_v53 = vmul.f32 0.70710677, %v4808_v33 }
 0x13d   : > { %v4836_v6 = vadd.f32 1.0, %v808_v14  ;;  %v845_v24 = vadd.f32 0.112945676, %v844_v58  ;;  %v1273_v7 = vadd.f32 1.0, %v3507_v40  ;;  %vm780_vm0 = vcmp.eq.f32.partialorder %v779_v20, 8.507059e+37 }
 0x13e   : > { %v778_v51 = vsel %vm777_vm15, %v3802_v1, %v774_v62  ;;  %v4842_v56 = vmul.f32 %v1272_v52, %v4744_v39  ;;  %v4845_v26 = vmul.f32 0.70710677, %v4820_v55  ;;  %v833_v44 = vmul.f32 %v832_v38, %v4769_v19 }
 0x13f   : > { %v783_v5 = vsel %vm780_vm0, %v782_v29, %v778_v51  ;;  %3803 = vrcp.f32 %v4836_v6  ;;  %v4850_v36 = vmul.f32 0.70710677, %v4829_v30  ;;  %vm1055_vm1 = vweird.f32 %v4656_v2 }
 0x140   : > { %v1059_v15 = vand.u32 2147483647, %v4656_v2  ;;  %v784_v1 = vmul.f32 %v783_v5, %v759_v22  ;;  %v846_v47 = vmul.f32 %v845_v24, %v4769_v19  ;;  %1330 = vmatpush.msra.mxu0 %v4842_v56  ;;  %vm4858_vm2 = vmor %vm1055_vm1, %vm1056_vm11  ;;  %v4864_v32 = vor.u32 1.1754944e-38, %v1061_v45 }
 0x141   : > { %v798_v12 = vadd.f32 1.1283791, %v797_v48  ;;  %v4867_v8 = vmul.f32 %v1273_v7, %v4752_v3  ;;  %v467_v22 = vmul.f32 %v4839_v53, %v4839_v53  ;;  %v1058_v41 = vsel %vm4858_vm2, %v4684_v34, %v4772_v59 }
 0x142   : > { %v3508_v18 = vclamps-f32 %v784_v1, 1.0  ;;  %v847_v17 = vadd.f32 0.4994258, %v846_v47  ;;  %v507_v63 = vmul.f32 %v4845_v26, %v4845_v26  ;;  %v834_v2 = vadd.f32 0.05243302, %v833_v44 }
 0x143   : > { %v4879_v45 = vadd.f32 %v4795_v37, %v4731_v9  ;;  %v4881_v3 = vmin.f32 %v467_v22, 16.0  ;;  %v547_v21 = vmul.f32 %v4850_v36, %v4850_v36  ;;  %1353 = vmatpush.msra.mxu1 %v4867_v8  ;;  %v4889_v11 = vadd.f32 %v4795_v37, %v4734_v31 }
 0x144   : > { %v848_v4 = vmul.f32 %v847_v17, %v4769_v19  ;;  %v1274_v42 = vadd.f32 1.0, %v3508_v18  ;;  %v4891_v20 = vmin.f32 %v507_v63, 16.0  ;;  %v799_v9 = vmul.f32 %v798_v12, %v4643_v35 }
 0x145   : > { %v3804_v40 = vpop.eup %3803  ;;  %v819_v14 = vand.u32 2147483647, %v4836_v6  ;;  %v469_v38 = vmul.f32 2.1237322e-06, %v4881_v3  ;;  %v480_v58 = vmul.f32 3.8918573e-05, %v4881_v3  ;;  %v835_v37 = vmul.f32 %v834_v2, %v4769_v19 }
 0x146   : > { %v811_v62 = vmul.f32 %v3804_v40, %v4836_v6  ;;  %v4898_v29 = vadd.f32 1.0, %v848_v4  ;;  %v4901_v48 = vmul.f32 %v1274_v42, %v4756_v25  ;;  %v4903_v31 = vmin.f32 %v547_v21, 16.0 }
 0x147   : > { %v470_v52 = vadd.f32 0.00028619796, %v469_v38  ;;  %v481_v24 = vadd.f32 0.001143296, %v480_v58  ;;  %v509_v35 = vmul.f32 2.1237322e-06, %v4891_v20  ;;  %vm815_vm3 = vweird.f32 %v4836_v6 }
 0x148   : > { %v812_v7 = vsub.f32 1.0, %v811_v62  ;;  %3805 = vrcp.f32 %v4898_v29  ;;  %v4910_v51 = vmul.f32 0.70710677, %v4879_v45  ;;  %1376 = vmatpush.msra.mxu2 %v4901_v48  ;;  %v821_v25 = vand.u32 2147483648, %v4836_v6 }
 0x149   : > { %v471_v5 = vmul.f32 %v470_v52, %v4881_v3  ;;  %v482_v44 = vmul.f32 %v481_v24, %v4881_v3  ;;  %v510_v1 = vadd.f32 0.00028619796, %v509_v35  ;;  %vm816_vm4 = vweird.f32 %v3804_v40 }
 0x14a   : > { %v813_v47 = vmul.f32 %v3804_v40, %v812_v7  ;;  %v520_v12 = vmul.f32 3.8918573e-05, %v4891_v20  ;;  %v549_v22 = vmul.f32 2.1237322e-06, %v4903_v31  ;;  %vm4918_vm5 = vcmp.eq.f32.partialorder %v819_v14, 8.507059e+37  ;;  %vm817_vm7 = vmor %vm815_vm3, %vm816_vm4 }
 0x14b   : > { %v472_v17 = vadd.f32 0.0036580483, %v471_v5  ;;  %v483_v63 = vadd.f32 0.014752088, %v482_v44  ;;  %v511_v2 = vmul.f32 %v510_v1, %v4891_v20  ;;  %vm4923_vm6 = vcmp.eq.f32.partialorder %v1059_v15, 8.507059e+37 }
 0x14c   : > { %v814_v4 = vadd.f32 %v3804_v40, %v813_v47  ;;  %v521_v42 = vadd.f32 0.001143296, %v520_v12  ;;  %v550_v38 = vadd.f32 0.00028619796, %v549_v22  ;;  %v560_v58 = vmul.f32 3.8918573e-05, %v4903_v31 }
 0x14d   : > { %v822_v14 = vor.u32 1.1754944e-38, %v821_v25  ;;  %v473_v62 = vmul.f32 %v472_v17, %v4881_v3  ;;  %v484_v52 = vmul.f32 %v483_v63, %v4881_v3  ;;  %v512_v24 = vadd.f32 0.0036580483, %v511_v2 }
 0x14e   : > { %v4932_v35 = vpop.eup %3805  ;;  %v818_v15 = vsel %vm817_vm7, %v3804_v40, %v814_v4  ;;  %v522_v7 = vmul.f32 %v521_v42, %v4891_v20  ;;  %v551_v5 = vmul.f32 %v550_v38, %v4903_v31  ;;  %v561_v44 = vadd.f32 0.001143296, %v560_v58 }
 0x14f   : > { %v823_v1 = vsel %vm4918_vm5, %v822_v14, %v818_v15  ;;  %v851_v6 = vmul.f32 %v4932_v35, %v4898_v29  ;;  %v474_v25 = vadd.f32 0.05243302, %v473_v62  ;;  %v587_v47 = vmul.f32 %v4910_v51, %v4910_v51 }
 0x150   : > { %v824_v12 = vmul.f32 %v823_v1, %v799_v9  ;;  %v485_v22 = vadd.f32 0.112945676, %v484_v52  ;;  %v513_v17 = vmul.f32 %v512_v24, %v4891_v20  ;;  %v523_v40 = vadd.f32 0.014752088, %v522_v7 }
 0x151   : > { %v852_v63 = vsub.f32 1.0, %v851_v6  ;;  %v475_v2 = vmul.f32 %v474_v25, %v4881_v3  ;;  %v552_v4 = vadd.f32 0.0036580483, %v551_v5  ;;  %v562_v42 = vmul.f32 %v561_v44, %v4903_v31 }
 0x152   : > { %v3509_v18 = vclamps-f32 %v824_v12, 1.0  ;;  %v486_v38 = vmul.f32 %v485_v22, %v4881_v3  ;;  %v514_v58 = vadd.f32 0.05243302, %v513_v17  ;;  %v524_v14 = vmul.f32 %v523_v40, %v4891_v20 }
 0x153   : > { %v836_v62 = vadd.f32 0.18741608, %v835_v37  ;;  %v553_v15 = vmul.f32 %v552_v4, %v4903_v31  ;;  %v563_v9 = vadd.f32 0.014752088, %v562_v42  ;;  %v4948_v52 = vmin.f32 %v587_v47, 16.0 }
 0x154   : > { %v1275_v24 = vadd.f32 1.0, %v3509_v18  ;;  %v487_v7 = vadd.f32 0.4994258, %v486_v38  ;;  %v515_v1 = vmul.f32 %v514_v58, %v4891_v20  ;;  %v525_v6 = vadd.f32 0.112945676, %v524_v14 }
 0x155   : > { %v1063_v5 = vsel %vm4923_vm6, %v4864_v32, %v1058_v41  ;;  %v853_v37 = vmul.f32 %v4932_v35, %v852_v63  ;;  %v554_v44 = vadd.f32 0.05243302, %v553_v15  ;;  %v564_v25 = vmul.f32 %v563_v9, %v4903_v31 }
 0x156   : > { %v4962_v47 = vmul.f32 %v1275_v24, %v4759_v0  ;;  %v476_v12 = vadd.f32 0.18741608, %v475_v2  ;;  %v488_v22 = vmul.f32 %v487_v7, %v4881_v3  ;;  %v526_v39 = vmul.f32 %v525_v6, %v4891_v20 }
 0x157   : > { %v4967_v17 = vmul.f32 0.70710677, %v4889_v11  ;;  %v555_v34 = vmul.f32 %v554_v44, %v4903_v31  ;;  %v565_v59 = vadd.f32 0.112945676, %v564_v25  ;;  %v589_v32 = vmul.f32 2.1237322e-06, %v4948_v52 }
 0x158   : > { %v837_v41 = vmul.f32 %v836_v62, %v4769_v19  ;;  %v4972_v21 = vadd.f32 1.0, %v488_v22  ;;  %v516_v40 = vadd.f32 0.18741608, %v515_v1  ;;  %v527_v0 = vadd.f32 0.4994258, %v526_v39  ;;  %1399 = vmatpush.msra.mxu3 %v4962_v47 }
 0x159   : > { %v854_v63 = vadd.f32 %v4932_v35, %v853_v37  ;;  %vm856_vm8 = vweird.f32 %v4932_v35  ;;  %v859_v2 = vand.u32 2147483647, %v4898_v29  ;;  %v566_v4 = vmul.f32 %v565_v59, %v4903_v31 }
 0x15a   : > { %v4980_v42 = vmul.f32 %v1063_v5, %v4765_v57  ;;  %v4983_v18 = vmul.f32 0.5, %v4808_v33  ;;  %v477_v19 = vmul.f32 %v476_v12, %v4881_v3  ;;  %3807 = vrcp.f32 %v4972_v21 }
 0x15b   : > { %vm855_vm9 = vweird.f32 %v4898_v29  ;;  %v861_v38 = vand.u32 2147483648, %v4898_v29  ;;  %v528_v58 = vmul.f32 %v527_v0, %v4891_v20  ;;  %v556_v14 = vadd.f32 0.18741608, %v555_v34 }
 0x15c   : > { %vm4990_vm10 = vmor %vm855_vm9, %vm856_vm8  ;;  %v517_v57 = vmul.f32 %v516_v40, %v4891_v20  ;;  %v567_v15 = vadd.f32 0.4994258, %v566_v4  ;;  %v590_v33 = vadd.f32 0.00028619796, %v589_v32  ;;  %v627_v3 = vmul.f32 %v4967_v17, %v4967_v17 }
 0x15d   : > { %v838_v9 = vadd.f32 1.1283791, %v837_v41  ;;  %v858_v24 = vsel %vm4990_vm10, %v4932_v35, %v854_v63  ;;  %vm5000_vm11 = vcmp.eq.f32.partialorder %v859_v2, 8.507059e+37  ;;  %v5004_v7 = vadd.f32 1.0, %v528_v58 }
 0x15e   : > { %v478_v1 = vadd.f32 1.1283791, %v477_v19  ;;  %v499_v6 = vand.u32 2147483647, %v4972_v21  ;;  %v568_v20 = vmul.f32 %v567_v15, %v4903_v31  ;;  %v600_v5 = vmul.f32 3.8918573e-05, %v4948_v52 }
 0x15f   : > { %v862_v37 = vor.u32 1.1754944e-38, %v861_v38  ;;  %v501_v44 = vand.u32 2147483648, %v4972_v21  ;;  %3809 = vrcp.f32 %v5004_v7  ;;  %v557_v35 = vmul.f32 %v556_v14, %v4903_v31 }
 0x160   : > { %v3808_v25 = vpop.eup %3807  ;;  %v518_v12 = vadd.f32 1.1283791, %v517_v57  ;;  %v5012_v22 = vadd.f32 1.0, %v568_v20  ;;  %v591_v39 = vmul.f32 %v590_v33, %v4948_v52  ;;  %v5015_v34 = vmin.f32 %v627_v3, 16.0 }
 0x161   : > { %v5018_v59 = vmul.f32 %v838_v9, %v4725_v61  ;;  %v5022_v32 = vsel %vm5000_vm11, %v862_v37, %v858_v24  ;;  %v491_v41 = vmul.f32 %v3808_v25, %v4972_v21  ;;  %v601_v40 = vadd.f32 0.001143296, %v600_v5 }
 0x162   : > { %v479_v31 = vmul.f32 %v478_v1, %v4839_v53  ;;  %vm495_vm12 = vweird.f32 %v4972_v21  ;;  %vm5027_vm13 = vcmp.eq.f32.partialorder %v499_v6, 8.507059e+37  ;;  %3811 = vrcp.f32 %v5012_v22 }
 0x163   : > { %v492_v63 = vsub.f32 1.0, %v491_v41  ;;  %v502_v61 = vor.u32 1.1754944e-38, %v501_v44  ;;  %v558_v2 = vadd.f32 1.1283791, %v557_v35  ;;  %v602_v4 = vmul.f32 %v601_v40, %v4948_v52 }
 0x164   : > { %v519_v19 = vmul.f32 %v518_v12, %v4845_v26  ;;  %v592_v38 = vadd.f32 0.0036580483, %v591_v39  ;;  %v629_v58 = vmul.f32 2.1237322e-06, %v5015_v34  ;;  %v640_v53 = vmul.f32 3.8918573e-05, %v5015_v34 }
 0x165   : > { %v3810_v14 = vpop.eup %3809  ;;  %v493_v62 = vmul.f32 %v3808_v25, %v492_v63  ;;  %vm496_vm14 = vweird.f32 %v3808_v25  ;;  %v541_v57 = vand.u32 2147483648, %v5004_v7  ;;  %v603_v15 = vadd.f32 0.014752088, %v602_v4 }
 0x166   : > { %v531_v33 = vmul.f32 %v3810_v14, %v5004_v7  ;;  %vm535_vm15 = vweird.f32 %v5004_v7  ;;  %v630_v3 = vadd.f32 0.00028619796, %v629_v58  ;;  %v641_v9 = vadd.f32 0.001143296, %v640_v53  ;;  %vm497_vm0 = vmor %vm495_vm12, %vm496_vm14 }
 0x167   : > { %v494_v24 = vadd.f32 %v3808_v25, %v493_v62  ;;  %v539_v26 = vand.u32 2147483647, %v5004_v7  ;;  %v559_v29 = vmul.f32 %v558_v2, %v4850_v36  ;;  %v604_v1 = vmul.f32 %v603_v15, %v4948_v52 }
 0x168   : > { %v3812_v6 = vpop.eup %3811  ;;  %v532_v20 = vsub.f32 1.0, %v531_v33  ;;  %v593_v5 = vmul.f32 %v592_v38, %v4948_v52  ;;  %v631_v37 = vmul.f32 %v630_v3, %v5015_v34  ;;  %v642_v44 = vmul.f32 %v641_v9, %v5015_v34 }
 0x169   : > { %v498_v35 = vsel %vm497_vm0, %v3808_v25, %v494_v24  ;;  %vm536_vm1 = vweird.f32 %v3810_v14  ;;  %v542_v12 = vor.u32 1.1754944e-38, %v541_v57  ;;  %v571_v39 = vmul.f32 %v3812_v6, %v5012_v22 }
 0x16a   : > { %v503_v36 = vsel %vm5027_vm13, %v502_v61, %v498_v35  ;;  %v533_v41 = vmul.f32 %v3810_v14, %v532_v20  ;;  %v605_v40 = vadd.f32 0.112945676, %v604_v1  ;;  %v632_v63 = vadd.f32 0.0036580483, %v631_v37  ;;  %vm537_vm2 = vmor %vm535_vm15, %vm536_vm1 }
 0x16b   : > { %v504_v21 = vmul.f32 %v503_v36, %v479_v31  ;;  %v572_v2 = vsub.f32 1.0, %v571_v39  ;;  %v579_v4 = vand.u32 2147483647, %v5012_v22  ;;  %v643_v38 = vadd.f32 0.014752088, %v642_v44 }
 0x16c   : > { %v534_v58 = vadd.f32 %v3810_v14, %v533_v41  ;;  %v581_v53 = vand.u32 2147483648, %v5012_v22  ;;  %v594_v62 = vadd.f32 0.05243302, %v593_v5  ;;  %v606_v25 = vmul.f32 %v605_v40, %v4948_v52  ;;  %v5070_v41 = vld [vmem:[%s6068_s1] sm:$0xff] }
 0x16d   : > { %v3501_v57 = vclamps-f32 %v504_v21, 1.0  ;;  %v573_v0 = vmul.f32 %v3812_v6, %v572_v2  ;;  %vm576_vm3 = vweird.f32 %v3812_v6  ;;  %v644_v61 = vmul.f32 %v643_v38, %v5015_v34 }
 0x16e   : > { %v538_v31 = vsel %vm537_vm2, %v3810_v14, %v534_v58  ;;  %vm540_vm4 = vcmp.eq.f32.partialorder %v539_v26, 8.507059e+37  ;;  %v607_v15 = vadd.f32 0.4994258, %v606_v25  ;;  %v633_v33 = vmul.f32 %v632_v63, %v5015_v34 }
 0x16f   : > { %v543_v3 = vsel %vm540_vm4, %v542_v12, %v538_v31  ;;  %v574_v9 = vadd.f32 %v3812_v6, %v573_v0  ;;  %vm575_vm5 = vweird.f32 %v5012_v22  ;;  %v645_v24 = vadd.f32 0.112945676, %v644_v61 }
 0x170   : > { %v544_v1 = vmul.f32 %v543_v3, %v519_v19  ;;  %vm577_vm6 = vmor %vm575_vm5, %vm576_vm3  ;;  %v582_v20 = vor.u32 1.1754944e-38, %v581_v53  ;;  %v608_v7 = vmul.f32 %v607_v15, %v4948_v52  ;;  %v1267_v5 = vadd.f32 1.0, %v3501_v57 }
 0x171   : > { %v578_v37 = vsel %vm577_vm6, %v3812_v6, %v574_v9  ;;  %vm580_vm7 = vcmp.eq.f32.partialorder %v579_v4, 8.507059e+37  ;;  %v595_v44 = vmul.f32 %v594_v62, %v4948_v52  ;;  %v646_v14 = vmul.f32 %v645_v24, %v5015_v34 }
 0x172   : > { %v3502_v26 = vclamps-f32 %v544_v1, 1.0  ;;  %v583_v35 = vsel %vm580_vm7, %v582_v20, %v578_v37  ;;  %v5062_v39 = vadd.f32 1.0, %v608_v7  ;;  %v634_v12 = vadd.f32 0.05243302, %v633_v33 }
 0x173   : > { %v584_v36 = vmul.f32 %v583_v35, %v559_v29  ;;  %v647_v22 = vadd.f32 0.4994258, %v646_v14  ;;  %v5065_v19 = vmul.f32 %v1267_v5, %v4983_v18  ;;  %vm1309_vm8 = vcmask 261120  }
 0x174   : > { %v3520_v6 = vclamps-f32 %v4739_v16, 1.0  ;;  %v428_v40 = vmul.f32 0.5, %v4820_v55  ;;  %3813 = vrcp.f32 %v5062_v39  ;;  %v864_v63 = vmul.f32 %v5022_v32, %v5018_v59 }
 0x175   : > { %v3503_v29 = vclamps-f32 %v584_v36, 1.0  ;;  %v648_v21 = vmul.f32 %v647_v22, %v5015_v34  ;;  %v1268_v18 = vadd.f32 1.0, %v3502_v26  ;;  %1331 = vmatpush.msra.mxu0 %v5065_v19  ;;  %v3515_v2 = vclamps-f32 %v4980_v42, 1.0 }
 0x176   : > { %v596_v4 = vadd.f32 0.18741608, %v595_v44  ;;  %3521 = vmatmul.msk.f32.vlgmr.msra.gmra.mxu0 %vm1309_vm8, %v5070_v41  ;;  %v635_v16 = vmul.f32 %v634_v12, %v5015_v34  ;;  %v429_v59 = vmul.f32 0.5, %v4829_v30  ;;  %v1286_v32 = vadd.f32 1.0, %v3520_v6 }
 0x177   : > { %v5083_v55 = vadd.f32 1.0, %v648_v21  ;;  %v1269_v38 = vadd.f32 1.0, %v3503_v29  ;;  %v5085_v58 = vmul.f32 %v1268_v18, %v428_v40  ;;  %1429 = vmatpush.msrb.mxu0 %v4384_v43  ;;  %v3510_v53 = vclamps-f32 %v864_v63, 1.0  ;;  %v3529_v40 = vld [vmem:[%s6068_s1 + $0x10] sm:$0xff] }
 0x178   : > { %v1281_v62 = vadd.f32 1.0, %v3515_v2  ;;  %v597_v25 = vmul.f32 %v596_v4, %v4948_v52  ;;  %v446_v0 = vmul.f32 0.5, %v4205_v27  ;;  %v636_v61 = vadd.f32 0.18741608, %v635_v16  ;;  %v5111_v27 = vld [vmem:[%s6068_s1 + $0x8] sm:$0xff] }
 0x179   : > { %3815 = vrcp.f32 %v5083_v55  ;;  %1354 = vmatpush.msra.mxu1 %v5085_v58  ;;  %1430 = vmatpush.msrb.mxu0 %v4571_v50  ;;  %v5093_v57 = vmul.f32 %v1269_v38, %v429_v59  ;;  %v441_v31 = vmul.f32 0.5, %v4347_v60  ;;  %v1276_v52 = vadd.f32 1.0, %v3510_v53 }
 0x17a   : > { %v3814_v42 = vpop.eup %3813  ;;  %3523 = vmatmul.msk.f32.vlgmr.msra.gmra.mxu1 %vm1309_vm8, %v5070_v41  ;;  %v5103_v15 = vmul.f32 %v1286_v32, %v446_v0  ;;  %v436_v60 = vmul.f32 0.5, %v4705_v28  ;;  %v598_v9 = vadd.f32 1.1283791, %v597_v25  ;;  %v621_v24 = vand.u32 2147483648, %v5062_v39  ;;  %v3554_v25 = vld [vmem:[%s6068_s1 + $0x38] sm:$0xff]  ;;  %v3565_v0 = vld [vmem:[%s6068_s1 + $0x40] sm:$0xff] }
 0x17b   : > { %v611_v30 = vmul.f32 %v3814_v42, %v5062_v39  ;;  %1452 = vmatpush.msrb.mxu1 %v4390_v46  ;;  %1431 = vmatpush.msrb.mxu0 %v4842_v56  ;;  %v5113_v3 = vmul.f32 %v1281_v62, %v441_v31  ;;  %vm616_vm9 = vweird.f32 %v3814_v42  ;;  %v619_v7 = vand.u32 2147483647, %v5062_v39  ;;  %v3553_v62 = vld [vmem:[%s6068_s1 + $0x30] sm:$0xff]  ;;  %v3578_v31 = vld [vmem:[%s6068_s1 + $0x58] sm:$0xff] }
 0x17c   : > { %1377 = vmatpush.msra.mxu2 %v5093_v57  ;;  %v637_v5 = vmul.f32 %v636_v61, %v5015_v34  ;;  %v5127_v37 = vmul.f32 %v1276_v52, %v436_v60  ;;  %vm615_vm10 = vweird.f32 %v5062_v39  ;;  %v599_v34 = vmul.f32 %v598_v9, %v4910_v51  ;;  %v3577_v61 = vld [vmem:[%s6068_s1 + $0x50] sm:$0xff]  ;;  %v3589_v52 = vld [vmem:[%s6068_s1 + $0x60] sm:$0xff] }
 0x17d   : > { %v612_v33 = vsub.f32 1.0, %v611_v30  ;;  %3525 = vmatmul.msk.f32.vlgmr.msra.gmra.mxu2 %vm1309_vm8, %v5070_v41  ;;  %1453 = vmatpush.msrb.mxu1 %v4581_v23  ;;  %vm617_vm11 = vmor %vm615_vm10, %vm616_vm9  ;;  %v622_v14 = vor.u32 1.1754944e-38, %v621_v24  ;;  %vm620_vm12 = vcmp.eq.f32.partialorder %v619_v7, 8.507059e+37  ;;  %v661_v36 = vand.u32 2147483648, %v5083_v55  ;;  %v3566_v30 = vld [vmem:[%s6068_s1 + $0x48] sm:$0xff] }
 0x17e   : > { %1475 = vmatpush.msrb.mxu2 %v4402_v49  ;;  %1432 = vmatpush.msrb.mxu0 %v5065_v19  ;;  %v638_v12 = vadd.f32 1.1283791, %v637_v5  ;;  %v659_v51 = vand.u32 2147483647, %v5083_v55  ;;  %vm655_vm14 = vweird.f32 %v5083_v55  ;;  %v430_v4 = vmul.f32 0.5, %v4879_v45  ;;  %v3530_v45 = vld [vmem:[%s6068_s1 + $0x18] sm:$0xff] }
 0x17f   : > { %v3816_v1 = vpop.eup %3815  ;;  %v613_v20 = vmul.f32 %v3814_v42, %v612_v33  ;;  %1454 = vmatpush.msrb.mxu1 %v4867_v8  ;;  %3522 = vmatmul.msk.f32.gmra.mxu0 %vm1309_vm8, %v5111_v27  ;;  %v662_v21 = vor.u32 1.1754944e-38, %v661_v36  ;;  %v431_v32 = vmul.f32 0.5, %v4889_v11  ;;  %v3541_v11 = vld [vmem:[%s6068_s1 + $0x20] sm:$0xff]  ;;  %v3614_v7 = vld [vmem:[%s6068_s1 + $0x88] sm:$0xff]  ;;  %vm1562_vm1 = vcmask 1031168  }
 0x180   : > { %1521 = vmatpush.msra.mxu0 %v5103_v15  ;;  %v651_v28 = vmul.f32 %v3816_v1, %v5083_v55  ;;  %1476 = vmatpush.msrb.mxu2 %v4640_v54  ;;  %vm656_vm13 = vweird.f32 %v3816_v1  ;;  %v639_v18 = vmul.f32 %v638_v12, %v4967_v17  ;;  %vm660_vm0 = vcmp.eq.f32.partialorder %v659_v51, 8.507059e+37 }
 0x181   : > { %v614_v44 = vadd.f32 %v3814_v42, %v613_v20  ;;  %1455 = vmatpush.msrb.mxu1 %v5085_v58  ;;  %vm657_vm15 = vmor %vm655_vm14, %vm656_vm13  ;;  %v3601_v20 = vld [vmem:[%s6068_s1 + $0x70] sm:$0xff]  ;;  %vm1741_vm2 = vcmask 1014784   ;;  %vm1920_vm3 = vcmask 998400   ;;  %vm2099_vm4 = vcmask 982016  }
 0x182   : > { %1522 = vmatpush.msra.mxu0 %v5113_v3  ;;  %v652_v26 = vsub.f32 1.0, %v651_v28  ;;  %1477 = vmatpush.msrb.mxu2 %v4901_v48  ;;  %vm2278_vm5 = vcmask 965632   ;;  %vm2457_vm6 = vcmask 949248   ;;  %vm2636_vm7 = vcmask 932864  }
 0x183   : > { %1608 = vmatpush.msra.mxu1 %v4384_v43  ;;  %v618_v35 = vsel %vm617_vm11, %v3814_v42, %v614_v44 }
 0x184   : > { %3524 = vmatmul.msk.f32.gmra.mxu1 %vm1309_vm8, %v5111_v27  ;;  %1523 = vmatpush.msra.mxu0 %v5127_v37  ;;  %v623_v39 = vsel %vm620_vm12, %v622_v14, %v618_v35  ;;  %v653_v22 = vmul.f32 %v3816_v1, %v652_v26 }
 0x185   : > { %1478 = vmatpush.msrb.mxu2 %v5093_v57  ;;  %1609 = vmatpush.msra.mxu1 %v4571_v50  ;;  %v624_v6 = vmul.f32 %v623_v39, %v599_v34 }
 0x186   : > { %v654_v63 = vadd.f32 %v3816_v1, %v653_v22  ;;  %3526 = vmatmul.msk.f32.gmra.mxu2 %vm1309_vm8, %v5111_v27 }
 0x187   : > { %1631 = vmatpush.msra.mxu2 %v4390_v46  ;;  %1610 = vmatpush.msra.mxu1 %v4842_v56  ;;  %v3504_v29 = vclamps-f32 %v624_v6, 1.0 }
 0x188   : > { %v658_v2 = vsel %vm657_vm15, %v3816_v1, %v654_v63  ;;  %3531 = vmatmul.msk.f32.vlgmr.msrb.gmra.mxu0 %vm1309_vm8, %v3529_v40 }
 0x189   : > { %1632 = vmatpush.msra.mxu2 %v4581_v23  ;;  %1611 = vmatpush.msra.mxu1 %v5065_v19  ;;  %v663_v16 = vsel %vm660_vm0, %v662_v21, %v658_v2  ;;  %v1270_v55 = vadd.f32 1.0, %v3504_v29 }
 0x18a   : > { %v664_v38 = vmul.f32 %v663_v16, %v639_v18 }
 0x18b   : > { %1633 = vmatpush.msra.mxu2 %v4867_v8  ;;  %v5156_v59 = vmul.f32 %v1270_v55, %v430_v4 }
 0x18c   : > { %3533 = vmatmul.msk.f32.vlgmr.msrb.gmra.mxu1 %vm1309_vm8, %v3529_v40  ;;  %v3505_v17 = vclamps-f32 %v664_v38, 1.0 }
 0x18d   : > { %1634 = vmatpush.msra.mxu2 %v5085_v58  ;;  %1700 = vmatpush.msrb.mxu1 %v5103_v15 }
 0x18e   : > { %1400 = vmatpush.msra.mxu3 %v5156_v59  ;;  %v1271_v53 = vadd.f32 1.0, %v3505_v17  ;;  %3535 = vmatmul.msk.f32.vlgmr.msrb.gmra.mxu2 %vm1309_vm8, %v3529_v40 }
 0x18f   : > { %3527 = vmatmul.msk.f32.vlgmr.msra.gmra.mxu3 %vm1309_vm8, %v5070_v41  ;;  %1787 = vmatpush.msrb.mxu2 %v4384_v43  ;;  %v3542_v41 = vld [vmem:[%s6068_s1 + $0x28] sm:$0xff] }
 0x190   : > { %1498 = vmatpush.msrb.mxu3 %v4430_v13  ;;  %v5171_v42 = vmul.f32 %v1271_v53, %v431_v32  ;;  %1701 = vmatpush.msrb.mxu1 %v5113_v3  ;;  %v5480_v32 = vpop.permute.xlu0 %2849 }
 0x191   : > { %3532 = vmatmul.msk.f32.gmra.mxu0 %vm1309_vm8, %v3530_v45  ;;  %1788 = vmatpush.msrb.mxu2 %v4571_v50 }
 0x192   : > { %1499 = vmatpush.msrb.mxu3 %v4710_v10  ;;  %1524 = vmatpush.msra.mxu0 %v5171_v42 }
 0x193   : > { %1702 = vmatpush.msrb.mxu1 %v5127_v37  ;;  %1789 = vmatpush.msrb.mxu2 %v4842_v56 }
 0x194   : > { %1500 = vmatpush.msrb.mxu3 %v4962_v47  ;;  %1677 = vmatpush.msrb.mxu0 %v4430_v13 }
 0x195   : > { %1703 = vmatpush.msrb.mxu1 %v5171_v42  ;;  %1790 = vmatpush.msrb.mxu2 %v5065_v19 }
 0x196   : > { %1501 = vmatpush.msrb.mxu3 %v5156_v59  ;;  %1678 = vmatpush.msrb.mxu0 %v4710_v10 }
 0x197   : > { %3528 = vmatmul.msk.f32.gmra.mxu3 %vm1309_vm8, %v5111_v27  ;;  %3534 = vmatmul.msk.f32.gmra.mxu1 %vm1309_vm8, %v3530_v45  ;;  %v3590_v27 = vld [vmem:[%s6068_s1 + $0x68] sm:$0xff] }
 0x198   : > { %1654 = vmatpush.msra.mxu3 %v4402_v49  ;;  %1679 = vmatpush.msrb.mxu0 %v4962_v47 }
 0x199   : > { %3536 = vmatmul.msk.f32.gmra.mxu2 %vm1309_vm8, %v3530_v45  ;;  %3539 = vmatmul.msk.f32.vlgmr.msra.gmra.mxu0 %vm1309_vm8, %v3529_v40 }
 0x19a   : > { %1655 = vmatpush.msra.mxu3 %v4640_v54  ;;  %1680 = vmatpush.msrb.mxu0 %v5156_v59 }
 0x19c   : > { %1656 = vmatpush.msra.mxu3 %v4901_v48  ;;  %1833 = vmatpush.msra.mxu0 %v4402_v49 }
 0x19e   : > { %1657 = vmatpush.msra.mxu3 %v5093_v57  ;;  %1834 = vmatpush.msra.mxu0 %v4640_v54 }
 0x19f   : > { %3537 = vmatmul.msk.f32.vlgmr.msrb.gmra.mxu3 %vm1309_vm8, %v3529_v40  ;;  %3543 = vmatmul.msk.f32.vlgmr.msra.gmra.mxu1 %vm1309_vm8, %v3541_v11 }
 0x1a0   : > { %1835 = vmatpush.msra.mxu0 %v4901_v48  ;;  %1810 = vmatpush.msrb.mxu3 %v4390_v46 }
 0x1a1   : > { %3545 = vmatmul.msk.f32.vlgmr.msra.gmra.mxu2 %vm1309_vm8, %v3541_v11  ;;  %1856 = vmatpush.msra.mxu1 %v4430_v13 }
 0x1a2   : > { %1811 = vmatpush.msrb.mxu3 %v4581_v23  ;;  %1879 = vmatpush.msra.mxu2 %v5103_v15 }
 0x1a3   : > { %1857 = vmatpush.msra.mxu1 %v4710_v10  ;;  %1836 = vmatpush.msra.mxu0 %v5093_v57 }
 0x1a4   : > { %1812 = vmatpush.msrb.mxu3 %v4867_v8  ;;  %1880 = vmatpush.msra.mxu2 %v5113_v3 }
 0x1a5   : > { %1858 = vmatpush.msra.mxu1 %v4962_v47  ;;  %3540 = vmatmul.msk.f32.gmra.mxu0 %vm1309_vm8, %v3530_v45 }
 0x1a6   : > { %1813 = vmatpush.msrb.mxu3 %v5085_v58  ;;  %1881 = vmatpush.msra.mxu2 %v5127_v37 }
 0x1a7   : > { %3538 = vmatmul.msk.f32.gmra.mxu3 %vm1309_vm8, %v3530_v45  ;;  %1859 = vmatpush.msra.mxu1 %v5156_v59 }
 0x1a8   : > { %1882 = vmatpush.msra.mxu2 %v5171_v42  ;;  %3544 = vmatmul.msk.f32.gmra.mxu1 %vm1309_vm8, %v3542_v41 }
 0x1a9   : > { %3546 = vmatmul.msk.f32.gmra.mxu2 %vm1309_vm8, %v3542_v41 }
 0x1ad   : > { %3549 = vmatmul.msk.f32.vlgmr.msrb.gmra.mxu0 %vm1309_vm8, %v3541_v11 }
 0x1ae   : > { %1989 = vmatpush.msrb.mxu0 %v4390_v46 }
 0x1af   : > { %3547 = vmatmul.msk.f32.vlgmr.msra.gmra.mxu3 %vm1309_vm8, %v3541_v11 }
 0x1b0   : > { %1966 = vmatpush.msra.mxu3 %v4384_v43  ;;  %3551 = vmatmul.msk.f32.vlgmr.msrb.gmra.mxu1 %vm1309_vm8, %v3541_v11 }
 0x1b1   : > { %3555 = vmatmul.msk.f32.vlgmr.msrb.gmra.mxu2 %vm1309_vm8, %v3553_v62  ;;  %2012 = vmatpush.msrb.mxu1 %v4402_v49 }
 0x1b2   : > { %1967 = vmatpush.msra.mxu3 %v4571_v50  ;;  %2035 = vmatpush.msrb.mxu2 %v4430_v13 }
 0x1b3   : > { %1990 = vmatpush.msrb.mxu0 %v4581_v23  ;;  %2013 = vmatpush.msrb.mxu1 %v4640_v54 }
 0x1b4   : > { %1968 = vmatpush.msra.mxu3 %v4842_v56  ;;  %2036 = vmatpush.msrb.mxu2 %v4710_v10 }
 0x1b5   : > { %1991 = vmatpush.msrb.mxu0 %v4867_v8  ;;  %2014 = vmatpush.msrb.mxu1 %v4901_v48 }
 0x1b6   : > { %1969 = vmatpush.msra.mxu3 %v5065_v19  ;;  %2037 = vmatpush.msrb.mxu2 %v4962_v47 }
 0x1b7   : > { %3548 = vmatmul.msk.f32.gmra.mxu3 %vm1309_vm8, %v3542_v41  ;;  %1992 = vmatpush.msrb.mxu0 %v5085_v58 }
 0x1b8   : > { %2015 = vmatpush.msrb.mxu1 %v5093_v57  ;;  %2038 = vmatpush.msrb.mxu2 %v5156_v59 }
 0x1b9   : > { %3550 = vmatmul.msk.f32.gmra.mxu0 %vm1309_vm8, %v3542_v41  ;;  %3552 = vmatmul.msk.f32.gmra.mxu1 %vm1309_vm8, %v3542_v41 }
 0x1ba   : > { %3556 = vmatmul.msk.f32.gmra.mxu2 %vm1309_vm8, %v3554_v25 }
 0x1bf   : > { %3557 = vmatmul.msk.f32.vlgmr.msrb.gmra.mxu3 %vm1309_vm8, %v3553_v62 }
 0x1c0   : > { %2058 = vmatpush.msrb.mxu3 %v5103_v15 }
 0x1c1   : > { %3559 = vmatmul.msk.f32.vlgmr.msra.gmra.mxu0 %vm1309_vm8, %v3553_v62  ;;  %3561 = vmatmul.msk.f32.vlgmr.msra.gmra.mxu1 %vm1309_vm8, %v3553_v62 }
 0x1c2   : > { %2059 = vmatpush.msrb.mxu3 %v5113_v3  ;;  %3563 = vmatmul.msk.f32.vlgmr.msra.gmra.mxu2 %vm1309_vm8, %v3553_v62 }
 0x1c3   : > { %2145 = vmatpush.msra.mxu0 %v4384_v43  ;;  %2168 = vmatpush.msra.mxu1 %v4390_v46 }
 0x1c4   : > { %2060 = vmatpush.msrb.mxu3 %v5127_v37  ;;  %2191 = vmatpush.msra.mxu2 %v4402_v49 }
 0x1c5   : > { %2146 = vmatpush.msra.mxu0 %v4571_v50  ;;  %2169 = vmatpush.msra.mxu1 %v4581_v23 }
 0x1c6   : > { %2061 = vmatpush.msrb.mxu3 %v5171_v42  ;;  %2192 = vmatpush.msra.mxu2 %v4640_v54 }
 0x1c7   : > { %3558 = vmatmul.msk.f32.gmra.mxu3 %vm1309_vm8, %v3554_v25  ;;  %2147 = vmatpush.msra.mxu0 %v4842_v56 }
 0x1c8   : > { %2170 = vmatpush.msra.mxu1 %v4867_v8  ;;  %2193 = vmatpush.msra.mxu2 %v4901_v48 }
 0x1c9   : > { %2148 = vmatpush.msra.mxu0 %v5065_v19  ;;  %3562 = vmatmul.msk.f32.gmra.mxu1 %vm1309_vm8, %v3554_v25 }
 0x1ca   : > { %2171 = vmatpush.msra.mxu1 %v5085_v58  ;;  %2194 = vmatpush.msra.mxu2 %v5093_v57 }
 0x1cb   : > { %3560 = vmatmul.msk.f32.gmra.mxu0 %vm1309_vm8, %v3554_v25  ;;  %3564 = vmatmul.msk.f32.gmra.mxu2 %vm1309_vm8, %v3554_v25 }
 0x1cf   : > { %3567 = vmatmul.msk.f32.vlgmr.msra.gmra.mxu3 %vm1309_vm8, %v3565_v0 }
 0x1d0   : > { %2214 = vmatpush.msra.mxu3 %v4430_v13 }
 0x1d1   : > { %3571 = vmatmul.msk.f32.vlgmr.msrb.gmra.mxu1 %vm1309_vm8, %v3565_v0 }
 0x1d2   : > { %2215 = vmatpush.msra.mxu3 %v4710_v10  ;;  %2324 = vmatpush.msrb.mxu1 %v4384_v43 }
 0x1d3   : > { %3569 = vmatmul.msk.f32.vlgmr.msrb.gmra.mxu0 %vm1309_vm8, %v3565_v0  ;;  %3573 = vmatmul.msk.f32.vlgmr.msrb.gmra.mxu2 %vm1309_vm8, %v3565_v0 }
 0x1d4   : > { %2216 = vmatpush.msra.mxu3 %v4962_v47  ;;  %2237 = vmatpush.msrb.mxu0 %v5103_v15 }
 0x1d5   : > { %2347 = vmatpush.msrb.mxu2 %v4390_v46  ;;  %2325 = vmatpush.msrb.mxu1 %v4571_v50 }
 0x1d6   : > { %2217 = vmatpush.msra.mxu3 %v5156_v59  ;;  %2238 = vmatpush.msrb.mxu0 %v5113_v3 }
 0x1d7   : > { %3568 = vmatmul.msk.f32.gmra.mxu3 %vm1309_vm8, %v3566_v30  ;;  %2348 = vmatpush.msrb.mxu2 %v4581_v23 }
 0x1d8   : > { %2239 = vmatpush.msrb.mxu0 %v5127_v37  ;;  %2326 = vmatpush.msrb.mxu1 %v4842_v56 }
 0x1d9   : > { %2349 = vmatpush.msrb.mxu2 %v4867_v8  ;;  %3572 = vmatmul.msk.f32.gmra.mxu1 %vm1309_vm8, %v3566_v30 }
 0x1da   : > { %2240 = vmatpush.msrb.mxu0 %v5171_v42  ;;  %2327 = vmatpush.msrb.mxu1 %v5065_v19 }
 0x1db   : > { %2350 = vmatpush.msrb.mxu2 %v5085_v58  ;;  %3570 = vmatmul.msk.f32.gmra.mxu0 %vm1309_vm8, %v3566_v30 }
 0x1dc   : > { %3574 = vmatmul.msk.f32.gmra.mxu2 %vm1309_vm8, %v3566_v30 }
 0x1df   : > { %3575 = vmatmul.msk.f32.vlgmr.msrb.gmra.mxu3 %vm1309_vm8, %v3565_v0 }
 0x1e0   : > { %2370 = vmatpush.msrb.mxu3 %v4402_v49 }
 0x1e1   : > { %3581 = vmatmul.msk.f32.vlgmr.msra.gmra.mxu1 %vm1309_vm8, %v3577_v61 }
 0x1e2   : > { %2371 = vmatpush.msrb.mxu3 %v4640_v54  ;;  %2416 = vmatpush.msra.mxu1 %v5103_v15 }
 0x1e3   : > { %3579 = vmatmul.msk.f32.vlgmr.msra.gmra.mxu0 %vm1309_vm8, %v3577_v61 }
 0x1e4   : > { %2372 = vmatpush.msrb.mxu3 %v4901_v48  ;;  %3583 = vmatmul.msk.f32.vlgmr.msra.gmra.mxu2 %vm1309_vm8, %v3577_v61 }
 0x1e5   : > { %2393 = vmatpush.msra.mxu0 %v4430_v13  ;;  %2503 = vmatpush.msra.mxu2 %v4384_v43 }
 0x1e6   : > { %2373 = vmatpush.msrb.mxu3 %v5093_v57  ;;  %2417 = vmatpush.msra.mxu1 %v5113_v3 }
 0x1e7   : > { %3576 = vmatmul.msk.f32.gmra.mxu3 %vm1309_vm8, %v3566_v30  ;;  %2394 = vmatpush.msra.mxu0 %v4710_v10 }
 0x1e8   : > { %2504 = vmatpush.msra.mxu2 %v4571_v50  ;;  %2418 = vmatpush.msra.mxu1 %v5127_v37 }
 0x1e9   : > { %2395 = vmatpush.msra.mxu0 %v4962_v47  ;;  %3582 = vmatmul.msk.f32.gmra.mxu1 %vm1309_vm8, %v3578_v31 }
 0x1ea   : > { %2505 = vmatpush.msra.mxu2 %v4842_v56  ;;  %2419 = vmatpush.msra.mxu1 %v5171_v42 }
 0x1eb   : > { %2396 = vmatpush.msra.mxu0 %v5156_v59 }
 0x1ec   : > { %2506 = vmatpush.msra.mxu2 %v5065_v19  ;;  %3580 = vmatmul.msk.f32.gmra.mxu0 %vm1309_vm8, %v3578_v31 }
 0x1ed   : > { %3584 = vmatmul.msk.f32.gmra.mxu2 %vm1309_vm8, %v3578_v31 }
 0x1ef   : > { %3585 = vmatmul.msk.f32.vlgmr.msra.gmra.mxu3 %vm1309_vm8, %v3577_v61 }
 0x1f0   : > { %2526 = vmatpush.msra.mxu3 %v4390_v46 }
 0x1f1   : > { %3591 = vmatmul.msk.f32.vlgmr.msrb.gmra.mxu1 %vm1309_vm8, %v3589_v52 }
 0x1f2   : > { %2527 = vmatpush.msra.mxu3 %v4581_v23  ;;  %2572 = vmatpush.msrb.mxu1 %v4430_v13 }
 0x1f3   : > { %v5348_v33 = vpop.f32.mrf.mxu0 }
 0x1f4   : > { %2528 = vmatpush.msra.mxu3 %v4867_v8  ;;  %3587 = vmatmul.msk.f32.vlgmr.msrb.gmra.mxu0 %vm1309_vm8, %v3577_v61 }
 0x1f5   : > { %3593 = vmatmul.msk.f32.vlgmr.msrb.gmra.mxu2 %vm1309_vm8, %v3589_v52  ;;  %2549 = vmatpush.msrb.mxu0 %v4402_v49 }
 0x1f6   : > { %2529 = vmatpush.msra.mxu3 %v5085_v58  ;;  %2595 = vmatpush.msrb.mxu2 %v5103_v15 }
 0x1f7   : > { %3586 = vmatmul.msk.f32.gmra.mxu3 %vm1309_vm8, %v3578_v31  ;;  %2550 = vmatpush.msrb.mxu0 %v4640_v54  ;;  %v5361_v60 = vpop.f32.mrf.mxu1 }
 0x1f8   : > { %2573 = vmatpush.msrb.mxu1 %v4710_v10  ;;  %2596 = vmatpush.msrb.mxu2 %v5113_v3 }
 0x1f9   : > { %2551 = vmatpush.msrb.mxu0 %v4901_v48  ;;  %3592 = vmatmul.msk.f32.gmra.mxu1 %vm1309_vm8, %v3590_v27 }
 0x1fa   : > { %2574 = vmatpush.msrb.mxu1 %v4962_v47  ;;  %2597 = vmatpush.msrb.mxu2 %v5127_v37 }
 0x1fb   : > { %2552 = vmatpush.msrb.mxu0 %v5093_v57 }
 0x1fc   : > { %2575 = vmatpush.msrb.mxu1 %v5156_v59  ;;  %2598 = vmatpush.msrb.mxu2 %v5171_v42  ;;  %v5374_v9 = vpop.f32.mrf.mxu0 }
 0x1fd   : > { %3588 = vmatmul.msk.f32.gmra.mxu0 %vm1309_vm8, %v3578_v31  ;;  %3594 = vmatmul.msk.f32.gmra.mxu2 %vm1309_vm8, %v3590_v27 }
 0x1ff   : > { %3595 = vmatmul.msk.f32.vlgmr.msrb.gmra.mxu3 %vm1309_vm8, %v3589_v52 }
 0x200   : > { %2682 = vmatpush.msrb.mxu3 %v4384_v43  ;;  %v5378_v24 = vpop.f32.mrf.mxu2 }
 0x201   : > { %v5380_v1 = vpop.f32.mrf.mxu1  ;;  %3599 = vmatmul.msk.f32.vlgmr.msra.gmra.mxu1 %vm1309_vm8, %v3589_v52 }
 0x202   : > { %2683 = vmatpush.msrb.mxu3 %v4571_v50  ;;  %2728 = vmatpush.msra.mxu1 %v4402_v49 }
 0x204   : > { %2684 = vmatpush.msrb.mxu3 %v4842_v56  ;;  %2729 = vmatpush.msra.mxu1 %v4640_v54  ;;  %v3602_v56 = vld [vmem:[%s6068_s1 + $0x78] sm:$0xff] }
 0x205   : > { %3597 = vmatmul.msk.f32.vlgmr.msra.gmra.mxu0 %vm1309_vm8, %v3589_v52  ;;  %3603 = vmatmul.msk.f32.vlgmr.msra.gmra.mxu2 %vm1309_vm8, %v3601_v20  ;;  %v1434_v43 = vpop.f32.mrf.mxu0 }
 0x206   : > { %2685 = vmatpush.msrb.mxu3 %v5065_v19  ;;  %2705 = vmatpush.msra.mxu0 %v4390_v46  ;;  %v3613_v19 = vld [vmem:[%s6068_s1 + $0x80] sm:$0xff] }
 0x207   : > { %3596 = vmatmul.msk.f32.gmra.mxu3 %vm1309_vm8, %v3590_v27  ;;  %2751 = vmatpush.msra.mxu2 %v4430_v13 }
 0x208   : > { %2706 = vmatpush.msra.mxu0 %v4581_v23  ;;  %2730 = vmatpush.msra.mxu1 %v4901_v48 }
 0x209   : > { %v1457_v49 = vpop.f32.mrf.mxu1  ;;  %2752 = vmatpush.msra.mxu2 %v4710_v10  ;;  %v5399_v50 = vpop.f32.mrf.mxu2  ;;  %1542 = vrot.lane.b32.xlu2 %v1434_v43, %s3990_s10 }
 0x20a   : > { %1544 = vrot.lane.b32.xlu0 %v1457_v49, %s3990_s10  ;;  %2707 = vmatpush.msra.mxu0 %v4867_v8 }
 0x20b   : > { %2731 = vmatpush.msra.mxu1 %v5093_v57  ;;  %2753 = vmatpush.msra.mxu2 %v4962_v47 }
 0x20c   : > { %2708 = vmatpush.msra.mxu0 %v5085_v58  ;;  %3600 = vmatmul.msk.f32.gmra.mxu1 %vm1309_vm8, %v3590_v27 }
 0x20d   : > { %2754 = vmatpush.msra.mxu2 %v5156_v59  ;;  %3598 = vmatmul.msk.f32.gmra.mxu0 %vm1309_vm8, %v3590_v27  ;;  %v5475_v59 = vpop.permute.xlu2 %2844 }
 0x20e   : > { %v1437_v46 = vpop.f32.mrf.mxu0  ;;  %3604 = vmatmul.msk.f32.gmra.mxu2 %vm1309_vm8, %v3602_v56 }
 0x20f   : > { %3605 = vmatmul.msk.f32.vlgmr.msra.gmra.mxu3 %vm1309_vm8, %v3601_v20 }
 0x210   : > { %2774 = vmatpush.msra.mxu3 %v5103_v15 }
 0x211   : > { %v1480_v23 = vpop.f32.mrf.mxu2 }
 0x212   : > { %v5412_v13 = vpop.f32.mrf.mxu3  ;;  %2775 = vmatpush.msra.mxu3 %v5113_v3  ;;  %1546 = vrot.lane.b32.xlu1 %v1480_v23, %s3990_s10 }
 0x214   : > { %2776 = vmatpush.msra.mxu3 %v5127_v37  ;;  %3609 = vmatmul.msk.f32.vlgmr.msrb.gmra.mxu1 %vm1309_vm8, %v3601_v20  ;;  %v1460_v48 = vpop.f32.mrf.mxu1 }
 0x215   : > { %3607 = vmatmul.msk.f32.vlgmr.msrb.gmra.mxu0 %vm1309_vm8, %v3601_v20 }
 0x216   : > { %2777 = vmatpush.msra.mxu3 %v5171_v42  ;;  %v1526_v54 = vpop.f32.mrf.mxu0  ;;  %3611 = vmatmul.msk.f32.vlgmr.msrb.gmra.mxu2 %vm1309_vm8, %v3601_v20 }
 0x217   : > { %1550 = vrot.lane.b32.xlu0 %v1526_v54, %s3990_s10  ;;  %3606 = vmatmul.msk.f32.gmra.mxu3 %vm1309_vm8, %v3602_v56 }
 0x21a   : > { %v5421_v10 = vpop.f32.mrf.mxu3  ;;  %1552 = vrot.lane.b32.xlu1 %v1437_v46, %s3990_s10 }
 0x21c   : > { %v1483_v8 = vpop.f32.mrf.mxu2  ;;  %3610 = vmatmul.msk.f32.gmra.mxu1 %vm1309_vm8, %v3602_v56  ;;  %v1613_v57 = vpop.f32.mrf.mxu1 }
 0x21d   : > { %3608 = vmatmul.msk.f32.gmra.mxu0 %vm1309_vm8, %v3602_v56 }
 0x21e   : > { %3612 = vmatmul.msk.f32.gmra.mxu2 %vm1309_vm8, %v3602_v56 }
 0x21f   : > { %3615 = vmatmul.msk.f32.vlgmr.msrb.gmra.mxu3 %vm1309_vm8, %v3613_v19 }
 0x222   : > { %v1503_v47 = vpop.f32.mrf.mxu3  ;;  %1556 = vrot.lane.b32.xlu1 %v1483_v8, %s3990_s10  ;;  %v1529_v3 = vpop.f32.mrf.mxu0 }
 0x223   : > { %1548 = vrot.lane.b32.xlu2 %v1503_v47, %s3990_s10 }
 0x224   : > { %v1636_v58 = vpop.f32.mrf.mxu2  ;;  %3619 = vmatmul.msk.f32.vlgmr.msra.gmra.mxu1 %vm1309_vm8, %v3613_v19 }
 0x225   : > { %1723 = vrot.lane.b32.xlu0 %v1636_v58, %s3991_s26  ;;  %3617 = vmatmul.msk.f32.vlgmr.msra.gmra.mxu0 %vm1309_vm8, %v3613_v19  ;;  %v1616_v5 = vpop.f32.mrf.mxu1 }
 0x226   : > { %3621 = vmatmul.msk.f32.vlgmr.msra.gmra.mxu2 %vm1309_vm8, %v3613_v19 }
 0x227   : > { %3616 = vmatmul.msk.f32.gmra.mxu3 %vm1309_vm8, %v3614_v7 }
 0x22a   : > { %v1506_v15 = vpop.f32.mrf.mxu3  ;;  %v1682_v26 = vpop.f32.mrf.mxu0 }
 0x22b   : > { %1554 = vrot.lane.b32.xlu2 %v1460_v48, %s3990_s10 }
 0x22c   : > { %3620 = vmatmul.msk.f32.gmra.mxu1 %vm1309_vm8, %v3614_v7  ;;  %v1639_v37 = vpop.f32.mrf.mxu2 }
 0x22d   : > { %1560 = vrot.lane.b32.xlu0 %v1529_v3, %s3990_s10  ;;  %3618 = vmatmul.msk.f32.gmra.mxu0 %vm1309_vm8, %v3614_v7  ;;  %v1705_v34 = vpop.f32.mrf.mxu1 }
 0x22e   : > { %3622 = vmatmul.msk.f32.gmra.mxu2 %vm1309_vm8, %v3614_v7 }
 0x22f   : > { %3623 = vmatmul.msk.f32.vlgmr.msra.gmra.mxu3 %vm1309_vm8, %v3613_v19 }
 0x232   : > { %v1659_v28 = vpop.f32.mrf.mxu3 }
 0x233   : > { %1558 = vrot.lane.b32.xlu2 %v1506_v15, %s3990_s10  ;;  %1725 = vrot.lane.b32.xlu1 %v1659_v28, %s3991_s26  ;;  %s310_s10 = sand.u32 1, %s3949_s25  }
 0x234   : > { %v1792_v14 = vpop.f32.mrf.mxu2  ;;  %s3498_s18 = sshll.u32 %s310_s10, 7  ;;  %s3386_s8 = scalar_lea.sflag [#allocation4], %s310_s10 }
 0x235   : > { %1731 = vrot.lane.b32.xlu0 %v1616_v5, %s3991_s26  ;;  %s5994_s17 = scalar_lea.vmem [#allocation5], %s3498_s18  ;;  %s3883_s18 = scalar_lea.hbm %s6074_s7, 512 }
 0x236   : > { %v1708_v35 = vpop.f32.mrf.mxu1  ;;  %v1685_v39 = vpop.f32.mrf.mxu0 }
 0x237   : > { %3624 = vmatmul.msk.f32.gmra.mxu3 %vm1309_vm8, %v3614_v7  ;;  %vm2815_vm8 = vcmask 916480  }
 0x23a   : > { %v1662_v44 = vpop.f32.mrf.mxu3 }
 0x23b   : > { %1721 = vrot.lane.b32.xlu2 %v1613_v57, %s3991_s26  ;;  %1735 = vrot.lane.b32.xlu1 %v1662_v44, %s3991_s26 }
 0x23d   : > { %1729 = vrot.lane.b32.xlu0 %v1705_v34, %s3991_s26  ;;  %v1795_v36 = vpop.f32.mrf.mxu2 }
 0x23e   : > { %v1861_v22 = vpop.f32.mrf.mxu1  ;;  %v1838_v40 = vpop.f32.mrf.mxu0 }
 0x242   : > { %v1815_v12 = vpop.f32.mrf.mxu3 }
 0x243   : > { %1727 = vrot.lane.b32.xlu2 %v1682_v26, %s3991_s26  ;;  %1733 = vrot.lane.b32.xlu1 %v1639_v37, %s3991_s26 }
 0x245   : > { %1900 = vrot.lane.b32.xlu0 %v1792_v14, %s3992_s12  ;;  %v1884_v6 = vpop.f32.mrf.mxu2 }
 0x246   : > { %v1864_v63 = vpop.f32.mrf.mxu1 }
 0x248   : > { %v1841_v18 = vpop.f32.mrf.mxu0 }
 0x24a   : > { %v1818_v51 = vpop.f32.mrf.mxu3 }
 0x24b   : > { %1737 = vrot.lane.b32.xlu2 %v1685_v39, %s3991_s26  ;;  %1902 = vrot.lane.b32.xlu1 %v1815_v12, %s3992_s12 }
 0x24d   : > { %1739 = vrot.lane.b32.xlu0 %v1708_v35, %s3991_s26  ;;  %s3397_s26 = sadd.s32 %s3651_s24, %s3650_s15 }
 0x24e   : > { %v1887_v29 = vpop.f32.mrf.mxu2  ;;  %v2017_v2 = vpop.f32.mrf.mxu1  ;;  %s3652_s14 = sshll.u32 %s3397_s26, 3 }
 0x250   : > { %v1994_v55 = vpop.f32.mrf.mxu0 }
 0x252   : > { %v1971_v21 = vpop.f32.mrf.mxu3 }
 0x253   : > { %1912 = vrot.lane.b32.xlu2 %v1818_v51, %s3992_s12  ;;  %1910 = vrot.lane.b32.xlu1 %v1795_v36, %s3992_s12 }
 0x255   : > { %1904 = vrot.lane.b32.xlu0 %v1838_v40, %s3992_s12 }
 0x256   : > { %v2040_v4 = vpop.f32.mrf.mxu2  ;;  %v2020_v38 = vpop.f32.mrf.mxu1 }
 0x258   : > { %v1997_v45 = vpop.f32.mrf.mxu0 }
 0x25a   : > { %v1974_v16 = vpop.f32.mrf.mxu3 }
 0x25b   : > { %1908 = vrot.lane.b32.xlu2 %v1884_v6, %s3992_s12  ;;  %1906 = vrot.lane.b32.xlu1 %v1861_v22, %s3992_s12 }
 0x25d   : > { %1918 = vrot.lane.b32.xlu0 %v1887_v29, %s3992_s12 }
 0x25e   : > { %v2173_v62 = vpop.f32.mrf.mxu1 }
 0x25f   : > { %v2043_v42 = vpop.f32.mrf.mxu2 }
 0x260   : > { %v2150_v31 = vpop.f32.mrf.mxu0 }
 0x262   : > { %v2063_v17 = vpop.f32.mrf.mxu3 }
 0x263   : > { %1916 = vrot.lane.b32.xlu2 %v1864_v63, %s3992_s12  ;;  %2079 = vrot.lane.b32.xlu1 %v1971_v21, %s3993_s21  ;;  %v1543_v53 = vpop.permute.xlu2 %1542 }
 0x265   : > { %2085 = vrot.lane.b32.xlu0 %v2040_v4, %s3993_s21 }
 0x266   : > { %v2176_v49 = vpop.f32.mrf.mxu1 }
 0x267   : > { %v2196_v25 = vpop.f32.mrf.mxu2 }
 0x269   : > { %v2153_v8 = vpop.f32.mrf.mxu0 }
 0x26a   : > { %v2066_v11 = vpop.f32.mrf.mxu3 }
 0x26b   : > { %2089 = vrot.lane.b32.xlu2 %v1974_v16, %s3993_s21  ;;  %1914 = vrot.lane.b32.xlu1 %v1841_v18, %s3992_s12 }
 0x26d   : > { %2093 = vrot.lane.b32.xlu0 %v2020_v38, %s3993_s21 }
 0x26e   : > { %v2329_v57 = vpop.f32.mrf.mxu1 }
 0x270   : > { %v2199_v46 = vpop.f32.mrf.mxu2 }
 0x271   : > { %v2242_v44 = vpop.f32.mrf.mxu0 }
 0x272   : > { %v2219_v61 = vpop.f32.mrf.mxu3 }
 0x273   : > { %2083 = vrot.lane.b32.xlu2 %v2017_v2, %s3993_s21  ;;  %2087 = vrot.lane.b32.xlu1 %v2063_v17, %s3993_s21 }
 0x275   : > { %2091 = vrot.lane.b32.xlu0 %v1997_v45, %s3993_s21 }
 0x276   : > { %v2332_v26 = vpop.f32.mrf.mxu1 }
 0x278   : > { %v2352_v58 = vpop.f32.mrf.mxu2 }
 0x27a   : > { %v2222_v23 = vpop.f32.mrf.mxu3  ;;  %v2245_v51 = vpop.f32.mrf.mxu0 }
 0x27b   : > { %2081 = vrot.lane.b32.xlu2 %v1994_v55, %s3993_s21  ;;  %2095 = vrot.lane.b32.xlu1 %v2043_v42, %s3993_s21 }
 0x27c   : > { %v1545_v41 = vpop.permute.xlu0 %1544 }
 0x27d   : > { %v1563_v0 = vsel %vm1562_vm1, %v1543_v53, %v1545_v41  ;;  %v1549_v30 = vpop.permute.xlu2 %1548  ;;  %2260 = vrot.lane.b32.xlu0 %v2173_v62, %s3994_s20 }
 0x27e   : > { %v1579_v37 = vadd.f32 %v1563_v0, %v5348_v33  ;;  %v2421_v40 = vpop.f32.mrf.mxu1 }
 0x280   : > { %v2355_v35 = vpop.f32.mrf.mxu2 }
 0x282   : > { %v2375_v15 = vpop.f32.mrf.mxu3 }
 0x283   : > { %2097 = vrot.lane.b32.xlu2 %v2066_v11, %s3993_s21  ;;  %2264 = vrot.lane.b32.xlu1 %v2219_v61, %s3994_s20  ;;  %s3399_s21 = scalar_lea.hbm %s6074_s7, %s3652_s14 }
 0x284   : > { %v1547_v52 = vpop.permute.xlu1 %1546  ;;  %s3402_s30 = sshll.u32 %s3399_s21, 4  ;;  %s3403_s30 = int_to_ptr.hbm [resolvable:$true] %s3402_s30 }
 0x285   : > { %v1555_v27 = vpop.permute.xlu2 %1554  ;;  %v1564_v20 = vsel %vm1562_vm1, %v1545_v41, %v1547_v52  ;;  %v1565_v43 = vsel %vm1562_vm1, %v1547_v52, %v1549_v30  ;;  %2262 = vrot.lane.b32.xlu0 %v2196_v25, %s3994_s20 }
 0x286   : > { %v1580_v63 = vadd.f32 %v1564_v20, %v5361_v60  ;;  %v1581_v29 = vadd.f32 %v1565_v43, %v5378_v24  ;;  %v2398_v60 = vpop.f32.mrf.mxu0 }
 0x288   : > { %v2508_v6 = vpop.f32.mrf.mxu2 }
 0x289   : > { %v1551_v54 = vpop.permute.xlu0 %1550  ;;  %v2424_v11 = vpop.f32.mrf.mxu1 }
 0x28a   : > { %v1566_v56 = vsel %vm1562_vm1, %v1549_v30, %v1551_v54  ;;  %v2378_v36 = vpop.f32.mrf.mxu3 }
 0x28b   : > { %2258 = vrot.lane.b32.xlu2 %v2150_v31, %s3994_s20  ;;  %2270 = vrot.lane.b32.xlu1 %v2176_v49, %s3994_s20  ;;  %v1582_v41 = vadd.f32 %v1566_v56, %v5412_v13 }
 0x28c   : > { %v1553_v48 = vpop.permute.xlu1 %1552 }
 0x28d   : > { %v1559_v47 = vpop.permute.xlu2 %1558  ;;  %v5498_v19 = vsel %vm1562_vm1, %v1553_v48, %v1555_v27  ;;  %2268 = vrot.lane.b32.xlu0 %v2153_v8, %s3994_s20 }
 0x28e   : > { %v1583_v31 = vadd.f32 %v5498_v19, %v5374_v9  ;;  %v2401_v13 = vpop.f32.mrf.mxu0 }
 0x291   : > { %v2511_v17 = vpop.f32.mrf.mxu2  ;;  %v2577_v56 = vpop.f32.mrf.mxu1 }
 0x292   : > { %v2531_v0 = vpop.f32.mrf.mxu3 }
 0x293   : > { %2272 = vrot.lane.b32.xlu2 %v2199_v46, %s3994_s20  ;;  %2437 = vrot.lane.b32.xlu1 %v2329_v57, %s3995_s22 }
 0x294   : > { %v1557_v3 = vpop.permute.xlu1 %1556 }
 0x295   : > { %v1722_v7 = vpop.permute.xlu2 %1721  ;;  %v1568_v5 = vsel %vm1562_vm1, %v1555_v27, %v1557_v3  ;;  %v1569_v28 = vsel %vm1562_vm1, %v1557_v3, %v1559_v47  ;;  %2274 = vrot.lane.b32.xlu0 %v2222_v23, %s3994_s20 }
 0x296   : > { %v1585_v24 = vadd.f32 %v1569_v28, %v5399_v50  ;;  %v1584_v52 = vadd.f32 %v1568_v5, %v5380_v1 }
 0x297   : > { %v1724_v34 = vpop.permute.xlu0 %1723 }
 0x298   : > { %v1742_v14 = vsel %vm1741_vm2, %v1722_v7, %v1724_v34 }
 0x299   : > { %v5508_v12 = vadd.f32 %v1742_v14, %v1579_v37  ;;  %v2600_v50 = vpop.f32.mrf.mxu2  ;;  %v2580_v5 = vpop.f32.mrf.mxu1 }
 0x29a   : > { %v2534_v8 = vpop.f32.mrf.mxu3 }
 0x29b   : > { %2266 = vrot.lane.b32.xlu2 %v2242_v44, %s3994_s20  ;;  %2441 = vrot.lane.b32.xlu1 %v2375_v15, %s3995_s22  ;;  %v2554_v15 = vpop.f32.mrf.mxu0 }
 0x29d   : > { %v1728_v39 = vpop.permute.xlu2 %1727  ;;  %2451 = vrot.lane.b32.xlu0 %v2378_v36, %s3995_s22 }
 0x29f   : > { %v1561_v22 = vpop.permute.xlu0 %1560 }
 0x2a0   : > { %v1570_v33 = vsel %vm1562_vm1, %v1559_v47, %v1561_v22 }
 0x2a1   : > { %v2603_v47 = vpop.f32.mrf.mxu2  ;;  %v1586_v19 = vadd.f32 %v1570_v33, %v5421_v10 }
 0x2a2   : > { %v5557_v28 = vpop.f32.mrf.mxu3 }
 0x2a3   : > { %2439 = vrot.lane.b32.xlu2 %v2352_v58, %s3995_s22  ;;  %2276 = vrot.lane.b32.xlu1 %v2245_v51, %s3994_s20  ;;  %s3400_s20 = sshll.u32 %s5994_s17, 4  ;;  %s3401_s20 = int_to_ptr.vmem [resolvable:$true] %s3400_s20 }
 0x2a5   : > { %v1738_v21 = vpop.permute.xlu2 %1737  ;;  %v1726_v18 = vpop.permute.xlu1 %1725  ;;  %2445 = vrot.lane.b32.xlu0 %v2421_v40, %s3995_s22 }
 0x2a6   : > { %v1743_v2 = vsel %vm1741_vm2, %v1724_v34, %v1726_v18  ;;  %v1744_v4 = vsel %vm1741_vm2, %v1726_v18, %v1728_v39 }
 0x2a7   : > { %v5521_v16 = vadd.f32 %v1743_v2, %v1580_v63  ;;  %v5523_v55 = vadd.f32 %v1744_v4, %v1581_v29  ;;  %v1732_v38 = vpop.permute.xlu0 %1731 }
 0x2aa   : > { %v2690_v33 = vpop.f32.mrf.mxu3 }
 0x2ab   : > { %2449 = vrot.lane.b32.xlu2 %v2355_v35, %s3995_s22  ;;  %2447 = vrot.lane.b32.xlu1 %v2332_v26, %s3995_s22  ;;  %v2557_v35 = vpop.f32.mrf.mxu0 }
 0x2ad   : > { %v5528_v45 = vpop.permute.xlu2 %1912  ;;  %v1736_v53 = vpop.permute.xlu1 %1735  ;;  %2616 = vrot.lane.b32.xlu0 %v2508_v6, %s3996_s16 }
 0x2ae   : > { %v1748_v42 = vsel %vm1741_vm2, %v1736_v53, %v1738_v21 }
 0x2af   : > { %v5533_v62 = vadd.f32 %v1748_v42, %v1585_v24  ;;  %v1730_v25 = vpop.permute.xlu0 %1729 }
 0x2b0   : > { %v1745_v30 = vsel %vm1741_vm2, %v1728_v39, %v1730_v25  ;;  %v2733_v39 = vpop.f32.mrf.mxu1 }
 0x2b1   : > { %v1761_v61 = vadd.f32 %v1745_v30, %v1582_v41 }
 0x2b3   : > { %2443 = vrot.lane.b32.xlu2 %v2398_v60, %s3995_s22  ;;  %2618 = vrot.lane.b32.xlu1 %v2531_v0, %s3996_s16  ;;  %v2710_v2 = vpop.f32.mrf.mxu0 }
 0x2b5   : > { %v1909_v27 = vpop.permute.xlu2 %1908  ;;  %v1734_v20 = vpop.permute.xlu1 %1733  ;;  %2626 = vrot.lane.b32.xlu0 %v2511_v17, %s3996_s16 }
 0x2b6   : > { %v1746_v43 = vsel %vm1741_vm2, %v1732_v38, %v1734_v20  ;;  %v1747_v49 = vsel %vm1741_vm2, %v1734_v20, %v1736_v53 }
 0x2b7   : > { %v1762_v46 = vadd.f32 %v1746_v43, %v1583_v31  ;;  %v5544_v23 = vadd.f32 %v1747_v49, %v1584_v52  ;;  %v1901_v54 = vpop.permute.xlu0 %1900  ;;  %v3216_v49 = vld [vmem:[%s6073_s6] sm:$0xff] }
 0x2bb   : > { %2455 = vrot.lane.b32.xlu2 %v2424_v11, %s3995_s22  ;;  %2453 = vrot.lane.b32.xlu1 %v2401_v13, %s3995_s22  ;;  %v2779_v11 = vpop.f32.mrf.mxu3  ;;  %v2713_v0 = vpop.f32.mrf.mxu0  ;;  %s3877_s22 = sshra.s32 %s3403_s30, 4  ;;  %s3878_s22 = int_to_ptr.hbm [resolvable:$true] %s3877_s22 }
 0x2bc   : > { %v2736_v13 = vpop.f32.mrf.mxu1  ;;  %p3884_p10 = scmp.lt.s32.totalorder %s3878_s22, %s6074_s7 }
 0x2bd   : > { %v5548_v9 = vpop.permute.xlu2 %1916  ;;  %v1903_v1 = vpop.permute.xlu1 %1902  ;;  %2622 = vrot.lane.b32.xlu0 %v2577_v56, %s3996_s16 }
 0x2be   : > { %v1921_v48 = vsel %vm1920_vm3, %v1901_v54, %v1903_v1 }
 0x2bf   : > { %v1937_v58 = vadd.f32 %v1921_v48, %v5508_v12  ;;  %v1740_v57 = vpop.permute.xlu0 %1739  ;;  %v2756_v12 = vpop.f32.mrf.mxu2  ;;  %v3219_v48 = vld [vmem:[%s6073_s6 + $0x18] sm:$0xff] }
 0x2c0   : > { %v1749_v3 = vsel %vm1741_vm2, %v1738_v21, %v1740_v57  ;;  %vm3240_vm2 = vcmask 130048  }
 0x2c1   : > { %v1765_v7 = vadd.f32 %v1749_v3, %v1586_v19 }
 0x2c3   : > { %2620 = vrot.lane.b32.xlu2 %v2554_v15, %s3996_s16  ;;  %2628 = vrot.lane.b32.xlu1 %v2534_v8, %s3996_s16  ;;  %v2782_v43 = vpop.f32.mrf.mxu3 }
 0x2c5   : > { %v5559_v37 = vpop.permute.xlu2 %2089  ;;  %v1911_v44 = vpop.permute.xlu1 %1910  ;;  %2634 = vrot.lane.b32.xlu0 %v2603_v47, %s3996_s16 }
 0x2c6   : > { %v1925_v10 = vsel %vm1920_vm3, %v1911_v44, %v5528_v45 }
 0x2c7   : > { %v1941_v34 = vadd.f32 %v1925_v10, %v1762_v46  ;;  %v1905_v14 = vpop.permute.xlu0 %1904 }
 0x2c8   : > { %v1922_v26 = vsel %vm1920_vm3, %v1903_v1, %v1905_v14 }
 0x2c9   : > { %v1938_v36 = vadd.f32 %v1922_v26, %v5521_v16  ;;  %v2759_v16 = vpop.f32.mrf.mxu2 }
 0x2cb   : > { %2632 = vrot.lane.b32.xlu2 %v2580_v5, %s3996_s16  ;;  %2624 = vrot.lane.b32.xlu1 %v2600_v50, %s3996_s16  ;;  %v3218_v5 = vld [vmem:[%s6073_s6 + $0x10] sm:$0xff] }
 0x2cd   : > { %v2084_v22 = vpop.permute.xlu2 %2083  ;;  %v1907_v51 = vpop.permute.xlu1 %1906  ;;  %2799 = vrot.lane.b32.xlu0 %v2733_v39, %s3997_s19 }
 0x2ce   : > { %v1924_v6 = vsel %vm1920_vm3, %v1907_v51, %v1909_v27  ;;  %v1923_v40 = vsel %vm1920_vm3, %v1905_v14, %v1907_v51 }
 0x2cf   : > { %v1940_v63 = vadd.f32 %v1924_v6, %v1761_v61  ;;  %v1939_v29 = vadd.f32 %v1923_v40, %v5523_v55  ;;  %v1919_v21 = vpop.permute.xlu0 %1918 }
 0x2d0   : > { %v1928_v18 = vsel %vm1920_vm3, %v5548_v9, %v1919_v21 }
 0x2d1   : > { %v1944_v4 = vadd.f32 %v1928_v18, %v1765_v7 }
 0x2d3   : > { %2805 = vrot.lane.b32.xlu2 %v2690_v33, %s3997_s19  ;;  %2630 = vrot.lane.b32.xlu1 %v2557_v35, %s3996_s16  ;;  %s3879_s16 = scalar_lea.hbm %s3878_s22, 128 }
 0x2d4   : > { %p3880_p3 = scmp.ne.s32.totalorder %s3878_s22, %s3879_s16  ;;  %p3885_p11 = scmp.lt.s32.totalorder %s3883_s18, %s3879_s16 }
 0x2d5   : > { %v2082_v38 = vpop.permute.xlu2 %2081  ;;  %v2080_v17 = vpop.permute.xlu1 %2079  ;;  %2811 = vrot.lane.b32.xlu0 %v2759_v16, %s3997_s19 }
 0x2d6   : > { %v2101_v60 = vsel %vm2099_vm4, %v2082_v38, %v2084_v22  ;;  %v2100_v55 = vsel %vm2099_vm4, %v2080_v17, %v2082_v38  ;;  %p3881_p7 = pnand %p3880_p3, %p4123_p12  ;;  %p3886_p13 = por %p3885_p11, %p3884_p10 }
 0x2d7   : > { %v2117_v24 = vadd.f32 %v2101_v60, %v1938_v36  ;;  %v2116_v53 = vadd.f32 %v2100_v55, %v1937_v58  ;;  %v2086_v42 = vpop.permute.xlu0 %2085 }
 0x2d8   : > { %v2102_v41 = vsel %vm2099_vm4, %v2084_v22, %v2086_v42  ;;  %p3882_p9 = pneg %p3881_p7 }
 0x2d9   : > { %v2118_v25 = vadd.f32 %v2102_v41, %v1939_v29 }
 0x2da   : > { %p3887_p0 = pnand %p3886_p13, %p3882_p9 }
 0x2db   : > { %2803 = vrot.lane.b32.xlu2 %v2779_v11, %s3997_s19  ;;  %2801 = vrot.lane.b32.xlu1 %v2756_v12, %s3997_s19 }
 0x2dd   : > { %v2098_v30 = vpop.permute.xlu2 %2097  ;;  %v1915_v61 = vpop.permute.xlu1 %1914  ;;  %2807 = vrot.lane.b32.xlu0 %v2713_v0, %s3997_s19 }
 0x2de   : > { %v1926_v50 = vsel %vm1920_vm3, %v5528_v45, %v1915_v61  ;;  %v1927_v31 = vsel %vm1920_vm3, %v1915_v61, %v5548_v9 }
 0x2df   : > { %v1942_v52 = vadd.f32 %v1926_v50, %v5544_v23  ;;  %v1943_v27 = vadd.f32 %v1927_v31, %v5533_v62  ;;  %v2094_v20 = vpop.permute.xlu0 %2093 }
 0x2e3   : > { %2809 = vrot.lane.b32.xlu2 %v2736_v13, %s3997_s19  ;;  %2813 = vrot.lane.b32.xlu1 %v2782_v43, %s3997_s19 }
 0x2e5   : > { %v2259_v46 = vpop.permute.xlu2 %2258  ;;  %v2088_v45 = vpop.permute.xlu1 %2087  ;;  %3222 = vperm.xlu0 %3774, %v3216_v49  }
 0x2e6   : > { %v2103_v54 = vsel %vm2099_vm4, %v2086_v42, %v2088_v45 }
 0x2e7   : > { %v2119_v56 = vadd.f32 %v2103_v54, %v1940_v63  ;;  %v2092_v23 = vpop.permute.xlu0 %2091 }
 0x2e8   : > { %v2104_v62 = vsel %vm2099_vm4, %v5559_v37, %v2092_v23  ;;  %v2105_v8 = vsel %vm2099_vm4, %v2092_v23, %v2094_v20  ;;  %v3217_v37 = vld [vmem:[%s6073_s6 + $0x8] sm:$0xff] }
 0x2e9   : > { %v2120_v9 = vadd.f32 %v2104_v62, %v1941_v34  ;;  %v2121_v1 = vadd.f32 %v2105_v8, %v1942_v52 }
 0x2eb   : > { %2797 = vrot.lane.b32.xlu2 %v2710_v2, %s3997_s19  ;;  %2795 = vrot.lane.b32.xlu1 %v5557_v28, %s3997_s19 }
 0x2ed   : > { %v2273_v47 = vpop.permute.xlu2 %2272  ;;  %v2096_v19 = vpop.permute.xlu1 %2095  ;;  %3237 = vperm.xlu0 %3774, %v3219_v48  }
 0x2ee   : > { %v2106_v58 = vsel %vm2099_vm4, %v2094_v20, %v2096_v19  ;;  %v2107_v57 = vsel %vm2099_vm4, %v2096_v19, %v2098_v30 }
 0x2ef   : > { %v2122_v15 = vadd.f32 %v2106_v58, %v1943_v27  ;;  %v2123_v3 = vadd.f32 %v2107_v57, %v1944_v4  ;;  %v2261_v7 = vpop.permute.xlu0 %2260 }
 0x2f0   : > { %v2279_v28 = vsel %vm2278_vm5, %v2259_v46, %v2261_v7 }
 0x2f1   : > { %v2295_v44 = vadd.f32 %v2279_v28, %v2116_v53 }
 0x2f3   : > { %3232 = vperm.xlu2 %3776, %v3218_v5   ;;  %3227 = vperm.xlu1 %3775, %v3217_v37  }
 0x2f5   : > { %v2267_v10 = vpop.permute.xlu2 %2266  ;;  %v2265_v34 = vpop.permute.xlu1 %2264 }
 0x2f6   : > { %v2282_v14 = vsel %vm2278_vm5, %v2265_v34, %v2267_v10 }
 0x2f7   : > { %v2298_v26 = vadd.f32 %v2282_v14, %v2119_v56  ;;  %v2263_v35 = vpop.permute.xlu0 %2262 }
 0x2f8   : > { %v2280_v12 = vsel %vm2278_vm5, %v2261_v7, %v2263_v35  ;;  %v2281_v36 = vsel %vm2278_vm5, %v2263_v35, %v2265_v34 }
 0x2f9   : > { %v2296_v39 = vadd.f32 %v2280_v12, %v2117_v24  ;;  %v5616_v22 = vadd.f32 %v2281_v36, %v2118_v25 }
 0x2fd   : > { %v2440_v51 = vpop.permute.xlu2 %2439  ;;  %v2271_v33 = vpop.permute.xlu1 %2270 }
 0x2fe   : > { %v2284_v6 = vsel %vm2278_vm5, %v2271_v33, %v2273_v47 }
 0x2ff   : > { %v2300_v40 = vadd.f32 %v2284_v6, %v2121_v1  ;;  %v2269_v63 = vpop.permute.xlu0 %2268 }
 0x300   : > { %v2283_v29 = vsel %vm2278_vm5, %v2269_v63, %v2271_v33 }
 0x301   : > { %v2299_v21 = vadd.f32 %v2283_v29, %v2120_v9 }
 0x305   : > { %v2450_v18 = vpop.permute.xlu2 %2449  ;;  %v2438_v2 = vpop.permute.xlu1 %2437 }
 0x306   : > { %v2458_v4 = vsel %vm2457_vm6, %v2438_v2, %v2440_v51 }
 0x307   : > { %v2474_v16 = vadd.f32 %v2458_v4, %v2295_v44  ;;  %v2275_v38 = vpop.permute.xlu0 %2274 }
 0x308   : > { %v2285_v17 = vsel %vm2278_vm5, %v2273_v47, %v2275_v38 }
 0x309   : > { %v2301_v60 = vadd.f32 %v2285_v17, %v2122_v15 }
 0x30d   : > { %v2444_v55 = vpop.permute.xlu2 %2443  ;;  %v2442_v24 = vpop.permute.xlu1 %2441 }
 0x30e   : > { %v2459_v53 = vsel %vm2457_vm6, %v2440_v51, %v2442_v24  ;;  %v2460_v14 = vsel %vm2457_vm6, %v2442_v24, %v2444_v55 }
 0x30f   : > { %v2475_v42 = vadd.f32 %v2459_v53, %v2296_v39  ;;  %v2452_v11 = vpop.permute.xlu0 %2451  ;;  %v2476_v6 = vadd.f32 %v2460_v14, %v5616_v22 }
 0x310   : > { %v2463_v41 = vsel %vm2457_vm6, %v2450_v18, %v2452_v11 }
 0x311   : > { %v5624_v25 = vadd.f32 %v2463_v41, %v2300_v40 }
 0x315   : > { %v2456_v0 = vpop.permute.xlu2 %2455  ;;  %v2277_v30 = vpop.permute.xlu1 %2276 }
 0x316   : > { %v2286_v61 = vsel %vm2278_vm5, %v2275_v38, %v2277_v30 }
 0x317   : > { %v5627_v50 = vadd.f32 %v2286_v61, %v2123_v3  ;;  %v2446_v31 = vpop.permute.xlu0 %2445 }
 0x318   : > { %v2461_v52 = vsel %vm2457_vm6, %v2444_v55, %v2446_v31 }
 0x319   : > { %v2477_v27 = vadd.f32 %v2461_v52, %v2298_v26 }
 0x31d   : > { %v2621_v20 = vpop.permute.xlu2 %2620  ;;  %v2448_v13 = vpop.permute.xlu1 %2447 }
 0x31e   : > { %v2462_v43 = vsel %vm2457_vm6, %v2448_v13, %v2450_v18 }
 0x31f   : > { %v2478_v49 = vadd.f32 %v2462_v43, %v2299_v21  ;;  %v2617_v46 = vpop.permute.xlu0 %2616 }
 0x325   : > { %v2633_v45 = vpop.permute.xlu2 %2632  ;;  %v2619_v54 = vpop.permute.xlu1 %2618 }
 0x326   : > { %v2638_v56 = vsel %vm2636_vm7, %v2619_v54, %v2621_v20  ;;  %v2637_v23 = vsel %vm2636_vm7, %v2617_v46, %v2619_v54 }
 0x327   : > { %v2654_v62 = vadd.f32 %v2638_v56, %v2475_v42  ;;  %v5633_v8 = vadd.f32 %v2637_v23, %v2474_v16  ;;  %v2627_v9 = vpop.permute.xlu0 %2626 }
 0x32d   : > { %v2806_v1 = vpop.permute.xlu2 %2805  ;;  %v2454_v48 = vpop.permute.xlu1 %2453 }
 0x32e   : > { %v2464_v5 = vsel %vm2457_vm6, %v2452_v11, %v2454_v48 }
 0x32f   : > { %v2623_v47 = vpop.permute.xlu0 %2622  ;;  %v2480_v37 = vadd.f32 %v2464_v5, %v2301_v60  ;;  %v2465_v60 = vsel %vm2457_vm6, %v2454_v48, %v2456_v0 }
 0x330   : > { %v2639_v39 = vsel %vm2636_vm7, %v2621_v20, %v2623_v47 }
 0x331   : > { %v2655_v21 = vadd.f32 %v2639_v39, %v2476_v6 }
 0x335   : > { %v2804_v19 = vpop.permute.xlu2 %2803  ;;  %v2629_v58 = vpop.permute.xlu1 %2628 }
 0x336   : > { %v2641_v29 = vsel %vm2636_vm7, %v2627_v9, %v2629_v58 }
 0x337   : > { %v2635_v57 = vpop.permute.xlu0 %2634  ;;  %v2657_v11 = vadd.f32 %v2641_v29, %v2478_v49 }
 0x338   : > { %v2644_v20 = vsel %vm2636_vm7, %v2633_v45, %v2635_v57 }
 0x33d   : > { %v2810_v15 = vpop.permute.xlu2 %2809  ;;  %v2625_v3 = vpop.permute.xlu1 %2624 }
 0x33e   : > { %v2640_v40 = vsel %vm2636_vm7, %v2623_v47, %v2625_v3 }
 0x33f   : > { %v2800_v7 = vpop.permute.xlu0 %2799  ;;  %v2656_v18 = vadd.f32 %v2640_v40, %v2477_v27 }
 0x345   : > { %v5636_v28 = vpop.permute.xlu2 %2797  ;;  %v2631_v44 = vpop.permute.xlu1 %2630 }
 0x346   : > { %v2643_v10 = vsel %vm2636_vm7, %v2631_v44, %v2633_v45  ;;  %v2817_v34 = vsel %vm2815_vm8, %v5636_v28, %v2800_v7  ;;  %v2642_v2 = vsel %vm2636_vm7, %v2629_v58, %v2631_v44 }
 0x347   : > { %v2659_v26 = vadd.f32 %v2643_v10, %v2480_v37  ;;  %v2833_v35 = vadd.f32 %v2817_v34, %v2654_v62  ;;  %v2812_v12 = vpop.permute.xlu0 %2811  ;;  %v2658_v41 = vadd.f32 %v2642_v2, %v5624_v25  ;;  %v2481_v25 = vadd.f32 %v2465_v60, %v5627_v50 }
 0x348   : > { %v2822_v36 = vsel %vm2815_vm8, %v2810_v15, %v2812_v12 }
 0x349   : > { %v5645_v51 = vadd.f32 %v5475_v59, %v2833_v35  ;;  %v2838_v33 = vadd.f32 %v2822_v36, %v2659_v26  ;;  %v2660_v62 = vadd.f32 %v2644_v20, %v2481_v25 }
 0x34b   : > { %v5650_v63 = vadd.f32 %v5480_v32, %v2838_v33  ;;  %v5655_v4 = vmul.f32 0.70710677, %v5645_v51 }
 0x34d   : > { %v2802_v16 = vpop.permute.xlu1 %2801  ;;  %v5658_v38 = vmul.f32 0.70710677, %v5650_v63  ;;  %v2916_v31 = vmul.f32 %v5655_v4, %v5655_v4 }
 0x34e   : > { %v2818_v22 = vsel %vm2815_vm8, %v2800_v7, %v2802_v16  ;;  %v2819_v17 = vsel %vm2815_vm8, %v2802_v16, %v2804_v19 }
 0x34f   : > { %v2834_v55 = vadd.f32 %v2818_v22, %v2655_v21  ;;  %v2835_v24 = vadd.f32 %v2819_v17, %v2656_v18  ;;  %v3116_v53 = vmul.f32 %v5658_v38, %v5658_v38  ;;  %v2808_v42 = vpop.permute.xlu0 %2807  ;;  %v5693_v45 = vmin.f32 %v2916_v31, 16.0 }
 0x350   : > { %v2820_v30 = vsel %vm2815_vm8, %v2806_v1, %v2808_v42  ;;  %v2821_v61 = vsel %vm2815_vm8, %v2808_v42, %v2810_v15 }
 0x351   : > { %v5671_v52 = vadd.f32 %v5475_v59, %v2834_v55  ;;  %v5674_v0 = vadd.f32 %v5475_v59, %v2835_v24  ;;  %v5676_v27 = vmin.f32 %v3116_v53, 16.0  ;;  %v2836_v13 = vadd.f32 %v2820_v30, %v2657_v11 }
 0x352   : > { %v2837_v43 = vadd.f32 %v2821_v61, %v2658_v41  ;;  %v2918_v5 = vmul.f32 2.1237322e-06, %v5693_v45 }
 0x353   : > { %v5681_v49 = vmul.f32 0.70710677, %v5671_v52  ;;  %v5684_v46 = vmul.f32 0.70710677, %v5674_v0  ;;  %v3118_v54 = vmul.f32 2.1237322e-06, %v5676_v27  ;;  %v5688_v56 = vadd.f32 %v5480_v32, %v2836_v13 }
 0x354   : > { %v5691_v23 = vadd.f32 %v5480_v32, %v2837_v43  ;;  %v3129_v26 = vmul.f32 3.8918573e-05, %v5676_v27  ;;  %v2919_v6 = vadd.f32 0.00028619796, %v2918_v5 }
 0x355   : > { %v2956_v50 = vmul.f32 %v5681_v49, %v5681_v49  ;;  %v2996_v9 = vmul.f32 %v5684_v46, %v5684_v46  ;;  %v2814_v1 = vpop.permute.xlu1 %2813  ;;  %v3119_v48 = vadd.f32 0.00028619796, %v3118_v54  ;;  %v5706_v3 = vmul.f32 0.70710677, %v5688_v56 }
 0x356   : > { %v2823_v47 = vsel %vm2815_vm8, %v2812_v12, %v2814_v1  ;;  %v5709_v7 = vmul.f32 0.70710677, %v5691_v23  ;;  %v3130_v22 = vadd.f32 0.001143296, %v3129_v26  ;;  %v2920_v41 = vmul.f32 %v2919_v6, %v5693_v45 }
 0x357   : > { %v5700_v19 = vmin.f32 %v2956_v50, 16.0  ;;  %v5702_v58 = vmin.f32 %v2996_v9, 16.0  ;;  %v2839_v57 = vadd.f32 %v2823_v47, %v2660_v62  ;;  %v3120_v15 = vmul.f32 %v3119_v48, %v5676_v27 }
 0x358   : > { %v3036_v34 = vmul.f32 %v5706_v3, %v5706_v3  ;;  %v3076_v14 = vmul.f32 %v5709_v7, %v5709_v7  ;;  %v2921_v9 = vadd.f32 0.0036580483, %v2920_v41 }
 0x359   : > { %v2958_v37 = vmul.f32 2.1237322e-06, %v5700_v19  ;;  %v2998_v44 = vmul.f32 2.1237322e-06, %v5702_v58  ;;  %v5715_v10 = vadd.f32 %v5480_v32, %v2839_v57  ;;  %v3121_v36 = vadd.f32 0.0036580483, %v3120_v15 }
 0x35a   : > { %v5725_v33 = vmin.f32 %v3036_v34, 16.0  ;;  %v5729_v29 = vmin.f32 %v3076_v14, 16.0  ;;  %v2922_v14 = vmul.f32 %v2921_v9, %v5693_v45 }
 0x35b   : > { %v2959_v35 = vadd.f32 0.00028619796, %v2958_v37  ;;  %v2999_v12 = vadd.f32 0.00028619796, %v2998_v44  ;;  %v5723_v39 = vmul.f32 0.70710677, %v5715_v10  ;;  %v3122_v55 = vmul.f32 %v3121_v36, %v5676_v27 }
 0x35c   : > { %v3038_v2 = vmul.f32 2.1237322e-06, %v5725_v33  ;;  %v3078_v11 = vmul.f32 2.1237322e-06, %v5729_v29 }
 0x35d   : > { %v2960_v32 = vmul.f32 %v2959_v35, %v5700_v19  ;;  %v3000_v40 = vmul.f32 %v2999_v12, %v5702_v58  ;;  %v2796_v21 = vpop.permute.xlu1 %2795  ;;  %v3156_v18 = vmul.f32 %v5723_v39, %v5723_v39  ;;  %v3123_v13 = vadd.f32 0.05243302, %v3122_v55 }
 0x35e   : > { %v2816_v16 = vsel %vm2815_vm8, %v2796_v21, %v5636_v28  ;;  %v3039_v42 = vadd.f32 0.00028619796, %v3038_v2  ;;  %v3079_v31 = vadd.f32 0.00028619796, %v3078_v11  ;;  %v2969_v12 = vmul.f32 3.8918573e-05, %v5700_v19 }
 0x35f   : > { %v2961_v17 = vadd.f32 0.0036580483, %v2960_v32  ;;  %v3001_v60 = vadd.f32 0.0036580483, %v3000_v40  ;;  %v2832_v24 = vadd.f32 %v2816_v16, %v5633_v8  ;;  %v5738_v53 = vmin.f32 %v3156_v18, 16.0 }
 0x360   : > { %v3040_v28 = vmul.f32 %v3039_v42, %v5725_v33  ;;  %v3131_v8 = vmul.f32 %v3130_v22, %v5676_v27  ;;  %v3080_v50 = vmul.f32 %v3079_v31, %v5729_v29  ;;  %v3124_v5 = vmul.f32 %v3123_v13, %v5676_v27 }
 0x361   : > { %v2962_v30 = vmul.f32 %v2961_v17, %v5700_v19  ;;  %v3158_v61 = vmul.f32 2.1237322e-06, %v5738_v53  ;;  %v5746_v20 = vadd.f32 %v5475_v59, %v2832_v24  ;;  %v3002_v25 = vmul.f32 %v3001_v60, %v5702_v58 }
 0x362   : > { %v3041_v62 = vadd.f32 0.0036580483, %v3040_v28  ;;  %v3132_v59 = vadd.f32 0.014752088, %v3131_v8  ;;  %v3081_v44 = vadd.f32 0.0036580483, %v3080_v50 }
 0x363   : > { %v2963_v43 = vadd.f32 0.05243302, %v2962_v30  ;;  %v3159_v54 = vadd.f32 0.00028619796, %v3158_v61  ;;  %v5754_v47 = vmul.f32 0.70710677, %v5746_v20 }
 0x364   : > { %v3042_v48 = vmul.f32 %v3041_v62, %v5725_v33  ;;  %v3003_v15 = vadd.f32 0.05243302, %v3002_v25  ;;  %v3133_v34 = vmul.f32 %v3132_v59, %v5676_v27  ;;  %v3125_v40 = vadd.f32 0.18741608, %v3124_v5 }
 0x365   : > { %v3160_v1 = vmul.f32 %v3159_v54, %v5738_v53  ;;  %v2964_v57 = vmul.f32 %v2963_v43, %v5700_v19  ;;  %v2876_v35 = vmul.f32 %v5754_v47, %v5754_v47  ;;  %v5766_v18 = vmul.f32 0.5, %v5650_v63 }
 0x366   : > { %v3043_v26 = vadd.f32 0.05243302, %v3042_v48  ;;  %v3004_v32 = vmul.f32 %v3003_v15, %v5702_v58  ;;  %v3134_v21 = vadd.f32 0.112945676, %v3133_v34  ;;  %v3082_v2 = vmul.f32 %v3081_v44, %v5729_v29 }
 0x367   : > { %v3161_v37 = vadd.f32 0.0036580483, %v3160_v1  ;;  %v2965_v6 = vadd.f32 0.18741608, %v2964_v57  ;;  %v5770_v16 = vmul.f32 0.5, %v5671_v52  ;;  %v5773_v55 = vmin.f32 %v2876_v35, 16.0 }
 0x368   : > { %v2970_v22 = vadd.f32 0.001143296, %v2969_v12  ;;  %v2923_v17 = vadd.f32 0.05243302, %v2922_v14  ;;  %v3044_v60 = vmul.f32 %v3043_v26, %v5725_v33  ;;  %v3135_v24 = vmul.f32 %v3134_v21, %v5676_v27 }
 0x369   : > { %v3162_v36 = vmul.f32 %v3161_v37, %v5738_v53  ;;  %v3169_v41 = vmul.f32 3.8918573e-05, %v5738_v53  ;;  %v3049_v63 = vmul.f32 3.8918573e-05, %v5725_v33  ;;  %v2966_v30 = vmul.f32 %v2965_v6, %v5700_v19 }
 0x36a   : > { %v2971_v11 = vmul.f32 %v2970_v22, %v5700_v19  ;;  %v3005_v61 = vadd.f32 0.18741608, %v3004_v32  ;;  %v3126_v52 = vmul.f32 %v3125_v40, %v5676_v27  ;;  %v3136_v28 = vadd.f32 0.4994258, %v3135_v24 }
 0x36b   : > { %v3163_v42 = vadd.f32 0.05243302, %v3162_v36  ;;  %v3083_v31 = vadd.f32 0.05243302, %v3082_v2  ;;  %v3170_v8 = vadd.f32 0.001143296, %v3169_v41  ;;  %v2924_v43 = vmul.f32 %v2923_v17, %v5693_v45 }
 0x36c   : > { %v2972_v13 = vadd.f32 0.014752088, %v2971_v11  ;;  %v3045_v25 = vadd.f32 0.18741608, %v3044_v60  ;;  %v2878_v54 = vmul.f32 2.1237322e-06, %v5773_v55  ;;  %v3137_v62 = vmul.f32 %v3136_v28, %v5676_v27 }
 0x36d   : > { %v3164_v50 = vmul.f32 %v3163_v42, %v5738_v53  ;;  %v3171_v1 = vmul.f32 %v3170_v8, %v5738_v53  ;;  %v3050_v48 = vadd.f32 0.001143296, %v3049_v63  ;;  %v2967_v59 = vadd.f32 1.1283791, %v2966_v30 }
 0x36e   : > { %v2973_v9 = vmul.f32 %v2972_v13, %v5700_v19  ;;  %v3006_v57 = vmul.f32 %v3005_v61, %v5702_v58  ;;  %v3127_v15 = vadd.f32 1.1283791, %v3126_v52  ;;  %v3138_v5 = vadd.f32 1.0, %v3137_v62 }
 0x36f   : > { %v3084_v37 = vmul.f32 %v3083_v31, %v5729_v29  ;;  %v3172_v34 = vadd.f32 0.014752088, %v3171_v1  ;;  %v3051_v14 = vmul.f32 %v3050_v48, %v5725_v33  ;;  %v5791_v27 = vmul.f32 0.5, %v5688_v56 }
 0x370   : > { %v2974_v44 = vadd.f32 0.112945676, %v2973_v9  ;;  %v2879_v26 = vadd.f32 0.00028619796, %v2878_v54  ;;  %3817 = vrcp.f32 %v3138_v5  ;;  %v3089_v35 = vmul.f32 3.8918573e-05, %v5729_v29 }
 0x371   : > { %v3165_v12 = vadd.f32 0.18741608, %v3164_v50  ;;  %v3046_v36 = vmul.f32 %v3045_v25, %v5725_v33  ;;  %v3173_v32 = vmul.f32 %v3172_v34, %v5738_v53  ;;  %v5797_v40 = vadd.f32 0.18741608, %v2924_v43 }
 0x372   : > { %v2975_v6 = vmul.f32 %v2974_v44, %v5700_v19  ;;  %v5800_v21 = vmul.f32 %v3127_v15, %v5658_v38  ;;  %v5803_v2 = vmul.f32 0.5, %v5715_v10  ;;  %v3052_v56 = vadd.f32 0.014752088, %v3051_v14 }
 0x373   : > { %v5806_v22 = vmul.f32 %v2967_v59, %v5681_v49  ;;  %v5808_v17 = vadd.f32 1.1283791, %v3006_v57  ;;  %v3085_v60 = vadd.f32 0.18741608, %v3084_v37  ;;  %v3174_v42 = vadd.f32 0.112945676, %v3173_v32 }
 0x374   : > { %v2976_v24 = vadd.f32 0.4994258, %v2975_v6  ;;  %v3053_v11 = vmul.f32 %v3052_v56, %v5725_v33  ;;  %v3090_v41 = vadd.f32 0.001143296, %v3089_v35  ;;  %v3009_v63 = vmul.f32 3.8918573e-05, %v5702_v58 }
 0x375   : > { %v3166_v38 = vmul.f32 %v3165_v12, %v5738_v53  ;;  %v3047_v30 = vadd.f32 1.1283791, %v3046_v36  ;;  %v2880_v10 = vmul.f32 %v2879_v26, %v5773_v55  ;;  %v3175_v49 = vmul.f32 %v3174_v42, %v5738_v53 }
 0x376   : > { %v2977_v61 = vmul.f32 %v2976_v24, %v5700_v19  ;;  %v3818_v52 = vpop.eup %3817  ;;  %v3054_v28 = vadd.f32 0.112945676, %v3053_v11  ;;  %v3091_v31 = vmul.f32 %v3090_v41, %v5729_v29  ;;  %v3010_v13 = vadd.f32 0.001143296, %v3009_v63 }
 0x377   : > { %v3140_v8 = vmul.f32 %v3818_v52, %v3138_v5  ;;  %v3148_v43 = vand.u32 2147483647, %v3138_v5  ;;  %v2929_v54 = vmul.f32 3.8918573e-05, %v5693_v45  ;;  %v3176_v62 = vadd.f32 0.4994258, %v3175_v49 }
 0x378   : > { %v5817_v25 = vadd.f32 1.0, %v2977_v61  ;;  %v3055_v50 = vmul.f32 %v3054_v28, %v5725_v33  ;;  %v3092_v9 = vadd.f32 0.014752088, %v3091_v31  ;;  %v3011_v1 = vmul.f32 %v3010_v13, %v5702_v58 }
 0x379   : > { %v3086_v19 = vmul.f32 %v3085_v60, %v5729_v29  ;;  %v3141_v48 = vsub.f32 1.0, %v3140_v8  ;;  %v3150_v59 = vand.u32 2147483648, %v3138_v5  ;;  %v3167_v57 = vadd.f32 1.1283791, %v3166_v38 }
 0x37a   : > { %3819 = vrcp.f32 %v5817_v25  ;;  %vm3145_vm9 = vweird.f32 %v3818_v52  ;;  %v3177_v15 = vmul.f32 %v3176_v62, %v5738_v53  ;;  %v3056_v37 = vadd.f32 0.4994258, %v3055_v50 }
 0x37b   : > { %v3142_v44 = vmul.f32 %v3818_v52, %v3141_v48  ;;  %v3093_v34 = vmul.f32 %v3092_v9, %v5729_v29  ;;  %v3012_v14 = vadd.f32 0.014752088, %v3011_v1  ;;  %v2930_v26 = vadd.f32 0.001143296, %v2929_v54 }
 0x37c   : > { %vm3144_vm10 = vweird.f32 %v3138_v5  ;;  %vm5826_vm11 = vcmp.eq.f32.partialorder %v3148_v43, 8.507059e+37  ;;  %v5830_v12 = vadd.f32 1.0, %v3177_v15  ;;  %v3057_v36 = vmul.f32 %v3056_v37, %v5725_v33 }
 0x37d   : > { %v3143_v6 = vadd.f32 %v3818_v52, %v3142_v44  ;;  %v3151_v32 = vor.u32 1.1754944e-38, %v3150_v59  ;;  %v3094_v56 = vadd.f32 0.112945676, %v3093_v34  ;;  %v3013_v53 = vmul.f32 %v3012_v14, %v5702_v58  ;;  %vm3146_vm12 = vmor %vm3144_vm10, %vm3145_vm9 }
 0x37e   : > { %v2988_v60 = vand.u32 2147483647, %v5817_v25  ;;  %v2990_v24 = vand.u32 2147483648, %v5817_v25  ;;  %3821 = vrcp.f32 %v5830_v12  ;;  %v2931_v5 = vmul.f32 %v2930_v26, %v5693_v45 }
 0x37f   : > { %v3147_v11 = vsel %vm3146_vm12, %v3818_v52, %v3143_v6  ;;  %v5839_v41 = vadd.f32 1.0, %v3057_v36  ;;  %v3095_v33 = vmul.f32 %v3094_v56, %v5729_v29  ;;  %v3014_v63 = vadd.f32 0.112945676, %v3013_v53 }
 0x380   : > { %v3820_v42 = vpop.eup %3819  ;;  %v5843_v38 = vmul.f32 %v3047_v30, %v5706_v3  ;;  %v5845_v61 = vadd.f32 0.0036580483, %v2880_v10  ;;  %v3152_v49 = vsel %vm5826_vm11, %v3151_v32, %v3147_v11  ;;  %v5851_v31 = vmul.f32 %v3167_v57, %v5723_v39 }
 0x381   : > { %v2980_v28 = vmul.f32 %v3820_v42, %v5817_v25  ;;  %v5853_v13 = vadd.f32 1.1283791, %v3086_v19  ;;  %v3153_v52 = vmul.f32 %v3152_v49, %v5800_v21  ;;  %3823 = vrcp.f32 %v5839_v41 }
 0x382   : > { %vm2984_vm13 = vweird.f32 %v5817_v25  ;;  %vm5858_vm14 = vcmp.eq.f32.partialorder %v2988_v60, 8.507059e+37  ;;  %v3096_v30 = vadd.f32 0.4994258, %v3095_v33  ;;  %v2991_v43 = vor.u32 1.1754944e-38, %v2990_v24 }
 0x383   : > { %v2981_v8 = vsub.f32 1.0, %v2980_v28  ;;  %v3631_v10 = vclamps-f32 %v3153_v52, 1.0  ;;  %v3015_v54 = vmul.f32 %v3014_v63, %v5702_v58  ;;  %v2932_v39 = vadd.f32 0.014752088, %v2931_v5 }
 0x384   : > { %v3822_v62 = vpop.eup %3821  ;;  %vm2985_vm15 = vweird.f32 %v3820_v42  ;;  %vm3184_vm0 = vweird.f32 %v5830_v12  ;;  %v3097_v21 = vmul.f32 %v3096_v30, %v5729_v29  ;;  %v2889_v48 = vmul.f32 3.8918573e-05, %v5773_v55 }
 0x385   : > { %v2982_v50 = vmul.f32 %v3820_v42, %v2981_v8  ;;  %v3202_v9 = vadd.f32 1.0, %v3631_v10  ;;  %v3180_v1 = vmul.f32 %v3822_v62, %v5830_v12  ;;  %v3016_v19 = vadd.f32 0.4994258, %v3015_v54  ;;  %vm2986_vm1 = vmor %vm2984_vm13, %vm2985_vm15 }
 0x386   : > { %v3188_v57 = vand.u32 2147483647, %v5830_v12  ;;  %v3190_v15 = vand.u32 2147483648, %v5830_v12  ;;  %v5869_v37 = vadd.f32 1.0, %v3097_v21  ;;  %v2933_v26 = vmul.f32 %v2932_v39, %v5693_v45 }
 0x387   : > { %v2983_v59 = vadd.f32 %v3820_v42, %v2982_v50  ;;  %v3824_v44 = vpop.eup %3823  ;;  %v3210_v34 = vmul.f32 %v3202_v9, %v5766_v18  ;;  %v3181_v29 = vsub.f32 1.0, %v3180_v1  ;;  %v3017_v14 = vmul.f32 %v3016_v19, %v5702_v58 }
 0x388   : > { %v3060_v36 = vmul.f32 %v3824_v44, %v5839_v41  ;;  %v3068_v6 = vand.u32 2147483647, %v5839_v41  ;;  %3825 = vrcp.f32 %v5869_v37  ;;  %vm3185_vm3 = vweird.f32 %v3822_v62 }
 0x389   : > { %v2987_v35 = vsel %vm2986_vm1, %v3820_v42, %v2983_v59  ;;  %3325 = vmatpush.msrb.mxu2 %v3210_v34  ;;  %v3182_v32 = vmul.f32 %v3822_v62, %v3181_v29  ;;  %v2890_v25 = vadd.f32 0.001143296, %v2889_v48  ;;  %vm5882_vm4 = vcmp.eq.f32.partialorder %v3188_v57, 8.507059e+37  ;;  %vm3186_vm5 = vmor %vm3184_vm0, %vm3185_vm3 }
 0x38a   : > { %v2992_v18 = vsel %vm5858_vm14, %v2991_v43, %v2987_v35  ;;  %v3061_v53 = vsub.f32 1.0, %v3060_v36  ;;  %v5886_v60 = vadd.f32 1.0, %v3017_v14  ;;  %v3191_v5 = vor.u32 1.1754944e-38, %v3190_v15 }
 0x38b   : > { %v2993_v56 = vmul.f32 %v2992_v18, %v5806_v22  ;;  %v3183_v24 = vadd.f32 %v3822_v62, %v3182_v32  ;;  %v3070_v42 = vand.u32 2147483648, %v5839_v41  ;;  %v2934_v11 = vadd.f32 0.112945676, %v2933_v26 }
 0x38c   : > { %v3062_v63 = vmul.f32 %v3824_v44, %v3061_v53  ;;  %vm3065_vm6 = vweird.f32 %v3824_v44  ;;  %3827 = vrcp.f32 %v5886_v60  ;;  %vm3064_vm7 = vweird.f32 %v5839_v41 }
 0x38d   : > { %v3627_v33 = vclamps-f32 %v2993_v56, 1.0  ;;  %v3187_v22 = vsel %vm3186_vm5, %v3822_v62, %v3183_v24  ;;  %vm5893_vm8 = vcmp.eq.f32.partialorder %v3068_v6, 8.507059e+37  ;;  %v2891_v28 = vmul.f32 %v2890_v25, %v5773_v55  ;;  %vm3066_vm9 = vmor %vm3064_vm7, %vm3065_vm6  ;;  %v5908_v62 = vld [vmem:[%s6072_s5] sm:$0xff] }
 0x38e   : > { %v3826_v52 = vpop.eup %3825  ;;  %v3192_v3 = vsel %vm5882_vm4, %v3191_v5, %v3187_v22  ;;  %v3063_v12 = vadd.f32 %v3824_v44, %v3062_v63  ;;  %v2935_v30 = vmul.f32 %v2934_v11, %v5693_v45  ;;  %v3071_v43 = vor.u32 1.1754944e-38, %v3070_v42  ;;  %v5942_v5 = vld [vmem:[%s6072_s5 + $0x8] sm:$0xff] }
 0x38f   : > { %v3198_v8 = vadd.f32 1.0, %v3627_v33  ;;  %v3193_v10 = vmul.f32 %v3192_v3, %v5851_v31  ;;  %v3100_v41 = vmul.f32 %v3826_v52, %v5869_v37  ;;  %v3108_v54 = vand.u32 2147483647, %v5869_v37 }
 0x390   : > { %v3067_v50 = vsel %vm3066_vm9, %v3824_v44, %v3063_v12  ;;  %v3110_v21 = vand.u32 2147483648, %v5869_v37  ;;  %v2936_v9 = vadd.f32 0.4994258, %v2935_v30  ;;  %v2892_v48 = vadd.f32 0.014752088, %v2891_v28 }
 0x391   : > { %v3206_v39 = vmul.f32 %v3198_v8, %v5770_v16  ;;  %v3632_v1 = vclamps-f32 %v3193_v10, 1.0  ;;  %v3072_v31 = vsel %vm5893_vm8, %v3071_v43, %v3067_v50  ;;  %v3101_v19 = vsub.f32 1.0, %v3100_v41 }
 0x392   : > { %v3828_v59 = vpop.eup %3827  ;;  %v3088_v57 = vmul.f32 %v5853_v13, %v5709_v7  ;;  %v3073_v16 = vmul.f32 %v3072_v31, %v5843_v38  ;;  %vm3104_vm10 = vweird.f32 %v5869_v37  ;;  %v2937_v15 = vmul.f32 %v2936_v9, %v5693_v45 }
 0x393   : > { %3326 = vmatpush.msrb.mxu2 %v3206_v39  ;;  %v3203_v44 = vadd.f32 1.0, %v3632_v1  ;;  %v3102_v34 = vmul.f32 %v3826_v52, %v3101_v19  ;;  %vm3105_vm11 = vweird.f32 %v3826_v52  ;;  %v3020_v29 = vmul.f32 %v3828_v59, %v5886_v60 }
 0x394   : > { %3641 = vmatmul.msk.f32.vlgmr.msrb.gmra.mxu2 %vm3240_vm2, %v5908_v62  ;;  %v3629_v14 = vclamps-f32 %v3073_v16, 1.0  ;;  %vm5921_vm12 = vcmp.eq.f32.partialorder %v3108_v54, 8.507059e+37  ;;  %v5925_v7 = vadd.f32 1.0, %v2937_v15  ;;  %v2893_v38 = vmul.f32 %v2892_v48, %v5773_v55  ;;  %vm3106_vm13 = vmor %vm3104_vm10, %vm3105_vm11 }
 0x395   : > { %v3211_v13 = vmul.f32 %v3203_v44, %v5803_v2  ;;  %v3103_v35 = vadd.f32 %v3826_v52, %v3102_v34  ;;  %v3111_v36 = vor.u32 1.1754944e-38, %v3110_v21  ;;  %v3021_v6 = vsub.f32 1.0, %v3020_v29  ;;  %v3215_v29 = vld [vmem:[%s6072_s5 + $0x18] sm:$0xff] }
 0x396   : > { %v3200_v18 = vadd.f32 1.0, %v3629_v14  ;;  %v3028_v32 = vand.u32 2147483647, %v5886_v60  ;;  %v3030_v25 = vand.u32 2147483648, %v5886_v60  ;;  %3829 = vrcp.f32 %v5925_v7 }
 0x397   : > { %3354 = vmatpush.msrb.mxu3 %v3211_v13  ;;  %v3107_v56 = vsel %vm3106_vm13, %v3826_v52, %v3103_v35  ;;  %v3022_v58 = vmul.f32 %v3828_v59, %v3021_v6  ;;  %vm3025_vm14 = vweird.f32 %v3828_v59  ;;  %v2894_v53 = vadd.f32 0.112945676, %v2893_v38 }
 0x398   : > { %v2882_v2 = vmul.f32 %v5845_v61, %v5773_v55  ;;  %v3208_v24 = vmul.f32 %v3200_v18, %v5791_v27  ;;  %v3112_v37 = vsel %vm5921_vm12, %v3111_v36, %v3107_v56  ;;  %vm3024_vm15 = vweird.f32 %v5886_v60 }
 0x399   : > { %v3113_v42 = vmul.f32 %v3112_v37, %v3088_v57  ;;  %v3023_v11 = vadd.f32 %v3828_v59, %v3022_v58  ;;  %v2895_v33 = vmul.f32 %v2894_v53, %v5773_v55  ;;  %v2926_v63 = vmul.f32 %v5797_v40, %v5693_v45  ;;  %vm3026_vm0 = vmor %vm3024_vm15, %vm3025_vm14 }
 0x39a   : > { %v3008_v27 = vmul.f32 %v5808_v17, %v5684_v46  ;;  %3267 = vmatpush.msrb.mxu0 %v3208_v24  ;;  %v3031_v61 = vor.u32 1.1754944e-38, %v3030_v25  ;;  %vm3029_vm1 = vcmp.eq.f32.partialorder %v3028_v32, 8.507059e+37  ;;  %v2883_v60 = vadd.f32 0.05243302, %v2882_v2 }
 0x39b   : > { %v3630_v22 = vclamps-f32 %v3113_v42, 1.0  ;;  %v3027_v49 = vsel %vm3026_vm0, %v3828_v59, %v3023_v11  ;;  %v2896_v28 = vadd.f32 0.4994258, %v2895_v33  ;;  %v2865_v3 = vmul.f32 0.5, %v5691_v23  ;;  %v3214_v23 = vld [vmem:[%s6072_s5 + $0x10] sm:$0xff]  ;;  %v3233_v33 = vpop.permute.xlu2 %3232 }
 0x39c   : > { %3642 = vmatmul.msk.f32.gmra.mxu2 %vm3240_vm2, %v5942_v5  ;;  %v3830_v52 = vpop.eup %3829  ;;  %v3032_v8 = vsel %vm3029_vm1, %v3031_v61, %v3027_v49  ;;  %v2927_v17 = vadd.f32 1.1283791, %v2926_v63  ;;  %v2884_v41 = vmul.f32 %v2883_v60, %v5773_v55  ;;  %v2863_v54 = vmul.f32 0.5, %v5674_v0 }
 0x39d   : > { %v3201_v12 = vadd.f32 1.0, %v3630_v22  ;;  %v3033_v45 = vmul.f32 %v3032_v8, %v3008_v27  ;;  %v2940_v40 = vmul.f32 %v3830_v52, %v5925_v7  ;;  %v2897_v46 = vmul.f32 %v2896_v28, %v5773_v55 }
 0x39e   : > { %v2950_v39 = vand.u32 2147483648, %v5925_v7  ;;  %vm2945_vm3 = vweird.f32 %v3830_v52  ;;  %v2948_v1 = vand.u32 2147483647, %v5925_v7  ;;  %vm2944_vm4 = vweird.f32 %v5925_v7 }
 0x39f   : > { %v3209_v30 = vmul.f32 %v3201_v12, %v2865_v3  ;;  %v3628_v10 = vclamps-f32 %v3033_v45, 1.0  ;;  %v2941_v43 = vsub.f32 1.0, %v2940_v40  ;;  %v2898_v50 = vadd.f32 1.0, %v2897_v46  ;;  %vm2946_vm5 = vmor %vm2944_vm4, %vm2945_vm3 }
 0x3a0   : > { %v2885_v0 = vadd.f32 0.18741608, %v2884_v41  ;;  %v2951_v48 = vor.u32 1.1754944e-38, %v2950_v39  ;;  %v2928_v59 = vmul.f32 %v2927_v17, %v5655_v4  ;;  %vm2949_vm6 = vcmp.eq.f32.partialorder %v2948_v1, 8.507059e+37 }
 0x3a1   : > { %3296 = vmatpush.msrb.mxu1 %v3209_v30  ;;  %v3199_v21 = vadd.f32 1.0, %v3628_v10  ;;  %v2942_v9 = vmul.f32 %v3830_v52, %v2941_v43  ;;  %3831 = vrcp.f32 %v2898_v50  ;;  %v2861_v7 = vmul.f32 0.5, %v5645_v51 }
 0x3a2   : > { %v2886_v34 = vmul.f32 %v2885_v0, %v5773_v55  ;;  %v2910_v35 = vand.u32 2147483648, %v2898_v50  ;;  %v2908_v18 = vand.u32 2147483647, %v2898_v50  ;;  %vm2904_vm8 = vweird.f32 %v2898_v50 }
 0x3a3   : > { %v3207_v31 = vmul.f32 %v3199_v21, %v2863_v54  ;;  %v2943_v19 = vadd.f32 %v3830_v52, %v2942_v9  ;;  %v2860_v2 = vmul.f32 0.5, %v5746_v20  ;;  %v3223_v20 = vpop.permute.xlu0 %3222 }
 0x3a4   : > { %3643 = vmatmul.msk.f32.gmra.mxu2 %vm3240_vm2, %v3214_v23  ;;  %v2887_v13 = vadd.f32 1.1283791, %v2886_v34  ;;  %v2911_v51 = vor.u32 1.1754944e-38, %v2910_v35  ;;  %vm2909_vm10 = vcmp.eq.f32.partialorder %v2908_v18, 8.507059e+37 }
 0x3a5   : > { %3355 = vmatpush.msrb.mxu3 %v3207_v31  ;;  %v2947_v57 = vsel %vm2946_vm5, %v3830_v52, %v2943_v19 }
 0x3a6   : > { %3645 = vmatmul.msk.f32.vlgmr.msrb.gmra.mxu3 %vm3240_vm2, %v5908_v62  ;;  %v2952_v16 = vsel %vm2949_vm6, %v2951_v48, %v2947_v57  ;;  %v2888_v32 = vmul.f32 %v2887_v13, %v5754_v47 }
 0x3a7   : > { %v2953_v15 = vmul.f32 %v2952_v16, %v2928_v59  ;;  %v3832_v44 = vpop.eup %3831 }
 0x3a8   : > { %v2900_v26 = vmul.f32 %v3832_v44, %v2898_v50  ;;  %vm2905_vm7 = vweird.f32 %v3832_v44 }
 0x3a9   : > { %v3626_v14 = vclamps-f32 %v2953_v15, 1.0  ;;  %vm2906_vm9 = vmor %vm2904_vm8, %vm2905_vm7 }
 0x3aa   : > { %v2901_v38 = vsub.f32 1.0, %v2900_v26 }
 0x3ab   : > { %v3197_v4 = vadd.f32 1.0, %v3626_v14  ;;  %v3238_v28 = vpop.permute.xlu0 %3237 }
 0x3ac   : > { %3644 = vmatmul.msk.f32.gmra.mxu2 %vm3240_vm2, %v3215_v29  ;;  %v2902_v6 = vmul.f32 %v3832_v44, %v2901_v38 }
 0x3ad   : > { %v3205_v36 = vmul.f32 %v3197_v4, %v2861_v7 }
 0x3ae   : > { %3646 = vmatmul.msk.f32.gmra.mxu3 %vm3240_vm2, %v5942_v5  ;;  %v2903_v55 = vadd.f32 %v3832_v44, %v2902_v6 }
 0x3af   : > { %3297 = vmatpush.msrb.mxu1 %v3205_v36 }
 0x3b0   : > { %3637 = vmatmul.msk.f32.vlgmr.msrb.gmra.mxu1 %vm3240_vm2, %v5908_v62  ;;  %v2907_v25 = vsel %vm2906_vm9, %v3832_v44, %v2903_v55 }
 0x3b1   : > { %v2912_v56 = vsel %vm2909_vm10, %v2911_v51, %v2907_v25 }
 0x3b2   : > { %v2913_v58 = vmul.f32 %v2912_v56, %v2888_v32 }
 0x3b4   : > { %v3625_v53 = vclamps-f32 %v2913_v58, 1.0 }
 0x3b6   : > { %3647 = vmatmul.msk.f32.gmra.mxu3 %vm3240_vm2, %v3214_v23  ;;  %v3196_v24 = vadd.f32 1.0, %v3625_v53 }
 0x3b8   : > { %3638 = vmatmul.msk.f32.gmra.mxu1 %vm3240_vm2, %v5942_v5  ;;  %v3204_v37 = vmul.f32 %v3196_v24, %v2860_v2 }
 0x3ba   : > { %3268 = vmatpush.msrb.mxu0 %v3204_v37 }
 0x3bb   : > { %3633 = vmatmul.msk.f32.vlgmr.msrb.gmra.mxu0 %vm3240_vm2, %v5908_v62  ;;  %v3228_v62 = vpop.permute.xlu1 %3227 }
 0x3be   : > { %3648 = vmatmul.msk.f32.gmra.mxu3 %vm3240_vm2, %v3215_v29 }
 0x3c0   : > { %3639 = vmatmul.msk.f32.gmra.mxu1 %vm3240_vm2, %v3214_v23 }
 0x3c3   : > { %3634 = vmatmul.msk.f32.gmra.mxu0 %vm3240_vm2, %v5942_v5 }
 0x3c8   : > { %3640 = vmatmul.msk.f32.gmra.mxu1 %vm3240_vm2, %v3215_v29 }
 0x3cb   : > { %3635 = vmatmul.msk.f32.gmra.mxu0 %vm3240_vm2, %v3214_v23 }
 0x3d3   : > { %3636 = vmatmul.msk.f32.gmra.mxu0 %vm3240_vm2, %v3215_v29 }
 0x417   : > { %v3328_v47 = vpop.f32.mrf.mxu2 }
 0x418   : > { %v3329_v42 = vadd.f32 %v3328_v47, %v3223_v20 }
 0x41a   : > { %3371 = vst [vmem:[%s5994_s17 + $0x10] sm:$0xff] %v3329_v42 }
 0x41f   : > { %v3331_v5 = vpop.f32.mrf.mxu2 }
 0x420   : > { %v3332_v11 = vadd.f32 %v3331_v5, %v3228_v62 }
 0x422   : > { %3375 = vst [vmem:[%s5994_s17 + $0x30] sm:$0xff] %v3332_v11 }
 0x427   : > { %v3334_v63 = vpop.f32.mrf.mxu2 }
 0x428   : > { %v3335_v27 = vadd.f32 %v3334_v63, %v3233_v33 }
 0x429   : > { %v3357_v61 = vpop.f32.mrf.mxu3 }
 0x42a   : > { %3379 = vst [vmem:[%s5994_s17 + $0x50] sm:$0xff] %v3335_v27  ;;  %v3358_v22 = vadd.f32 %v3357_v61, %v3223_v20 }
 0x42c   : > { %3372 = vst [vmem:[%s5994_s17 + $0x18] sm:$0xff] %v3358_v22 }
 0x42d   : > { %v3299_v49 = vpop.f32.mrf.mxu1 }
 0x42e   : > { %v3300_v52 = vadd.f32 %v3299_v49, %v3223_v20 }
 0x42f   : > { %v3337_v60 = vpop.f32.mrf.mxu2 }
 0x430   : > { %v3338_v8 = vadd.f32 %v3337_v60, %v3238_v28  ;;  %3370 = vst [vmem:[%s5994_s17 + $0x8] sm:$0xff] %v3300_v52 }
 0x431   : > { %v3360_v3 = vpop.f32.mrf.mxu3 }
 0x432   : > { %3383 = vst [vmem:[%s5994_s17 + $0x70] sm:$0xff] %v3338_v8  ;;  %v3361_v12 = vadd.f32 %v3360_v3, %v3228_v62 }
 0x434   : > { %3376 = vst [vmem:[%s5994_s17 + $0x38] sm:$0xff] %v3361_v12 }
 0x435   : > { %v3302_v45 = vpop.f32.mrf.mxu1 }
 0x436   : > { %v3303_v40 = vadd.f32 %v3302_v45, %v3228_v62 }
 0x438   : > { %3374 = vst [vmem:[%s5994_s17 + $0x28] sm:$0xff] %v3303_v40  ;;  %v3270_v46 = vpop.f32.mrf.mxu0 }
 0x439   : > { %v3363_v17 = vpop.f32.mrf.mxu3  ;;  %v3271_v30 = vadd.f32 %v3270_v46, %v3223_v20 }
 0x43a   : > { %v3364_v10 = vadd.f32 %v3363_v17, %v3233_v33 }
 0x43b   : > { %3369 = vst [vmem:[%s5994_s17] sm:$0xff] %v3271_v30 }
 0x43c   : > { %3380 = vst [vmem:[%s5994_s17 + $0x58] sm:$0xff] %v3364_v10 }
 0x43d   : > { %v3305_v43 = vpop.f32.mrf.mxu1 }
 0x43e   : > { %v3306_v41 = vadd.f32 %v3305_v43, %v3233_v33 }
 0x440   : > { %3378 = vst [vmem:[%s5994_s17 + $0x48] sm:$0xff] %v3306_v41  ;;  %v3273_v54 = vpop.f32.mrf.mxu0 }
 0x441   : > { %v3366_v39 = vpop.f32.mrf.mxu3  ;;  %v3274_v50 = vadd.f32 %v3273_v54, %v3228_v62 }
 0x442   : > { %v3367_v23 = vadd.f32 %v3366_v39, %v3238_v28 }
 0x443   : > { %3373 = vst [vmem:[%s5994_s17 + $0x20] sm:$0xff] %v3274_v50 }
 0x444   : > { %3384 = vst [vmem:[%s5994_s17 + $0x78] sm:$0xff] %v3367_v23 }
 0x445   : > { %v3308_v21 = vpop.f32.mrf.mxu1 }
 0x446   : > { %v3309_v9 = vadd.f32 %v3308_v21, %v3238_v28 }
 0x448   : > { %3382 = vst [vmem:[%s5994_s17 + $0x68] sm:$0xff] %v3309_v9  ;;  %v3276_v1 = vpop.f32.mrf.mxu0 }
 0x449   : > { %v3277_v31 = vadd.f32 %v3276_v1, %v3233_v33 }
 0x44b   : > { %3377 = vst [vmem:[%s5994_s17 + $0x40] sm:$0xff] %v3277_v31 }
 0x450   : > { %v3279_v19 = vpop.f32.mrf.mxu0 }
 0x451   : > { %v3280_v0 = vadd.f32 %v3279_v19, %v3238_v28 }
 0x453   : > { %3381 = vst [vmem:[%s5994_s17 + $0x60] sm:$0xff] %v3280_v0 }
 0x454   : > { %3890 = shalt.err (!%p3887_p0)
}
 0x455   : > { %s3998_s10 = smov 512   ;;  %s3999_s17 = smov 1024  }
 0x456   : > { %s4000_s26 = smov 32  }
 0x457   : > { %3660 = dma.vmem_to_hbm [thread:$0]  (%p4123_p12), %s3401_s20, 2048, %s3403_s30, %s3386_s8, %s3998_s10, %s3999_s17, %s4000_s26  }
 0x458 PF: > { %s6135_s14 = sld [smem:[#allocation8_spill]]  ;;  %p3671_p1 = scmp.ge.s32.totalorder %s3985_s11, 2 }
 0x45a   : > { %p3667_p4 = pnand %p3671_p1, %p4136_p2 }
 0x45c   : > { %p3668_p5 = pneg %p3667_p4 }
 0x45e   : > { %s3417_s27 = sand.u32 1, %s6135_s14  }
 0x45f   : > { %s3418_s12 = scalar_lea.sflag [#allocation4], %s3417_s27 }
 0x460   : > { %3940 = dma.done.wait (%p3668_p5), %s3418_s12, 2048  }
 0x461   : > { %3942 = vsyncadd (%p3668_p5), %s3418_s12, 4294965248  ;;  %s23_s11 = sadd.s32 1, %s3985_s11   ;;  %s6136_s21 = sld [smem:[#allocation9_spill]] }
 0x462   : > { %p20_p6 = scmp.ge.s32.totalorder %s23_s11, 6   ;;  %s6137_s26 = sld [smem:[#allocation15_spill]] }
 0x463   : > { %s6138_s23 = sld [smem:[#allocation14_spill]]  ;;  %s6143_s24 = smov %s3949_s25 }
 0x464   : > { %s6139_s30 = sld [smem:[#allocation10_spill]]  ;;  %s6145_s27 = smov %s3961_s28 }
 0x465   : > { %s6140_s8 = sld [smem:[#allocation11_spill]]  ;;  %s6146_s28 = smov %s3965_s29 }
 0x466   : > { %s6141_s9 = sld [smem:[#allocation12_spill]]  ;;  %22 = sbr.rel (!%p20_p6) target bundleno = 9 (0x9), region = 102 }
 0x467   : > { %s6142_s10 = sld [smem:[#allocation13_spill]]  ;;  %s6144_s25 = smov %s6136_s21 }
 0x469   : > { %s6147_s29 = smov %s6138_s23 }
 0x46b   :  { %3424 = vsyncpa [#allocation3], 1 }
 0x46c   :  { %3426 = vsyncpa [#allocation3 + $0x1], 1 }
 0x46d   :  { %3427 = vsyncpa [#allocation4], 1 }
 0x46e   :  { %3429 = vsyncpa [#allocation4 + $0x1], 1 }

</bundles_post_ra>
